<compile_context>
chip_gen: v7x
topology: tpu7x:2x2x1
jax: 0.10.0
libtpu: 0.0.40
codegen_flags: <defaults>
</compile_context>

<pallas_src>
import jax
import jax.numpy as jnp
from jax.experimental import pallas as pl
from jax.experimental.pallas import tpu as pltpu


_HIDDEN = (512, 256, 128, 256, 512)


def _ae_kernel(x_ref,
               w1, b1, w2, b2, w3, b3,
               w4, b4, w5, b5, w6, b6,
               out_ref):
    """Whole 6-layer MLP forward for one batch tile; all weights resident in VMEM."""

    def linear(h_bf16, w_ref, b_ref):
        # bf16 x bf16 -> f32 accumulate on the MXU; bias add in f32 on the VPU.
        acc = jnp.dot(h_bf16, w_ref[...], preferred_element_type=jnp.float32)
        return acc + b_ref[...]

    def linear_relu(h_bf16, w_ref, b_ref):
        return jnp.maximum(linear(h_bf16, w_ref, b_ref), 0.0).astype(jnp.bfloat16)

    h = x_ref[...]               # already bf16 (cast in the wrapper)
    # encoder
    h = linear_relu(h, w1, b1)   # vocab -> 512
    h = linear_relu(h, w2, b2)   # 512   -> 256
    h = linear_relu(h, w3, b3)   # 256   -> 128
    # decoder
    h = linear_relu(h, w4, b4)   # 128   -> 256
    h = linear_relu(h, w5, b5)   # 256   -> 512
    y = linear(h, w6, b6)        # 512   -> vocab, f32
    out_ref[...] = jax.nn.sigmoid(y)   # f32 output, sigmoid on the EUP


def _round_up(x, m):
    return -(-x // m) * m


def _pick_tb(batch):
    """Chip-aware batch tile selection."""
    if batch < 128:
        # Tiny batch: one sublane-aligned tile (padded up to a multiple of 8).
        return max(8, _round_up(batch, 8))

    kind = jax.devices()[0].device_kind.lower()
    if any(k in kind for k in ("v2", "v3", "v4", "v5")):
        # 128x128 MXU generations: M=128 already fills the MXU; bigger tiles only
        # add VMEM pressure.
        return 128
    if "v7" in kind:
        # 2 TensorCores per chip: pick tb so the parallel grid axis has an even
        # number of steps (>= 2) and both cores get work.  tb = round_up(ceil(B/2), 128),
        # capped at 256.
        half = -(-batch // 2)
        return min(256, max(128, _round_up(half, 128)))
    # v6e (2x256x256 MXU): fill the M dim when the batch allows.
    return 256 if batch >= 256 else 128


def _vmem_limit_bytes(params, tb, vp):
    """Tight VMEM request derived from the actual kernel footprint."""
    wbytes = 0
    for (w, b) in params:
        wbytes += w.size * w.dtype.itemsize + b.size * b.dtype.itemsize
    need = (2 * wbytes              # weights/biases (constant index, default 2 buffers)
            + 2 * tb * vp * 2       # bf16 x tile, double-buffered
            + 2 * tb * vp * 4       # f32 out tile, double-buffered
            + 4 * tb * 512 * 4)     # live f32 intermediates inside the body
    limit = int(need * 1.5) + (4 << 20)   # margin for compiler temporaries
    cap = 56 << 20                         # stay below v7x's 64 MiB per-TensorCore VMEM
    if limit > cap:
        # TODO(synk): implement the K/N-streaming (vocab-tiled) path for big vocabularies.
        raise ValueError(
            f"Fused Network_AE kernel needs ~{need >> 20} MiB VMEM for vocab={vp}, tb={tb}; "
            "stream W1/W6 and the x/out tiles along a vocab grid axis instead.")
    return limit


def network_ae_forward(x, params, *, tb=None):
    """x: [B, vocab] float32. params: list of 6 (W[in, out] bf16, b[1, out] f32)."""
    B, V = x.shape
    Vp = _round_up(V, 128)               # lane-dense x/out tiles, MXU-aligned K/N
    if tb is None:
        tb = _pick_tb(B)
    n_tiles = -(-B // tb)
    Bp = n_tiles * tb

    # Cast to bf16 in the wrapper (halves the input DMA); pad batch and vocab.
    xb = x.astype(jnp.bfloat16)
    if Bp != B or Vp != V:
        xb = jnp.pad(xb, ((0, Bp - B), (0, Vp - V)))

    # Zero-pad the vocab-facing weights (W1 rows; W6/b6 cols).
    padded = []
    for li, (w, b) in enumerate(params):
        if Vp != V:
            if li == 0:
                w = jnp.pad(w, ((0, Vp - V), (0, 0)))
            elif li == 5:
                w = jnp.pad(w, ((0, 0), (0, Vp - V)))
                b = jnp.pad(b, ((0, 0), (0, Vp - V)))
        padded.append((w, b))

    flat_args = [xb]
    in_specs = [pl.BlockSpec((tb, Vp), lambda i: (i, 0))]
    for (w, b) in padded:
        flat_args += [w, b]
        # Constant index_map: the whole weight/bias lives in VMEM and is DMA'd once.
        in_specs.append(pl.BlockSpec(w.shape, lambda i: (0, 0)))
        in_specs.append(pl.BlockSpec(b.shape, lambda i: (0, 0)))

    out = pl.pallas_call(
        _ae_kernel,
        out_shape=jax.ShapeDtypeStruct((Bp, Vp), jnp.float32),   # explicitly f32
        grid_spec=pltpu.PrefetchScalarGridSpec(
            num_scalar_prefetch=0,
            grid=(n_tiles,),
            in_specs=in_specs,
            out_specs=pl.BlockSpec((tb, Vp), lambda i: (i, 0)),
        ),
        compiler_params=pltpu.CompilerParams(
            dimension_semantics=("parallel",),
            vmem_limit_bytes=_vmem_limit_bytes(padded, tb, Vp),
        ),
    )(*flat_args)

    if Bp != B or Vp != V:
        out = out[:B, :V]
    return out


def init_params(key, vocab_size):
    """nn.Linear-style init (U[-1/sqrt(fan_in), 1/sqrt(fan_in)]).

    Weights are stored transposed as [in, out] in bf16 (MXU-native dtype);
    biases are kept f32 with shape [1, out]."""
    dims = (vocab_size,) + _HIDDEN + (vocab_size,)
    params = []
    for li in range(6):
        fan_in, fan_out = dims[li], dims[li + 1]
        key, kw, kb = jax.random.split(key, 3)
        bound = 1.0 / jnp.sqrt(jnp.float32(fan_in))
        w = jax.random.uniform(kw, (fan_in, fan_out), jnp.float32, -bound, bound)
        b = jax.random.uniform(kb, (1, fan_out), jnp.float32, -bound, bound)
        params.append((w.astype(jnp.bfloat16), b))
    return params


def reference_forward(x, params):
    """Pure-JAX f32 reference (weights upcast) for tolerance checking."""
    h = x
    for li, (w, b) in enumerate(params):
        y = h @ w.astype(jnp.float32) + b
        h = jax.nn.sigmoid(y) if li == 5 else jnp.maximum(y, 0.0)
    return h


if __name__ == "__main__":
    vocab_size = 1000   # deliberately NOT a multiple of 128 to exercise vocab padding
    batch = 20          # deliberately not a multiple of 8 to exercise batch padding

    key = jax.random.PRNGKey(0)
    kx, kp = jax.random.split(key)
    x = jax.random.uniform(kx, (batch, vocab_size), jnp.float32)  # tf-idf-like inputs
    params = init_params(kp, vocab_size)

    out = jax.block_until_ready(network_ae_forward(x, params))
    ref = reference_forward(x, params)

    assert out.shape == (batch, vocab_size)
    assert out.dtype == jnp.float32
    # bf16 matmul operands (and bf16 x cast) with f32 accumulation -> loose-but-safe tolerance.
    assert jnp.allclose(out, ref, atol=2e-2, rtol=2e-2), float(jnp.max(jnp.abs(out - ref)))

    print("KERNEL_OK")
</pallas_src>

<mosaic_0001>
module attributes {stable_mosaic.version = 11 : i64} {
  func.func @_ae_kernel(%arg0: i32, %arg1: memref<24x1024xbf16, #tpu.memory_space<vmem>>, %arg2: memref<1024x512xbf16, #tpu.memory_space<vmem>>, %arg3: memref<1x512xf32, #tpu.memory_space<vmem>>, %arg4: memref<512x256xbf16, #tpu.memory_space<vmem>>, %arg5: memref<1x256xf32, #tpu.memory_space<vmem>>, %arg6: memref<256x128xbf16, #tpu.memory_space<vmem>>, %arg7: memref<1x128xf32, #tpu.memory_space<vmem>>, %arg8: memref<128x256xbf16, #tpu.memory_space<vmem>>, %arg9: memref<1x256xf32, #tpu.memory_space<vmem>>, %arg10: memref<256x512xbf16, #tpu.memory_space<vmem>>, %arg11: memref<1x512xf32, #tpu.memory_space<vmem>>, %arg12: memref<512x1024xbf16, #tpu.memory_space<vmem>>, %arg13: memref<1x1024xf32, #tpu.memory_space<vmem>>, %arg14: memref<24x1024xf32, #tpu.memory_space<vmem>>) attributes {dimension_semantics = [#tpu.dimension_semantics<parallel>], iteration_bounds = array<i64: 1>, scalar_prefetch = 0 : i64, scratch_operands = 0 : i64, tpu.core_type = #tpu.core_type<tc>, window_params = [{transform_indices = @transform_0, window_bounds = array<i64: 24, 1024>}, {pipeline_mode = #tpu.pipeline_mode<synchronous>, transform_indices = @transform_1, window_bounds = array<i64: 1024, 512>}, {pipeline_mode = #tpu.pipeline_mode<synchronous>, transform_indices = @transform_2, window_bounds = array<i64: 1, 512>}, {pipeline_mode = #tpu.pipeline_mode<synchronous>, transform_indices = @transform_3, window_bounds = array<i64: 512, 256>}, {pipeline_mode = #tpu.pipeline_mode<synchronous>, transform_indices = @transform_4, window_bounds = array<i64: 1, 256>}, {pipeline_mode = #tpu.pipeline_mode<synchronous>, transform_indices = @transform_5, window_bounds = array<i64: 256, 128>}, {pipeline_mode = #tpu.pipeline_mode<synchronous>, transform_indices = @transform_6, window_bounds = array<i64: 1, 128>}, {pipeline_mode = #tpu.pipeline_mode<synchronous>, transform_indices = @transform_7, window_bounds = array<i64: 128, 256>}, {pipeline_mode = #tpu.pipeline_mode<synchronous>, transform_indices = @transform_8, window_bounds = array<i64: 1, 256>}, {pipeline_mode = #tpu.pipeline_mode<synchronous>, transform_indices = @transform_9, window_bounds = array<i64: 256, 512>}, {pipeline_mode = #tpu.pipeline_mode<synchronous>, transform_indices = @transform_10, window_bounds = array<i64: 1, 512>}, {pipeline_mode = #tpu.pipeline_mode<synchronous>, transform_indices = @transform_11, window_bounds = array<i64: 512, 1024>}, {pipeline_mode = #tpu.pipeline_mode<synchronous>, transform_indices = @transform_12, window_bounds = array<i64: 1, 1024>}, {transform_indices = @transform_13, window_bounds = array<i64: 24, 1024>}]} {
    %c0 = arith.constant 0 : index
    %c0_0 = arith.constant 0 : index
    %0 = vector.load %arg1[%c0, %c0_0] : memref<24x1024xbf16, #tpu.memory_space<vmem>>, vector<24x1024xbf16>
    %c0_1 = arith.constant 0 : index
    %c0_2 = arith.constant 0 : index
    %1 = vector.load %arg2[%c0_1, %c0_2] : memref<1024x512xbf16, #tpu.memory_space<vmem>>, vector<1024x512xbf16>
    %cst = arith.constant dense<0.000000e+00> : vector<24x512xf32>
    %2 = tpu.matmul %0, %1, %cst {dimension_numbers = #tpu.dot_dimension_numbers<[1], [0], [0], [1], [0, 0, 1, 1], [], []>} : vector<24x1024xbf16>, vector<1024x512xbf16>, vector<24x512xf32> -> vector<24x512xf32>
    %c0_3 = arith.constant 0 : index
    %c0_4 = arith.constant 0 : index
    %3 = vector.load %arg3[%c0_3, %c0_4] : memref<1x512xf32, #tpu.memory_space<vmem>>, vector<1x512xf32>
    %4 = vector.broadcast %3 : vector<1x512xf32> to vector<24x512xf32>
    %5 = arith.addf %2, %4 : vector<24x512xf32>
    %cst_5 = arith.constant 0.000000e+00 : f32
    %6 = vector.broadcast %cst_5 : f32 to vector<24x512xf32>
    %7 = arith.maximumf %5, %6 : vector<24x512xf32>
    %8 = arith.truncf %7 : vector<24x512xf32> to vector<24x512xbf16>
    %c0_6 = arith.constant 0 : index
    %c0_7 = arith.constant 0 : index
    %9 = vector.load %arg4[%c0_6, %c0_7] : memref<512x256xbf16, #tpu.memory_space<vmem>>, vector<512x256xbf16>
    %cst_8 = arith.constant dense<0.000000e+00> : vector<24x256xf32>
    %10 = tpu.matmul %8, %9, %cst_8 {dimension_numbers = #tpu.dot_dimension_numbers<[1], [0], [0], [1], [0, 0, 1, 1], [], []>} : vector<24x512xbf16>, vector<512x256xbf16>, vector<24x256xf32> -> vector<24x256xf32>
    %c0_9 = arith.constant 0 : index
    %c0_10 = arith.constant 0 : index
    %11 = vector.load %arg5[%c0_9, %c0_10] : memref<1x256xf32, #tpu.memory_space<vmem>>, vector<1x256xf32>
    %12 = vector.broadcast %11 : vector<1x256xf32> to vector<24x256xf32>
    %13 = arith.addf %10, %12 : vector<24x256xf32>
    %cst_11 = arith.constant 0.000000e+00 : f32
    %14 = vector.broadcast %cst_11 : f32 to vector<24x256xf32>
    %15 = arith.maximumf %13, %14 : vector<24x256xf32>
    %16 = arith.truncf %15 : vector<24x256xf32> to vector<24x256xbf16>
    %c0_12 = arith.constant 0 : index
    %c0_13 = arith.constant 0 : index
    %17 = vector.load %arg6[%c0_12, %c0_13] : memref<256x128xbf16, #tpu.memory_space<vmem>>, vector<256x128xbf16>
    %cst_14 = arith.constant dense<0.000000e+00> : vector<24x128xf32>
    %18 = tpu.matmul %16, %17, %cst_14 {dimension_numbers = #tpu.dot_dimension_numbers<[1], [0], [0], [1], [0, 0, 1, 1], [], []>} : vector<24x256xbf16>, vector<256x128xbf16>, vector<24x128xf32> -> vector<24x128xf32>
    %c0_15 = arith.constant 0 : index
    %c0_16 = arith.constant 0 : index
    %19 = vector.load %arg7[%c0_15, %c0_16] : memref<1x128xf32, #tpu.memory_space<vmem>>, vector<1x128xf32>
    %20 = vector.broadcast %19 : vector<1x128xf32> to vector<24x128xf32>
    %21 = arith.addf %18, %20 : vector<24x128xf32>
    %cst_17 = arith.constant 0.000000e+00 : f32
    %22 = vector.broadcast %cst_17 : f32 to vector<24x128xf32>
    %23 = arith.maximumf %21, %22 : vector<24x128xf32>
    %24 = arith.truncf %23 : vector<24x128xf32> to vector<24x128xbf16>
    %c0_18 = arith.constant 0 : index
    %c0_19 = arith.constant 0 : index
    %25 = vector.load %arg8[%c0_18, %c0_19] : memref<128x256xbf16, #tpu.memory_space<vmem>>, vector<128x256xbf16>
    %cst_20 = arith.constant dense<0.000000e+00> : vector<24x256xf32>
    %26 = tpu.matmul %24, %25, %cst_20 {dimension_numbers = #tpu.dot_dimension_numbers<[1], [0], [0], [1], [0, 0, 1, 1], [], []>} : vector<24x128xbf16>, vector<128x256xbf16>, vector<24x256xf32> -> vector<24x256xf32>
    %c0_21 = arith.constant 0 : index
    %c0_22 = arith.constant 0 : index
    %27 = vector.load %arg9[%c0_21, %c0_22] : memref<1x256xf32, #tpu.memory_space<vmem>>, vector<1x256xf32>
    %28 = vector.broadcast %27 : vector<1x256xf32> to vector<24x256xf32>
    %29 = arith.addf %26, %28 : vector<24x256xf32>
    %cst_23 = arith.constant 0.000000e+00 : f32
    %30 = vector.broadcast %cst_23 : f32 to vector<24x256xf32>
    %31 = arith.maximumf %29, %30 : vector<24x256xf32>
    %32 = arith.truncf %31 : vector<24x256xf32> to vector<24x256xbf16>
    %c0_24 = arith.constant 0 : index
    %c0_25 = arith.constant 0 : index
    %33 = vector.load %arg10[%c0_24, %c0_25] : memref<256x512xbf16, #tpu.memory_space<vmem>>, vector<256x512xbf16>
    %cst_26 = arith.constant dense<0.000000e+00> : vector<24x512xf32>
    %34 = tpu.matmul %32, %33, %cst_26 {dimension_numbers = #tpu.dot_dimension_numbers<[1], [0], [0], [1], [0, 0, 1, 1], [], []>} : vector<24x256xbf16>, vector<256x512xbf16>, vector<24x512xf32> -> vector<24x512xf32>
    %c0_27 = arith.constant 0 : index
    %c0_28 = arith.constant 0 : index
    %35 = vector.load %arg11[%c0_27, %c0_28] : memref<1x512xf32, #tpu.memory_space<vmem>>, vector<1x512xf32>
    %36 = vector.broadcast %35 : vector<1x512xf32> to vector<24x512xf32>
    %37 = arith.addf %34, %36 : vector<24x512xf32>
    %cst_29 = arith.constant 0.000000e+00 : f32
    %38 = vector.broadcast %cst_29 : f32 to vector<24x512xf32>
    %39 = arith.maximumf %37, %38 : vector<24x512xf32>
    %40 = arith.truncf %39 : vector<24x512xf32> to vector<24x512xbf16>
    %c0_30 = arith.constant 0 : index
    %c0_31 = arith.constant 0 : index
    %41 = vector.load %arg12[%c0_30, %c0_31] : memref<512x1024xbf16, #tpu.memory_space<vmem>>, vector<512x1024xbf16>
    %cst_32 = arith.constant dense<0.000000e+00> : vector<24x1024xf32>
    %42 = tpu.matmul %40, %41, %cst_32 {dimension_numbers = #tpu.dot_dimension_numbers<[1], [0], [0], [1], [0, 0, 1, 1], [], []>} : vector<24x512xbf16>, vector<512x1024xbf16>, vector<24x1024xf32> -> vector<24x1024xf32>
    %c0_33 = arith.constant 0 : index
    %c0_34 = arith.constant 0 : index
    %43 = vector.load %arg13[%c0_33, %c0_34] : memref<1x1024xf32, #tpu.memory_space<vmem>>, vector<1x1024xf32>
    %44 = vector.broadcast %43 : vector<1x1024xf32> to vector<24x1024xf32>
    %45 = arith.addf %42, %44 : vector<24x1024xf32>
    %46 = arith.negf %45 : vector<24x1024xf32>
    %47 = math.exp %46 : vector<24x1024xf32>
    %cst_35 = arith.constant 1.000000e+00 : f32
    %48 = vector.broadcast %cst_35 : f32 to vector<24x1024xf32>
    %49 = arith.addf %48, %47 : vector<24x1024xf32>
    %50 = arith.divf %48, %49 : vector<24x1024xf32>
    %c0_36 = arith.constant 0 : index
    %c0_37 = arith.constant 0 : index
    %51 = vector.load %arg14[%c0_36, %c0_37] : memref<24x1024xf32, #tpu.memory_space<vmem>>, vector<24x1024xf32>
    tpu.vector_store %arg14[%c0_36, %c0_37], %50 {strides = array<i32>} : memref<24x1024xf32, #tpu.memory_space<vmem>>, vector<24x1024xf32>,
    return
  }
  func.func @transform_0(%arg0: i32) -> (i32, i32) {
    %c0_i32 = arith.constant 0 : i32
    %c0_i32_0 = arith.constant 0 : i32
    return %arg0, %c0_i32 : i32, i32
  }
  func.func @transform_1(%arg0: i32) -> (i32, i32) {
    %c0_i32 = arith.constant 0 : i32
    %c0_i32_0 = arith.constant 0 : i32
    %c0_i32_1 = arith.constant 0 : i32
    return %c0_i32, %c0_i32_0 : i32, i32
  }
  func.func @transform_2(%arg0: i32) -> (i32, i32) {
    %c0_i32 = arith.constant 0 : i32
    %c0_i32_0 = arith.constant 0 : i32
    %c0_i32_1 = arith.constant 0 : i32
    return %c0_i32, %c0_i32_0 : i32, i32
  }
  func.func @transform_3(%arg0: i32) -> (i32, i32) {
    %c0_i32 = arith.constant 0 : i32
    %c0_i32_0 = arith.constant 0 : i32
    %c0_i32_1 = arith.constant 0 : i32
    return %c0_i32, %c0_i32_0 : i32, i32
  }
  func.func @transform_4(%arg0: i32) -> (i32, i32) {
    %c0_i32 = arith.constant 0 : i32
    %c0_i32_0 = arith.constant 0 : i32
    %c0_i32_1 = arith.constant 0 : i32
    return %c0_i32, %c0_i32_0 : i32, i32
  }
  func.func @transform_5(%arg0: i32) -> (i32, i32) {
    %c0_i32 = arith.constant 0 : i32
    %c0_i32_0 = arith.constant 0 : i32
    %c0_i32_1 = arith.constant 0 : i32
    return %c0_i32, %c0_i32_0 : i32, i32
  }
  func.func @transform_6(%arg0: i32) -> (i32, i32) {
    %c0_i32 = arith.constant 0 : i32
    %c0_i32_0 = arith.constant 0 : i32
    %c0_i32_1 = arith.constant 0 : i32
    return %c0_i32, %c0_i32_0 : i32, i32
  }
  func.func @transform_7(%arg0: i32) -> (i32, i32) {
    %c0_i32 = arith.constant 0 : i32
    %c0_i32_0 = arith.constant 0 : i32
    %c0_i32_1 = arith.constant 0 : i32
    return %c0_i32, %c0_i32_0 : i32, i32
  }
  func.func @transform_8(%arg0: i32) -> (i32, i32) {
    %c0_i32 = arith.constant 0 : i32
    %c0_i32_0 = arith.constant 0 : i32
    %c0_i32_1 = arith.constant 0 : i32
    return %c0_i32, %c0_i32_0 : i32, i32
  }
  func.func @transform_9(%arg0: i32) -> (i32, i32) {
    %c0_i32 = arith.constant 0 : i32
    %c0_i32_0 = arith.constant 0 : i32
    %c0_i32_1 = arith.constant 0 : i32
    return %c0_i32, %c0_i32_0 : i32, i32
  }
  func.func @transform_10(%arg0: i32) -> (i32, i32) {
    %c0_i32 = arith.constant 0 : i32
    %c0_i32_0 = arith.constant 0 : i32
    %c0_i32_1 = arith.constant 0 : i32
    return %c0_i32, %c0_i32_0 : i32, i32
  }
  func.func @transform_11(%arg0: i32) -> (i32, i32) {
    %c0_i32 = arith.constant 0 : i32
    %c0_i32_0 = arith.constant 0 : i32
    %c0_i32_1 = arith.constant 0 : i32
    return %c0_i32, %c0_i32_0 : i32, i32
  }
  func.func @transform_12(%arg0: i32) -> (i32, i32) {
    %c0_i32 = arith.constant 0 : i32
    %c0_i32_0 = arith.constant 0 : i32
    %c0_i32_1 = arith.constant 0 : i32
    return %c0_i32, %c0_i32_0 : i32, i32
  }
  func.func @transform_13(%arg0: i32) -> (i32, i32) {
    %c0_i32 = arith.constant 0 : i32
    %c0_i32_0 = arith.constant 0 : i32
    return %arg0, %c0_i32 : i32, i32
  }
}

</mosaic_0001>

<bundles_post_ra>
// kernel: tpu_custom_call.1
= control target key start
LH: loop header
LB: loop body
LE: loop exit
PB: predicated region body
PF: predicated region fallthrough
CT: control target
= control target key end

     0   :  { %18 = vsyncpa [#allocation3], 0  ;;  %s8116_s0 = inlined_call_operand.hbm [shape: bf16[24,1024], index: 0, kind: input, shape index: {}]   ;;  %s8117_s1 = inlined_call_operand.hbm [shape: bf16[1024,512], index: 1, kind: input, shape index: {}]   ;;  %s8118_s2 = inlined_call_operand.vmem [shape: f32[1,512], index: 2, kind: input, shape index: {}]   ;;  %s8119_s3 = inlined_call_operand.hbm [shape: bf16[512,256], index: 3, kind: input, shape index: {}]   ;;  %s8120_s4 = inlined_call_operand.vmem [shape: f32[1,256], index: 4, kind: input, shape index: {}]   ;;  %s8121_s5 = inlined_call_operand.hbm [shape: bf16[256,128], index: 5, kind: input, shape index: {}]   ;;  %s8122_s6 = inlined_call_operand.vmem [shape: f32[1,128], index: 6, kind: input, shape index: {}]   ;;  %s8123_s7 = inlined_call_operand.hbm [shape: bf16[128,256], index: 7, kind: input, shape index: {}]   ;;  %s8124_s8 = inlined_call_operand.vmem [shape: f32[1,256], index: 8, kind: input, shape index: {}]   ;;  %s8125_s9 = inlined_call_operand.hbm [shape: bf16[256,512], index: 9, kind: input, shape index: {}]   ;;  %s8126_s10 = inlined_call_operand.vmem [shape: f32[1,512], index: 10, kind: input, shape index: {}]   ;;  %s8127_s11 = inlined_call_operand.hbm [shape: bf16[512,1024], index: 11, kind: input, shape index: {}]   ;;  %s8128_s12 = inlined_call_operand.vmem [shape: f32[1,1024], index: 12, kind: input, shape index: {}]   ;;  %s8129_s13 = inlined_call_operand.hbm [shape: f32[24,1024], index: 13, kind: output, shape index: {}]  }
   0x1   :  { %19 = vsyncpa [#allocation6], 0 }
   0x2   :  { %20 = vsyncpa [#allocation9], 0 }
   0x3   :  { %21 = vsyncpa [#allocation12], 0 }
   0x4   :  { %22 = vsyncpa [#allocation4], 0  ;;  %s7599_s25 = smov [#allocation5]   ;;  %s7413_s29 = scalar_lea.hbm %s8117_s1, 32768 }
   0x5   :  { %s40_s26 = sshll.u32 %s7599_s25, 4  ;;  %p7414_p0 = scmp.ne.s32.totalorder %s8117_s1, %s7413_s29  ;;  %s41_s26 = int_to_ptr.vmem [resolvable:$true] %s40_s26 }
   0x6   :  { %p7417_p1 = scmp.lt.u32.totalorder %s7413_s29, %s8117_s1 }
   0x8   :  { %p7419_p2 = pnand %p7417_p1, %p7414_p0 }
   0xa   :  { %7422 = shalt.err (!%p7419_p2)
}
   0xb   :  { %s7423_s17 = scalar_lea.vmem %s41_s26, 32768  ;;  %p7428_p4 = scmp.lt.s32.totalorder %s41_s26, %s41_s26 }
   0xc   :  { %p7424_p3 = scmp.ne.s32.totalorder %s41_s26, %s7423_s17  ;;  %p7429_p5 = scmp.lt.s32.totalorder %s7423_s17, %s7423_s17 }
   0xe   :  { %p7430_p6 = por %p7429_p5, %p7428_p4 }
  0x10   :  { %p7431_p7 = pnand %p7430_p6, %p7424_p3 }
  0x12   :  { %7434 = shalt.err (!%p7431_p7)
}
  0x13   :  { %s7600_s18 = smov 256   ;;  %s7601_s19 = smov 16  }
  0x14   :  { %46 = dma.hbm_to_vmem [thread:$0]  %s8117_s1, 32768, %s41_s26, [#allocation6], %s7600_s18, %s7600_s18, %s7601_s19  }
  0x15   :  { %s7602_s22 = smov [#allocation8]   ;;  %s7435_s27 = scalar_lea.hbm %s8121_s5, 2048 }
  0x16   :  { %s68_s23 = sshll.u32 %s7602_s22, 4  ;;  %p7436_p8 = scmp.ne.s32.totalorder %s8121_s5, %s7435_s27  ;;  %s69_s23 = int_to_ptr.vmem [resolvable:$true] %s68_s23 }
  0x17   :  { %p7439_p9 = scmp.lt.u32.totalorder %s7435_s27, %s8121_s5 }
  0x19   :  { %p7441_p10 = pnand %p7439_p9, %p7436_p8 }
  0x1b   :  { %7444 = shalt.err (!%p7441_p10)
}
  0x1c   :  { %s7445_s15 = scalar_lea.vmem %s69_s23, 2048  ;;  %p7450_p12 = scmp.lt.s32.totalorder %s69_s23, %s69_s23 }
  0x1d   :  { %p7446_p11 = scmp.ne.s32.totalorder %s69_s23, %s7445_s15  ;;  %p7451_p13 = scmp.lt.s32.totalorder %s7445_s15, %s7445_s15 }
  0x1f   :  { %p7452_p0 = por %p7451_p13, %p7450_p12 }
  0x21   :  { %p7453_p1 = pnand %p7452_p0, %p7446_p11 }
  0x23   :  { %7456 = shalt.err (!%p7453_p1)
}
  0x24   :  { %s7603_s1 = smov 64   ;;  %s7604_s26 = smov 4  }
  0x25   :  { %74 = dma.hbm_to_vmem [thread:$0]  %s8121_s5, 2048, %s69_s23, [#allocation9], %s7603_s1, %s7603_s1, %s7604_s26  }
  0x26   :  { %s7605_s20 = smov [#allocation11]   ;;  %s7606_s22 = smov [#allocation2]  }
  0x27   :  { %s96_s21 = sshll.u32 %s7605_s20, 4  ;;  %s28_s24 = sshll.u32 %s7606_s22, 4  ;;  %s97_s21 = int_to_ptr.vmem [resolvable:$true] %s96_s21  ;;  %s7716_s24 = int_to_ptr.vmem [resolvable:$true] %s28_s24 }
  0x28   :  { %s7457_s28 = scalar_lea.hbm %s8125_s9, 8192 }
  0x29   :  { %p7458_p2 = scmp.ne.s32.totalorder %s8125_s9, %s7457_s28  ;;  %p7461_p3 = scmp.lt.u32.totalorder %s7457_s28, %s8125_s9 }
  0x2b   :  { %p7463_p4 = pnand %p7461_p3, %p7458_p2 }
  0x2d   :  { %7466 = shalt.err (!%p7463_p4)
}
  0x2e   :  { %s7467_s5 = scalar_lea.vmem %s97_s21, 8192  ;;  %p7472_p6 = scmp.lt.s32.totalorder %s97_s21, %s97_s21 }
  0x2f   :  { %p7468_p5 = scmp.ne.s32.totalorder %s97_s21, %s7467_s5  ;;  %p7473_p7 = scmp.lt.s32.totalorder %s7467_s5, %s7467_s5 }
  0x31   :  { %p7474_p8 = por %p7473_p7, %p7472_p6 }
  0x33   :  { %p7475_p9 = pnand %p7474_p8, %p7468_p5 }
  0x35   :  { %7478 = shalt.err (!%p7475_p9)
}
  0x36   :  { %102 = dma.hbm_to_vmem [thread:$0]  %s8125_s9, 8192, %s97_s21, [#allocation12], %s7600_s18, %s7600_s18, %s7601_s19  }
  0x37   :  { %s7479_s20 = scalar_lea.hbm %s8116_s0, 1536 }
  0x38   :  { %p7480_p10 = scmp.ne.s32.totalorder %s8116_s0, %s7479_s20  ;;  %p7483_p11 = scmp.lt.u32.totalorder %s7479_s20, %s8116_s0 }
  0x3a   :  { %p7485_p12 = pnand %p7483_p11, %p7480_p10 }
  0x3c   :  { %7488 = shalt.err (!%p7485_p12)
}
  0x3d   :  { %s7489_s29 = scalar_lea.vmem %s7716_s24, 1536  ;;  %p7494_p0 = scmp.lt.s32.totalorder %s7716_s24, %s7716_s24 }
  0x3e   :  { %p7490_p13 = scmp.ne.s32.totalorder %s7716_s24, %s7489_s29  ;;  %p7495_p1 = scmp.lt.s32.totalorder %s7489_s29, %s7489_s29 }
  0x40   :  { %p7496_p2 = por %p7495_p1, %p7494_p0 }
  0x42   :  { %p7497_p3 = pnand %p7496_p2, %p7490_p13 }
  0x44   :  { %7500 = shalt.err (!%p7497_p3)
}
  0x45   :  { %s7607_s9 = smov 512   ;;  %s7608_s18 = smov 32  }
  0x46   :  { %34 = dma.hbm_to_vmem [thread:$0]  %s8116_s0, 1536, %s7716_s24, [#allocation3], %s7607_s9, %s7607_s9, %s7608_s18  }
  0x47   :  { %s7609_s30 = smov [#allocation7]   ;;  %s7501_s23 = scalar_lea.hbm %s8119_s3, 8192 }
  0x48   :  { %s54_s14 = sshll.u32 %s7609_s30, 4  ;;  %p7502_p4 = scmp.ne.s32.totalorder %s8119_s3, %s7501_s23  ;;  %s55_s14 = int_to_ptr.vmem [resolvable:$true] %s54_s14 }
  0x49   :  { %p7505_p5 = scmp.lt.u32.totalorder %s7501_s23, %s8119_s3 }
  0x4b   :  { %p7507_p6 = pnand %p7505_p5, %p7502_p4 }
  0x4d   :  { %7510 = shalt.err (!%p7507_p6)
}
  0x4e   :  { %s7511_s22 = scalar_lea.vmem %s55_s14, 8192  ;;  %p7516_p8 = scmp.lt.s32.totalorder %s55_s14, %s55_s14 }
  0x4f   :  { %p7512_p7 = scmp.ne.s32.totalorder %s55_s14, %s7511_s22  ;;  %p7517_p9 = scmp.lt.s32.totalorder %s7511_s22, %s7511_s22 }
  0x51   :  { %p7518_p10 = por %p7517_p9, %p7516_p8 }
  0x53   :  { %p7519_p11 = pnand %p7518_p10, %p7512_p7 }
  0x55   :  { %7522 = shalt.err (!%p7519_p11)
}
  0x56   :  { %s7610_s0 = smov 128   ;;  %s7611_s24 = smov 8  }
  0x57   :  { %60 = dma.hbm_to_vmem [thread:$0]  %s8119_s3, 8192, %s55_s14, [#allocation6], %s7610_s0, %s7610_s0, %s7611_s24  }
  0x58   :  { %s7612_s28 = smov [#allocation10]   ;;  %s7613_s19 = smov [#allocation13]  }
  0x59   :  { %s82_s29 = sshll.u32 %s7612_s28, 4  ;;  %s110_s21 = sshll.u32 %s7613_s19, 4  ;;  %s83_s29 = int_to_ptr.vmem [resolvable:$true] %s82_s29  ;;  %s111_s21 = int_to_ptr.vmem [resolvable:$true] %s110_s21 }
  0x5a   :  { %s7523_s5 = scalar_lea.hbm %s8123_s7, 2048 }
  0x5b   :  { %p7524_p12 = scmp.ne.s32.totalorder %s8123_s7, %s7523_s5  ;;  %p7527_p13 = scmp.lt.u32.totalorder %s7523_s5, %s8123_s7 }
  0x5d   :  { %p7529_p0 = pnand %p7527_p13, %p7524_p12 }
  0x5f   :  { %7532 = shalt.err (!%p7529_p0)
}
  0x60   :  { %s7533_s3 = scalar_lea.vmem %s83_s29, 2048  ;;  %p7538_p2 = scmp.lt.s32.totalorder %s83_s29, %s83_s29 }
  0x61   :  { %p7534_p1 = scmp.ne.s32.totalorder %s83_s29, %s7533_s3  ;;  %p7539_p3 = scmp.lt.s32.totalorder %s7533_s3, %s7533_s3 }
  0x63   :  { %p7540_p4 = por %p7539_p3, %p7538_p2 }
  0x65   :  { %p7541_p5 = pnand %p7540_p4, %p7534_p1 }
  0x67   :  { %7544 = shalt.err (!%p7541_p5)
}
  0x68   :  { %88 = dma.hbm_to_vmem [thread:$0]  %s8123_s7, 2048, %s83_s29, [#allocation9], %s7610_s0, %s7610_s0, %s7611_s24  }
  0x69   :  { %s7545_s27 = scalar_lea.hbm %s8127_s11, 32768 }
  0x6a   :  { %p7546_p6 = scmp.ne.s32.totalorder %s8127_s11, %s7545_s27  ;;  %p7549_p7 = scmp.lt.u32.totalorder %s7545_s27, %s8127_s11 }
  0x6c   :  { %p7551_p8 = pnand %p7549_p7, %p7546_p6 }
  0x6e   :  { %7554 = shalt.err (!%p7551_p8)
}
  0x6f   :  { %s7555_s5 = scalar_lea.vmem %s111_s21, 32768  ;;  %p7560_p10 = scmp.lt.s32.totalorder %s111_s21, %s111_s21 }
  0x70   :  { %p7556_p9 = scmp.ne.s32.totalorder %s111_s21, %s7555_s5  ;;  %p7561_p11 = scmp.lt.s32.totalorder %s7555_s5, %s7555_s5 }
  0x72   :  { %p7562_p12 = por %p7561_p11, %p7560_p10 }
  0x74   :  { %p7563_p13 = pnand %p7562_p12, %p7556_p9 }
  0x76   :  { %7566 = shalt.err (!%p7563_p13)
}
  0x77   :  { %116 = dma.hbm_to_vmem [thread:$0]  %s8127_s11, 32768, %s111_s21, [#allocation12], %s7607_s9, %s7607_s9, %s7608_s18  }
  0x78   :  { %7589 = dma.done.wait [#allocation3], 1536  }
  0x79   :  { %7590 = vsyncadd [#allocation3], 4294965760 }
  0x7a   :  { %7591 = dma.done.wait [#allocation6], 40960  }
  0x7b   :  { %7592 = vsyncadd [#allocation6], 4294926336 }
  0x7c   :  { %7593 = dma.done.wait [#allocation9], 4096  }
  0x7d   :  { %7594 = vsyncadd [#allocation9], 4294963200 }
  0x7e   :  { %7595 = dma.done.wait [#allocation12], 40960  }
  0x7f   :  { %7596 = vsyncadd [#allocation12], 4294926336  ;;  %v6693_v0 = vld [vmem:[#allocation5 + $0x4] ss:$16 sps:$4 sm:$0xff]   ;;  %v6695_v1 = vld [vmem:[#allocation5 + $0xc] ss:$16 sps:$4 sm:$0xff]  }
  0x80   :  { %1779 = vmatprep.subr.bf16.mxu0 %v6693_v0  ;;  %v6697_v2 = vld [vmem:[#allocation5] ss:$16 sps:$4 sm:$0xff]   ;;  %v6698_v3 = vld [vmem:[#allocation5 + $0x8] ss:$16 sps:$4 sm:$0xff]   ;;  %1983 = vmatprep.subr.bf16.mxu1 %v6695_v1  ;;  %v6699_v4 = vld [vmem:[#allocation5 + $0x24] ss:$16 sps:$4 sm:$0xff]  }
  0x81   :  { %1780 = vmatpush1.bf16.msra.mxu0 %v6697_v2  ;;  %1984 = vmatpush1.bf16.msra.mxu1 %v6698_v3  ;;  %v6701_v5 = vld [vmem:[#allocation5 + $0x2c] ss:$16 sps:$4 sm:$0xff]   ;;  %v6703_v6 = vld [vmem:[#allocation5 + $0x20] ss:$16 sps:$4 sm:$0xff]   ;;  %v6704_v7 = vld [vmem:[#allocation5 + $0x28] ss:$16 sps:$4 sm:$0xff]  }
  0x82   :  { %1781 = vmatprep.subr.bf16.mxu0 %v6699_v4  ;;  %1985 = vmatprep.subr.bf16.mxu1 %v6701_v5  ;;  %v6705_v8 = vld [vmem:[#allocation5 + $0x44] ss:$16 sps:$4 sm:$0xff]   ;;  %v6707_v9 = vld [vmem:[#allocation5 + $0x4c] ss:$16 sps:$4 sm:$0xff]   ;;  %v6709_v10 = vld [vmem:[#allocation5 + $0x40] ss:$16 sps:$4 sm:$0xff]  }
  0x83   :  { %v6710_v11 = vld [vmem:[#allocation5 + $0x48] ss:$16 sps:$4 sm:$0xff]   ;;  %v6711_v12 = vld [vmem:[#allocation5 + $0x64] ss:$16 sps:$4 sm:$0xff]   ;;  %v6713_v13 = vld [vmem:[#allocation5 + $0x6c] ss:$16 sps:$4 sm:$0xff]  }
  0x84   :  { %v6715_v14 = vld [vmem:[#allocation5 + $0x60] ss:$16 sps:$4 sm:$0xff]   ;;  %v6716_v15 = vld [vmem:[#allocation5 + $0x68] ss:$16 sps:$4 sm:$0xff]   ;;  %v6717_v16 = vld [vmem:[#allocation5 + $0x84] ss:$16 sps:$4 sm:$0xff]  }
  0x85   :  { %1782 = vmatpush1.bf16.msra.mxu0 %v6703_v6  ;;  %1986 = vmatpush1.bf16.msra.mxu1 %v6704_v7  ;;  %v6719_v17 = vld [vmem:[#allocation5 + $0x8c] ss:$16 sps:$4 sm:$0xff]   ;;  %v6721_v18 = vld [vmem:[#allocation5 + $0x80] ss:$16 sps:$4 sm:$0xff]   ;;  %v6722_v19 = vld [vmem:[#allocation5 + $0x88] ss:$16 sps:$4 sm:$0xff]  }
  0x86   :  { %1783 = vmatprep.subr.bf16.mxu0 %v6705_v8  ;;  %1987 = vmatprep.subr.bf16.mxu1 %v6707_v9  ;;  %v6723_v20 = vld [vmem:[#allocation5 + $0xa4] ss:$16 sps:$4 sm:$0xff]   ;;  %v6725_v21 = vld [vmem:[#allocation5 + $0xac] ss:$16 sps:$4 sm:$0xff]   ;;  %v6727_v22 = vld [vmem:[#allocation5 + $0xa0] ss:$16 sps:$4 sm:$0xff]  }
  0x87   :  { %v6728_v23 = vld [vmem:[#allocation5 + $0xa8] ss:$16 sps:$4 sm:$0xff]   ;;  %v6729_v24 = vld [vmem:[#allocation5 + $0xc4] ss:$16 sps:$4 sm:$0xff]   ;;  %v6731_v25 = vld [vmem:[#allocation5 + $0xcc] ss:$16 sps:$4 sm:$0xff]  }
  0x88   :  { %v6733_v26 = vld [vmem:[#allocation5 + $0xc0] ss:$16 sps:$4 sm:$0xff]   ;;  %v6734_v27 = vld [vmem:[#allocation5 + $0xc8] ss:$16 sps:$4 sm:$0xff]   ;;  %v6735_v28 = vld [vmem:[#allocation5 + $0xe4] ss:$16 sps:$4 sm:$0xff]  }
  0x89   :  { %1784 = vmatpush1.bf16.msra.mxu0 %v6709_v10  ;;  %1988 = vmatpush1.bf16.msra.mxu1 %v6710_v11  ;;  %v6737_v29 = vld [vmem:[#allocation5 + $0xec] ss:$16 sps:$4 sm:$0xff]   ;;  %v6739_v30 = vld [vmem:[#allocation5 + $0xe0] ss:$16 sps:$4 sm:$0xff]   ;;  %v6740_v31 = vld [vmem:[#allocation5 + $0xe8] ss:$16 sps:$4 sm:$0xff]  }
  0x8a   :  { %1785 = vmatprep.subr.bf16.mxu0 %v6711_v12  ;;  %1989 = vmatprep.subr.bf16.mxu1 %v6713_v13  ;;  %v6741_v32 = vld [vmem:[#allocation5 + $0x104] ss:$16 sps:$4 sm:$0xff]   ;;  %v6743_v33 = vld [vmem:[#allocation5 + $0x10c] ss:$16 sps:$4 sm:$0xff]   ;;  %v6745_v34 = vld [vmem:[#allocation5 + $0x100] ss:$16 sps:$4 sm:$0xff]  }
  0x8b   :  { %v6746_v35 = vld [vmem:[#allocation5 + $0x108] ss:$16 sps:$4 sm:$0xff]   ;;  %v6747_v36 = vld [vmem:[#allocation5 + $0x124] ss:$16 sps:$4 sm:$0xff]   ;;  %v6749_v37 = vld [vmem:[#allocation5 + $0x12c] ss:$16 sps:$4 sm:$0xff]  }
  0x8c   :  { %v6751_v38 = vld [vmem:[#allocation5 + $0x120] ss:$16 sps:$4 sm:$0xff]   ;;  %v6752_v39 = vld [vmem:[#allocation5 + $0x128] ss:$16 sps:$4 sm:$0xff]   ;;  %v6753_v40 = vld [vmem:[#allocation5 + $0x144] ss:$16 sps:$4 sm:$0xff]  }
  0x8d   :  { %1786 = vmatpush1.bf16.msra.mxu0 %v6715_v14  ;;  %1990 = vmatpush1.bf16.msra.mxu1 %v6716_v15  ;;  %v6755_v41 = vld [vmem:[#allocation5 + $0x14c] ss:$16 sps:$4 sm:$0xff]   ;;  %v6757_v42 = vld [vmem:[#allocation5 + $0x140] ss:$16 sps:$4 sm:$0xff]   ;;  %v6758_v43 = vld [vmem:[#allocation5 + $0x148] ss:$16 sps:$4 sm:$0xff]  }
  0x8e   :  { %1787 = vmatprep.subr.bf16.mxu0 %v6717_v16  ;;  %1991 = vmatprep.subr.bf16.mxu1 %v6719_v17  ;;  %v6759_v44 = vld [vmem:[#allocation5 + $0x164] ss:$16 sps:$4 sm:$0xff]   ;;  %v6761_v45 = vld [vmem:[#allocation5 + $0x16c] ss:$16 sps:$4 sm:$0xff]   ;;  %v6763_v48 = vld [vmem:[#allocation5 + $0x160] ss:$16 sps:$4 sm:$0xff]  }
  0x8f   :  { %v141_v46 = vld [vmem:[#allocation2] sm:$0xff]  ;;  %v6764_v49 = vld [vmem:[#allocation5 + $0x168] ss:$16 sps:$4 sm:$0xff]   ;;  %v6767_v52 = vld [vmem:[#allocation5 + $0x18c] ss:$16 sps:$4 sm:$0xff]  }
  0x90   :  { %v145_v47 = vld [vmem:[#allocation2 + $0x20] sm:$0xff]  ;;  %v6770_v54 = vld [vmem:[#allocation5 + $0x188] ss:$16 sps:$4 sm:$0xff]   ;;  %v6773_v56 = vld [vmem:[#allocation5 + $0x1ac] ss:$16 sps:$4 sm:$0xff]  }
  0x91   :  { %1788 = vmatpush1.bf16.msra.mxu0 %v6721_v18  ;;  %1992 = vmatpush1.bf16.msra.mxu1 %v6722_v19  ;;  %v5775_v50 = vcombine.high %v141_v46, %v145_v47  ;;  %v6765_v51 = vld [vmem:[#allocation5 + $0x184] ss:$16 sps:$4 sm:$0xff]   ;;  %v6769_v53 = vld [vmem:[#allocation5 + $0x180] ss:$16 sps:$4 sm:$0xff]   ;;  %v6776_v58 = vld [vmem:[#allocation5 + $0x1a8] ss:$16 sps:$4 sm:$0xff]   ;;  %v5774_v5 = vcombine.low %v141_v46, %v145_v47 }
  0x92   :  { %1789 = vmatprep.subr.bf16.mxu0 %v6723_v20  ;;  %1993 = vmatprep.subr.bf16.mxu1 %v6725_v21  ;;  %v6771_v55 = vld [vmem:[#allocation5 + $0x1a4] ss:$16 sps:$4 sm:$0xff]   ;;  %v6775_v57 = vld [vmem:[#allocation5 + $0x1a0] ss:$16 sps:$4 sm:$0xff]   ;;  %v6779_v60 = vld [vmem:[#allocation5 + $0x1cc] ss:$16 sps:$4 sm:$0xff]  }
  0x93   :  { %1811 = vmatprep.mubr.bf16.mxu0 %v5775_v50  ;;  %2015 = vmatprep.mubr.bf16.mxu1 %v5775_v50  ;;  %v6777_v59 = vld [vmem:[#allocation5 + $0x1c4] ss:$16 sps:$4 sm:$0xff]   ;;  %v6781_v61 = vld [vmem:[#allocation5 + $0x1c0] ss:$16 sps:$4 sm:$0xff]   ;;  %v6782_v62 = vld [vmem:[#allocation5 + $0x1c8] ss:$16 sps:$4 sm:$0xff]  }
  0x94   :  { %v6783_v63 = vld [vmem:[#allocation5 + $0x1e4] ss:$16 sps:$4 sm:$0xff]   ;;  %v6785_v0 = vld [vmem:[#allocation5 + $0x1ec] ss:$16 sps:$4 sm:$0xff]   ;;  %v6787_v1 = vld [vmem:[#allocation5 + $0x1e0] ss:$16 sps:$4 sm:$0xff]  }
  0x95   :  { %1790 = vmatpush1.bf16.msra.mxu0 %v6727_v22  ;;  %1994 = vmatpush1.bf16.msra.mxu1 %v6728_v23  ;;  %v6788_v2 = vld [vmem:[#allocation5 + $0x1e8] ss:$16 sps:$4 sm:$0xff]   ;;  %v6791_v3 = vld [vmem:[#allocation5 + $0x204] ss:$16 sps:$4 sm:$0xff]   ;;  %v6794_v4 = vld [vmem:[#allocation5 + $0x20c] ss:$16 sps:$4 sm:$0xff]  }
  0x96   :  { %1791 = vmatprep.subr.bf16.mxu0 %v6729_v24  ;;  %1995 = vmatprep.subr.bf16.mxu1 %v6731_v25  ;;  %v6789_v6 = vld [vmem:[#allocation5 + $0x200] ss:$16 sps:$4 sm:$0xff]   ;;  %v6792_v7 = vld [vmem:[#allocation5 + $0x208] ss:$16 sps:$4 sm:$0xff]   ;;  %v6797_v8 = vld [vmem:[#allocation5 + $0x224] ss:$16 sps:$4 sm:$0xff]  }
  0x97   :  { %v6800_v9 = vld [vmem:[#allocation5 + $0x22c] ss:$16 sps:$4 sm:$0xff]   ;;  %v6795_v10 = vld [vmem:[#allocation5 + $0x220] ss:$16 sps:$4 sm:$0xff]   ;;  %v6798_v11 = vld [vmem:[#allocation5 + $0x228] ss:$16 sps:$4 sm:$0xff]  }
  0x98   :  { %v6803_v12 = vld [vmem:[#allocation5 + $0x244] ss:$16 sps:$4 sm:$0xff]   ;;  %v6806_v13 = vld [vmem:[#allocation5 + $0x24c] ss:$16 sps:$4 sm:$0xff]   ;;  %v6801_v14 = vld [vmem:[#allocation5 + $0x240] ss:$16 sps:$4 sm:$0xff]  }
  0x99   :  { %1792 = vmatpush1.bf16.msra.mxu0 %v6733_v26  ;;  %1996 = vmatpush1.bf16.msra.mxu1 %v6734_v27  ;;  %v6804_v15 = vld [vmem:[#allocation5 + $0x248] ss:$16 sps:$4 sm:$0xff]   ;;  %v6809_v16 = vld [vmem:[#allocation5 + $0x264] ss:$16 sps:$4 sm:$0xff]   ;;  %v6812_v17 = vld [vmem:[#allocation5 + $0x26c] ss:$16 sps:$4 sm:$0xff]  }
  0x9a   :  { %1793 = vmatprep.subr.bf16.mxu0 %v6735_v28  ;;  %1997 = vmatprep.subr.bf16.mxu1 %v6737_v29  ;;  %v6807_v18 = vld [vmem:[#allocation5 + $0x260] ss:$16 sps:$4 sm:$0xff]   ;;  %v6810_v19 = vld [vmem:[#allocation5 + $0x268] ss:$16 sps:$4 sm:$0xff]   ;;  %v6815_v20 = vld [vmem:[#allocation5 + $0x284] ss:$16 sps:$4 sm:$0xff]  }
  0x9b   :  { %v6818_v21 = vld [vmem:[#allocation5 + $0x28c] ss:$16 sps:$4 sm:$0xff]   ;;  %v6813_v22 = vld [vmem:[#allocation5 + $0x280] ss:$16 sps:$4 sm:$0xff]   ;;  %v6816_v23 = vld [vmem:[#allocation5 + $0x288] ss:$16 sps:$4 sm:$0xff]  }
  0x9c   :  { %v6821_v24 = vld [vmem:[#allocation5 + $0x2a4] ss:$16 sps:$4 sm:$0xff]   ;;  %v6824_v26 = vld [vmem:[#allocation5 + $0x2ac] ss:$16 sps:$4 sm:$0xff]   ;;  %v6819_v29 = vld [vmem:[#allocation5 + $0x2a0] ss:$16 sps:$4 sm:$0xff]  }
  0x9d   :  { %1794 = vmatpush1.bf16.msra.mxu0 %v6739_v30  ;;  %1998 = vmatpush1.bf16.msra.mxu1 %v6740_v31  ;;  %v149_v25 = vld [vmem:[#allocation2 + $0x40] sm:$0xff]  ;;  %v6822_v30 = vld [vmem:[#allocation5 + $0x2a8] ss:$16 sps:$4 sm:$0xff]   ;;  %v6848_v47 = vld [vmem:[#allocation5 + $0x32c] ss:$16 sps:$4 sm:$0xff]  }
  0x9e   :  { %1795 = vmatprep.subr.bf16.mxu0 %v6741_v32  ;;  %1999 = vmatprep.subr.bf16.mxu1 %v6743_v33  ;;  %v5783_v27 = vcombine.high %v149_v25, %v149_v25  ;;  %v5782_v28 = vcombine.low %v149_v25, %v149_v25  ;;  %v6827_v31 = vld [vmem:[#allocation5 + $0x2c4] ss:$16 sps:$4 sm:$0xff]   ;;  %v6830_v32 = vld [vmem:[#allocation5 + $0x2cc] ss:$16 sps:$4 sm:$0xff]  }
  0x9f   :  { %v7792_v33 = vld [vmem:[#allocation2 + $0x8] sm:$0xff]  ;;  %v6845_v46 = vld [vmem:[#allocation5 + $0x324] ss:$16 sps:$4 sm:$0xff]  }
  0xa0   :  { %v6851_v50 = vld [vmem:[#allocation5 + $0x344] ss:$16 sps:$4 sm:$0xff]  }
  0xa1   :  { %1796 = vmatpush1.bf16.msra.mxu0 %v6745_v34  ;;  %2000 = vmatpush1.bf16.msra.mxu1 %v6746_v35  ;;  %v7794_v34 = vld [vmem:[#allocation2 + $0x28] sm:$0xff]  ;;  %v6825_v35 = vld [vmem:[#allocation5 + $0x2c0] ss:$16 sps:$4 sm:$0xff]  }
  0xa2   :  { %1797 = vmatprep.subr.bf16.mxu0 %v6747_v36  ;;  %2001 = vmatprep.subr.bf16.mxu1 %v6749_v37  ;;  %v5777_v36 = vcombine.high %v7792_v33, %v7794_v34  ;;  %v6828_v37 = vld [vmem:[#allocation5 + $0x2c8] ss:$16 sps:$4 sm:$0xff]  }
  0xa5   :  { %1798 = vmatpush1.bf16.msra.mxu0 %v6751_v38  ;;  %2002 = vmatpush1.bf16.msra.mxu1 %v6752_v39  ;;  %v6833_v38 = vld [vmem:[#allocation5 + $0x2e4] ss:$16 sps:$4 sm:$0xff]   ;;  %v6836_v39 = vld [vmem:[#allocation5 + $0x2ec] ss:$16 sps:$4 sm:$0xff]  }
  0xa6   :  { %1799 = vmatprep.subr.bf16.mxu0 %v6753_v40  ;;  %2003 = vmatprep.subr.bf16.mxu1 %v6755_v41  ;;  %v6831_v40 = vld [vmem:[#allocation5 + $0x2e0] ss:$16 sps:$4 sm:$0xff]   ;;  %v6834_v41 = vld [vmem:[#allocation5 + $0x2e8] ss:$16 sps:$4 sm:$0xff]  }
  0xa9   :  { %1800 = vmatpush1.bf16.msra.mxu0 %v6757_v42  ;;  %2004 = vmatpush1.bf16.msra.mxu1 %v6758_v43  ;;  %v6839_v42 = vld [vmem:[#allocation5 + $0x304] ss:$16 sps:$4 sm:$0xff]   ;;  %v6842_v43 = vld [vmem:[#allocation5 + $0x30c] ss:$16 sps:$4 sm:$0xff]  }
  0xaa   :  { %1801 = vmatprep.subr.bf16.mxu0 %v6759_v44  ;;  %2005 = vmatprep.subr.bf16.mxu1 %v6761_v45  ;;  %v6837_v44 = vld [vmem:[#allocation5 + $0x300] ss:$16 sps:$4 sm:$0xff]   ;;  %v6840_v45 = vld [vmem:[#allocation5 + $0x308] ss:$16 sps:$4 sm:$0xff]  }
  0xad   :  { %1802 = vmatpush1.bf16.msra.mxu0 %v6763_v48  ;;  %2006 = vmatpush1.bf16.msra.mxu1 %v6764_v49  ;;  %v6843_v48 = vld [vmem:[#allocation5 + $0x320] ss:$16 sps:$4 sm:$0xff]   ;;  %v6846_v49 = vld [vmem:[#allocation5 + $0x328] ss:$16 sps:$4 sm:$0xff]  }
  0xae   :  { %1803 = vmatprep.subr.bf16.mxu0 %v6765_v51  ;;  %2007 = vmatprep.subr.bf16.mxu1 %v6767_v52  ;;  %v6854_v51 = vld [vmem:[#allocation5 + $0x34c] ss:$16 sps:$4 sm:$0xff]   ;;  %v6849_v52 = vld [vmem:[#allocation5 + $0x340] ss:$16 sps:$4 sm:$0xff]  }
  0xb1   :  { %1804 = vmatpush1.bf16.msra.mxu0 %v6769_v53  ;;  %2008 = vmatpush1.bf16.msra.mxu1 %v6770_v54  ;;  %v6852_v53 = vld [vmem:[#allocation5 + $0x348] ss:$16 sps:$4 sm:$0xff]   ;;  %v6857_v54 = vld [vmem:[#allocation5 + $0x364] ss:$16 sps:$4 sm:$0xff]  }
  0xb2   :  { %1805 = vmatprep.subr.bf16.mxu0 %v6771_v55  ;;  %2009 = vmatprep.subr.bf16.mxu1 %v6773_v56  ;;  %v6860_v55 = vld [vmem:[#allocation5 + $0x36c] ss:$16 sps:$4 sm:$0xff]   ;;  %v6855_v56 = vld [vmem:[#allocation5 + $0x360] ss:$16 sps:$4 sm:$0xff]  }
  0xb5   :  { %1806 = vmatpush1.bf16.msra.mxu0 %v6775_v57  ;;  %2010 = vmatpush1.bf16.msra.mxu1 %v6776_v58  ;;  %v6858_v57 = vld [vmem:[#allocation5 + $0x368] ss:$16 sps:$4 sm:$0xff]   ;;  %v6863_v58 = vld [vmem:[#allocation5 + $0x384] ss:$16 sps:$4 sm:$0xff]  }
  0xb6   :  { %1807 = vmatprep.subr.bf16.mxu0 %v6777_v59  ;;  %2011 = vmatprep.subr.bf16.mxu1 %v6779_v60  ;;  %v6866_v59 = vld [vmem:[#allocation5 + $0x38c] ss:$16 sps:$4 sm:$0xff]   ;;  %v6861_v60 = vld [vmem:[#allocation5 + $0x380] ss:$16 sps:$4 sm:$0xff]  }
  0xb9   :  { %1808 = vmatpush1.bf16.msra.mxu0 %v6781_v61  ;;  %2012 = vmatpush1.bf16.msra.mxu1 %v6782_v62  ;;  %v6864_v61 = vld [vmem:[#allocation5 + $0x388] ss:$16 sps:$4 sm:$0xff]   ;;  %v6869_v62 = vld [vmem:[#allocation5 + $0x3a4] ss:$16 sps:$4 sm:$0xff]  }
  0xba   :  { %1809 = vmatprep.subr.bf16.mxu0 %v6783_v63  ;;  %2013 = vmatprep.subr.bf16.mxu1 %v6785_v0  ;;  %v6872_v63 = vld [vmem:[#allocation5 + $0x3ac] ss:$16 sps:$4 sm:$0xff]   ;;  %v6867_v0 = vld [vmem:[#allocation5 + $0x3a0] ss:$16 sps:$4 sm:$0xff]  }
  0xbd   :  { %1810 = vmatpush1.bf16.msra.mxu0 %v6787_v1  ;;  %2014 = vmatpush1.bf16.msra.mxu1 %v6788_v2  ;;  %v6870_v1 = vld [vmem:[#allocation5 + $0x3a8] ss:$16 sps:$4 sm:$0xff]   ;;  %v6876_v2 = vld [vmem:[#allocation5 + $0x3c4] ss:$16 sps:$4 sm:$0xff]  }
  0xbe   :  { %1830 = vmatprep.subr.bf16.mxu0 %v6791_v3  ;;  %2034 = vmatprep.subr.bf16.mxu1 %v6794_v4  ;;  %v6879_v3 = vld [vmem:[#allocation5 + $0x3cc] ss:$16 sps:$4 sm:$0xff]   ;;  %v6874_v4 = vld [vmem:[#allocation5 + $0x3c0] ss:$16 sps:$4 sm:$0xff]  }
  0xc0   :  { %1812 = vmatmul.mubr.bf16.vlgmr.msra.gmra.mrb[0].mxu0 %v5774_v5  ;;  %2016 = vmatmul.mubr.bf16.vlgmr.msra.gmra.mrb[0].mxu1 %v5774_v5  ;;  %v6877_v5 = vld [vmem:[#allocation5 + $0x3c8] ss:$16 sps:$4 sm:$0xff]  }
  0xc1   :  { %1831 = vmatpush1.bf16.msra.mxu0 %v6789_v6  ;;  %2035 = vmatpush1.bf16.msra.mxu1 %v6792_v7  ;;  %v6883_v6 = vld [vmem:[#allocation5 + $0x3e4] ss:$16 sps:$4 sm:$0xff]   ;;  %v6886_v7 = vld [vmem:[#allocation5 + $0x3ec] ss:$16 sps:$4 sm:$0xff]  }
  0xc2   :  { %1832 = vmatprep.subr.bf16.mxu0 %v6797_v8  ;;  %2036 = vmatprep.subr.bf16.mxu1 %v6800_v9  ;;  %v6881_v8 = vld [vmem:[#allocation5 + $0x3e0] ss:$16 sps:$4 sm:$0xff]   ;;  %v6884_v9 = vld [vmem:[#allocation5 + $0x3e8] ss:$16 sps:$4 sm:$0xff]  }
  0xc3   :  { %1821 = vmatprep.mubr.bf16.mxu0 %v5783_v27  ;;  %2025 = vmatprep.mubr.bf16.mxu1 %v5783_v27  ;;  %v7802_v27 = vld [vmem:[#allocation2 + $0x30] sm:$0xff] }
  0xc5   :  { %1833 = vmatpush1.bf16.msra.mxu0 %v6795_v10  ;;  %2037 = vmatpush1.bf16.msra.mxu1 %v6798_v11  ;;  %v6889_v10 = vld [vmem:[#allocation5 + $0x404] ss:$16 sps:$4 sm:$0xff]   ;;  %v6892_v11 = vld [vmem:[#allocation5 + $0x40c] ss:$16 sps:$4 sm:$0xff]  }
  0xc6   :  { %1834 = vmatprep.subr.bf16.mxu0 %v6803_v12  ;;  %2038 = vmatprep.subr.bf16.mxu1 %v6806_v13  ;;  %v5776_v12 = vcombine.low %v7792_v33, %v7794_v34  ;;  %v150_v13 = vld [vmem:[#allocation2 + $0x48] sm:$0xff]  ;;  %v6913_v33 = vld [vmem:[#allocation5 + $0x484] ss:$16 sps:$4 sm:$0xff]  }
  0xc7   :  { %v5784_v25 = vcombine.low %v150_v13, %v150_v13  ;;  %v6916_v34 = vld [vmem:[#allocation5 + $0x48c] ss:$16 sps:$4 sm:$0xff]  }
  0xc8   :  { %1822 = vmatmul.mubr.bf16.gmra.mrb[4].mxu0 %v5782_v28  ;;  %2026 = vmatmul.mubr.bf16.gmra.mrb[4].mxu1 %v5782_v28  ;;  %v6907_v28 = vld [vmem:[#allocation5 + $0x464] ss:$16 sps:$4 sm:$0xff]  }
  0xc9   :  { %1835 = vmatpush1.bf16.msra.mxu0 %v6801_v14  ;;  %2039 = vmatpush1.bf16.msra.mxu1 %v6804_v15  ;;  %v6887_v14 = vld [vmem:[#allocation5 + $0x400] ss:$16 sps:$4 sm:$0xff]   ;;  %v6890_v15 = vld [vmem:[#allocation5 + $0x408] ss:$16 sps:$4 sm:$0xff]  }
  0xca   :  { %1836 = vmatprep.subr.bf16.mxu0 %v6809_v16  ;;  %2040 = vmatprep.subr.bf16.mxu1 %v6812_v17  ;;  %v6895_v16 = vld [vmem:[#allocation5 + $0x424] ss:$16 sps:$4 sm:$0xff]   ;;  %v6898_v17 = vld [vmem:[#allocation5 + $0x42c] ss:$16 sps:$4 sm:$0xff]  }
  0xcb   :  { %1862 = vmatprep.mubr.bf16.mxu0 %v5777_v36  ;;  %2066 = vmatprep.mubr.bf16.mxu1 %v5777_v36  ;;  %v6914_v36 = vld [vmem:[#allocation5 + $0x488] ss:$16 sps:$4 sm:$0xff]  }
  0xcd   :  { %1837 = vmatpush1.bf16.msra.mxu0 %v6807_v18  ;;  %2041 = vmatpush1.bf16.msra.mxu1 %v6810_v19  ;;  %v5785_v18 = vcombine.high %v150_v13, %v150_v13  ;;  %v6893_v19 = vld [vmem:[#allocation5 + $0x420] ss:$16 sps:$4 sm:$0xff]   ;;  %v6981_v13 = vld [vmem:[#allocation5 + $0x5e4] ss:$16 sps:$4 sm:$0xff]  }
  0xce   :  { %1838 = vmatprep.subr.bf16.mxu0 %v6815_v20  ;;  %2042 = vmatprep.subr.bf16.mxu1 %v6818_v21  ;;  %v6896_v20 = vld [vmem:[#allocation5 + $0x428] ss:$16 sps:$4 sm:$0xff]   ;;  %v6901_v21 = vld [vmem:[#allocation5 + $0x444] ss:$16 sps:$4 sm:$0xff]  }
  0xd1   :  { %1839 = vmatpush1.bf16.msra.mxu0 %v6813_v22  ;;  %2043 = vmatpush1.bf16.msra.mxu1 %v6816_v23  ;;  %v6904_v22 = vld [vmem:[#allocation5 + $0x44c] ss:$16 sps:$4 sm:$0xff]   ;;  %v6899_v23 = vld [vmem:[#allocation5 + $0x440] ss:$16 sps:$4 sm:$0xff]  }
  0xd2   :  { %1840 = vmatprep.subr.bf16.mxu0 %v6821_v24  ;;  %2044 = vmatprep.subr.bf16.mxu1 %v6824_v26  ;;  %v6902_v24 = vld [vmem:[#allocation5 + $0x448] ss:$16 sps:$4 sm:$0xff]   ;;  %v7800_v26 = vld [vmem:[#allocation2 + $0x10] sm:$0xff] }
  0xd5   :  { %1841 = vmatpush1.bf16.msra.mxu0 %v6819_v29  ;;  %2045 = vmatpush1.bf16.msra.mxu1 %v6822_v30  ;;  %v6910_v29 = vld [vmem:[#allocation5 + $0x46c] ss:$16 sps:$4 sm:$0xff]   ;;  %v5779_v30 = vcombine.high %v7800_v26, %v7802_v27 }
  0xd6   :  { %1842 = vmatprep.subr.bf16.mxu0 %v6827_v31  ;;  %2046 = vmatprep.subr.bf16.mxu1 %v6830_v32  ;;  %v6905_v31 = vld [vmem:[#allocation5 + $0x460] ss:$16 sps:$4 sm:$0xff]   ;;  %v6908_v32 = vld [vmem:[#allocation5 + $0x468] ss:$16 sps:$4 sm:$0xff]  }
  0xd9   :  { %1843 = vmatpush1.bf16.msra.mxu0 %v6825_v35  ;;  %2047 = vmatpush1.bf16.msra.mxu1 %v6828_v37  ;;  %v6911_v35 = vld [vmem:[#allocation5 + $0x480] ss:$16 sps:$4 sm:$0xff]   ;;  %v6919_v37 = vld [vmem:[#allocation5 + $0x4a4] ss:$16 sps:$4 sm:$0xff]  }
  0xda   :  { %1844 = vmatprep.subr.bf16.mxu0 %v6833_v38  ;;  %2048 = vmatprep.subr.bf16.mxu1 %v6836_v39  ;;  %v6922_v38 = vld [vmem:[#allocation5 + $0x4ac] ss:$16 sps:$4 sm:$0xff]   ;;  %v6917_v39 = vld [vmem:[#allocation5 + $0x4a0] ss:$16 sps:$4 sm:$0xff]  }
  0xdd   :  { %1845 = vmatpush1.bf16.msra.mxu0 %v6831_v40  ;;  %2049 = vmatpush1.bf16.msra.mxu1 %v6834_v41  ;;  %v6920_v40 = vld [vmem:[#allocation5 + $0x4a8] ss:$16 sps:$4 sm:$0xff]   ;;  %v6925_v41 = vld [vmem:[#allocation5 + $0x4c4] ss:$16 sps:$4 sm:$0xff]  }
  0xde   :  { %1846 = vmatprep.subr.bf16.mxu0 %v6839_v42  ;;  %2050 = vmatprep.subr.bf16.mxu1 %v6842_v43  ;;  %v6928_v42 = vld [vmem:[#allocation5 + $0x4cc] ss:$16 sps:$4 sm:$0xff]   ;;  %v6923_v43 = vld [vmem:[#allocation5 + $0x4c0] ss:$16 sps:$4 sm:$0xff]  }
  0xe1   :  { %1847 = vmatpush1.bf16.msra.mxu0 %v6837_v44  ;;  %2051 = vmatpush1.bf16.msra.mxu1 %v6840_v45  ;;  %v6926_v44 = vld [vmem:[#allocation5 + $0x4c8] ss:$16 sps:$4 sm:$0xff]   ;;  %v6931_v45 = vld [vmem:[#allocation5 + $0x4e4] ss:$16 sps:$4 sm:$0xff]  }
  0xe2   :  { %1848 = vmatprep.subr.bf16.mxu0 %v6845_v46  ;;  %2052 = vmatprep.subr.bf16.mxu1 %v6848_v47  ;;  %v6934_v46 = vld [vmem:[#allocation5 + $0x4ec] ss:$16 sps:$4 sm:$0xff]   ;;  %v6929_v47 = vld [vmem:[#allocation5 + $0x4e0] ss:$16 sps:$4 sm:$0xff]  }
  0xe5   :  { %1849 = vmatpush1.bf16.msra.mxu0 %v6843_v48  ;;  %2053 = vmatpush1.bf16.msra.mxu1 %v6846_v49  ;;  %v6932_v48 = vld [vmem:[#allocation5 + $0x4e8] ss:$16 sps:$4 sm:$0xff]   ;;  %v6937_v49 = vld [vmem:[#allocation5 + $0x504] ss:$16 sps:$4 sm:$0xff]  }
  0xe6   :  { %1850 = vmatprep.subr.bf16.mxu0 %v6851_v50  ;;  %2054 = vmatprep.subr.bf16.mxu1 %v6854_v51  ;;  %v6940_v50 = vld [vmem:[#allocation5 + $0x50c] ss:$16 sps:$4 sm:$0xff]   ;;  %v6935_v51 = vld [vmem:[#allocation5 + $0x500] ss:$16 sps:$4 sm:$0xff]  }
  0xe9   :  { %1851 = vmatpush1.bf16.msra.mxu0 %v6849_v52  ;;  %2055 = vmatpush1.bf16.msra.mxu1 %v6852_v53  ;;  %v6938_v52 = vld [vmem:[#allocation5 + $0x508] ss:$16 sps:$4 sm:$0xff]   ;;  %v6943_v53 = vld [vmem:[#allocation5 + $0x524] ss:$16 sps:$4 sm:$0xff]  }
  0xea   :  { %1852 = vmatprep.subr.bf16.mxu0 %v6857_v54  ;;  %2056 = vmatprep.subr.bf16.mxu1 %v6860_v55  ;;  %v6946_v54 = vld [vmem:[#allocation5 + $0x52c] ss:$16 sps:$4 sm:$0xff]   ;;  %v6941_v55 = vld [vmem:[#allocation5 + $0x520] ss:$16 sps:$4 sm:$0xff]  }
  0xed   :  { %1853 = vmatpush1.bf16.msra.mxu0 %v6855_v56  ;;  %2057 = vmatpush1.bf16.msra.mxu1 %v6858_v57  ;;  %v6944_v56 = vld [vmem:[#allocation5 + $0x528] ss:$16 sps:$4 sm:$0xff]   ;;  %v6949_v57 = vld [vmem:[#allocation5 + $0x544] ss:$16 sps:$4 sm:$0xff]  }
  0xee   :  { %1854 = vmatprep.subr.bf16.mxu0 %v6863_v58  ;;  %2058 = vmatprep.subr.bf16.mxu1 %v6866_v59  ;;  %v6952_v58 = vld [vmem:[#allocation5 + $0x54c] ss:$16 sps:$4 sm:$0xff]   ;;  %v6947_v59 = vld [vmem:[#allocation5 + $0x540] ss:$16 sps:$4 sm:$0xff]  }
  0xf1   :  { %1855 = vmatpush1.bf16.msra.mxu0 %v6861_v60  ;;  %2059 = vmatpush1.bf16.msra.mxu1 %v6864_v61  ;;  %v6950_v60 = vld [vmem:[#allocation5 + $0x548] ss:$16 sps:$4 sm:$0xff]   ;;  %v6955_v61 = vld [vmem:[#allocation5 + $0x564] ss:$16 sps:$4 sm:$0xff]  }
  0xf2   :  { %1856 = vmatprep.subr.bf16.mxu0 %v6869_v62  ;;  %2060 = vmatprep.subr.bf16.mxu1 %v6872_v63  ;;  %v6958_v62 = vld [vmem:[#allocation5 + $0x56c] ss:$16 sps:$4 sm:$0xff]   ;;  %v6953_v63 = vld [vmem:[#allocation5 + $0x560] ss:$16 sps:$4 sm:$0xff]  }
  0xf5   :  { %1857 = vmatpush1.bf16.msra.mxu0 %v6867_v0  ;;  %2061 = vmatpush1.bf16.msra.mxu1 %v6870_v1  ;;  %v6956_v0 = vld [vmem:[#allocation5 + $0x568] ss:$16 sps:$4 sm:$0xff]   ;;  %v6961_v1 = vld [vmem:[#allocation5 + $0x584] ss:$16 sps:$4 sm:$0xff]  }
  0xf6   :  { %1858 = vmatprep.subr.bf16.mxu0 %v6876_v2  ;;  %2062 = vmatprep.subr.bf16.mxu1 %v6879_v3  ;;  %v6964_v2 = vld [vmem:[#allocation5 + $0x58c] ss:$16 sps:$4 sm:$0xff]   ;;  %v6959_v3 = vld [vmem:[#allocation5 + $0x580] ss:$16 sps:$4 sm:$0xff]  }
  0xf9   :  { %1859 = vmatpush1.bf16.msra.mxu0 %v6874_v4  ;;  %2063 = vmatpush1.bf16.msra.mxu1 %v6877_v5  ;;  %v6962_v4 = vld [vmem:[#allocation5 + $0x588] ss:$16 sps:$4 sm:$0xff]   ;;  %v6967_v5 = vld [vmem:[#allocation5 + $0x5a4] ss:$16 sps:$4 sm:$0xff]  }
  0xfa   :  { %1860 = vmatprep.subr.bf16.mxu0 %v6883_v6  ;;  %2064 = vmatprep.subr.bf16.mxu1 %v6886_v7  ;;  %v6970_v6 = vld [vmem:[#allocation5 + $0x5ac] ss:$16 sps:$4 sm:$0xff]   ;;  %v6965_v7 = vld [vmem:[#allocation5 + $0x5a0] ss:$16 sps:$4 sm:$0xff]  }
  0xfd   :  { %1861 = vmatpush1.bf16.msra.mxu0 %v6881_v8  ;;  %2065 = vmatpush1.bf16.msra.mxu1 %v6884_v9  ;;  %v6968_v8 = vld [vmem:[#allocation5 + $0x5a8] ss:$16 sps:$4 sm:$0xff]   ;;  %v6974_v9 = vld [vmem:[#allocation5 + $0x5c4] ss:$16 sps:$4 sm:$0xff]  }
  0xfe   :  { %1881 = vmatprep.subr.bf16.mxu0 %v6889_v10  ;;  %2085 = vmatprep.subr.bf16.mxu1 %v6892_v11  ;;  %v6977_v10 = vld [vmem:[#allocation5 + $0x5cc] ss:$16 sps:$4 sm:$0xff]   ;;  %v6972_v11 = vld [vmem:[#allocation5 + $0x5c0] ss:$16 sps:$4 sm:$0xff]  }
 0x100   :  { %1863 = vmatmul.mubr.bf16.vlgmr.msra.gmra.mrb[0].mxu0 %v5776_v12  ;;  %2067 = vmatmul.mubr.bf16.vlgmr.msra.gmra.mrb[0].mxu1 %v5776_v12  ;;  %v6975_v12 = vld [vmem:[#allocation5 + $0x5c8] ss:$16 sps:$4 sm:$0xff]  }
 0x101   :  { %1882 = vmatpush1.bf16.msra.mxu0 %v6887_v14  ;;  %2086 = vmatpush1.bf16.msra.mxu1 %v6890_v15  ;;  %v6984_v14 = vld [vmem:[#allocation5 + $0x5ec] ss:$16 sps:$4 sm:$0xff]   ;;  %v6979_v15 = vld [vmem:[#allocation5 + $0x5e0] ss:$16 sps:$4 sm:$0xff]  }
 0x102   :  { %1883 = vmatprep.subr.bf16.mxu0 %v6895_v16  ;;  %2087 = vmatprep.subr.bf16.mxu1 %v6898_v17  ;;  %v6982_v16 = vld [vmem:[#allocation5 + $0x5e8] ss:$16 sps:$4 sm:$0xff]   ;;  %v6987_v17 = vld [vmem:[#allocation5 + $0x604] ss:$16 sps:$4 sm:$0xff]  }
 0x103   :  { %1872 = vmatprep.mubr.bf16.mxu0 %v5785_v18  ;;  %2076 = vmatprep.mubr.bf16.mxu1 %v5785_v18  ;;  %v6990_v18 = vld [vmem:[#allocation5 + $0x60c] ss:$16 sps:$4 sm:$0xff]  }
 0x105   :  { %1884 = vmatpush1.bf16.msra.mxu0 %v6893_v19  ;;  %2088 = vmatpush1.bf16.msra.mxu1 %v6896_v20  ;;  %v5778_v19 = vcombine.low %v7800_v26, %v7802_v27  ;;  %v6985_v20 = vld [vmem:[#allocation5 + $0x600] ss:$16 sps:$4 sm:$0xff]   ;;  %v7808_v26 = vld [vmem:[#allocation2 + $0x18] sm:$0xff] }
 0x106   :  { %1885 = vmatprep.subr.bf16.mxu0 %v6901_v21  ;;  %2089 = vmatprep.subr.bf16.mxu1 %v6904_v22  ;;  %v151_v21 = vld [vmem:[#allocation2 + $0x50] sm:$0xff]  ;;  %v6988_v22 = vld [vmem:[#allocation5 + $0x608] ss:$16 sps:$4 sm:$0xff]  }
 0x107   :  { %v7810_v27 = vld [vmem:[#allocation2 + $0x38] sm:$0xff] }
 0x108   :  { %1873 = vmatmul.mubr.bf16.gmra.mrb[4].mxu0 %v5784_v25  ;;  %2077 = vmatmul.mubr.bf16.gmra.mrb[4].mxu1 %v5784_v25  ;;  %v6991_v25 = vld [vmem:[#allocation5 + $0x620] ss:$16 sps:$4 sm:$0xff]  }
 0x109   :  { %1886 = vmatpush1.bf16.msra.mxu0 %v6899_v23  ;;  %2090 = vmatpush1.bf16.msra.mxu1 %v6902_v24  ;;  %v6993_v23 = vld [vmem:[#allocation5 + $0x624] ss:$16 sps:$4 sm:$0xff]   ;;  %v6996_v24 = vld [vmem:[#allocation5 + $0x62c] ss:$16 sps:$4 sm:$0xff]  }
 0x10a   :  { %1887 = vmatprep.subr.bf16.mxu0 %v6907_v28  ;;  %2091 = vmatprep.subr.bf16.mxu1 %v6910_v29  ;;  %v6994_v28 = vld [vmem:[#allocation5 + $0x628] ss:$16 sps:$4 sm:$0xff]   ;;  %v5787_v29 = vcombine.high %v151_v21, %v151_v21 }
 0x10b   :  { %1913 = vmatprep.mubr.bf16.mxu0 %v5779_v30  ;;  %2117 = vmatprep.mubr.bf16.mxu1 %v5779_v30  ;;  %v6999_v30 = vld [vmem:[#allocation5 + $0x644] ss:$16 sps:$4 sm:$0xff]  }
 0x10d   :  { %1888 = vmatpush1.bf16.msra.mxu0 %v6905_v31  ;;  %2092 = vmatpush1.bf16.msra.mxu1 %v6908_v32  ;;  %v7002_v31 = vld [vmem:[#allocation5 + $0x64c] ss:$16 sps:$4 sm:$0xff]   ;;  %v6997_v32 = vld [vmem:[#allocation5 + $0x640] ss:$16 sps:$4 sm:$0xff]  }
 0x10e   :  { %1889 = vmatprep.subr.bf16.mxu0 %v6913_v33  ;;  %2093 = vmatprep.subr.bf16.mxu1 %v6916_v34  ;;  %v7000_v33 = vld [vmem:[#allocation5 + $0x648] ss:$16 sps:$4 sm:$0xff]   ;;  %v7005_v34 = vld [vmem:[#allocation5 + $0x664] ss:$16 sps:$4 sm:$0xff]  }
 0x111   :  { %1890 = vmatpush1.bf16.msra.mxu0 %v6911_v35  ;;  %2094 = vmatpush1.bf16.msra.mxu1 %v6914_v36  ;;  %v7008_v35 = vld [vmem:[#allocation5 + $0x66c] ss:$16 sps:$4 sm:$0xff]   ;;  %v5786_v36 = vcombine.low %v151_v21, %v151_v21 }
 0x112   :  { %1891 = vmatprep.subr.bf16.mxu0 %v6919_v37  ;;  %2095 = vmatprep.subr.bf16.mxu1 %v6922_v38  ;;  %v7003_v37 = vld [vmem:[#allocation5 + $0x660] ss:$16 sps:$4 sm:$0xff]   ;;  %v7006_v38 = vld [vmem:[#allocation5 + $0x668] ss:$16 sps:$4 sm:$0xff]   ;;  %v7082_v21 = vld [vmem:[#allocation5 + $0x7ec] ss:$16 sps:$4 sm:$0xff]  }
 0x115   :  { %1892 = vmatpush1.bf16.msra.mxu0 %v6917_v39  ;;  %2096 = vmatpush1.bf16.msra.mxu1 %v6920_v40  ;;  %v5781_v39 = vcombine.high %v7808_v26, %v7810_v27  ;;  %v7011_v40 = vld [vmem:[#allocation5 + $0x684] ss:$16 sps:$4 sm:$0xff]  }
 0x116   :  { %1893 = vmatprep.subr.bf16.mxu0 %v6925_v41  ;;  %2097 = vmatprep.subr.bf16.mxu1 %v6928_v42  ;;  %v7014_v41 = vld [vmem:[#allocation5 + $0x68c] ss:$16 sps:$4 sm:$0xff]   ;;  %v7009_v42 = vld [vmem:[#allocation5 + $0x680] ss:$16 sps:$4 sm:$0xff]  }
 0x119   :  { %1894 = vmatpush1.bf16.msra.mxu0 %v6923_v43  ;;  %2098 = vmatpush1.bf16.msra.mxu1 %v6926_v44  ;;  %v7012_v43 = vld [vmem:[#allocation5 + $0x688] ss:$16 sps:$4 sm:$0xff]   ;;  %v7017_v44 = vld [vmem:[#allocation5 + $0x6a4] ss:$16 sps:$4 sm:$0xff]  }
 0x11a   :  { %1895 = vmatprep.subr.bf16.mxu0 %v6931_v45  ;;  %2099 = vmatprep.subr.bf16.mxu1 %v6934_v46  ;;  %v7020_v45 = vld [vmem:[#allocation5 + $0x6ac] ss:$16 sps:$4 sm:$0xff]   ;;  %v7015_v46 = vld [vmem:[#allocation5 + $0x6a0] ss:$16 sps:$4 sm:$0xff]  }
 0x11d   :  { %1896 = vmatpush1.bf16.msra.mxu0 %v6929_v47  ;;  %2100 = vmatpush1.bf16.msra.mxu1 %v6932_v48  ;;  %v7018_v47 = vld [vmem:[#allocation5 + $0x6a8] ss:$16 sps:$4 sm:$0xff]   ;;  %v7023_v48 = vld [vmem:[#allocation5 + $0x6c4] ss:$16 sps:$4 sm:$0xff]  }
 0x11e   :  { %1897 = vmatprep.subr.bf16.mxu0 %v6937_v49  ;;  %2101 = vmatprep.subr.bf16.mxu1 %v6940_v50  ;;  %v7026_v49 = vld [vmem:[#allocation5 + $0x6cc] ss:$16 sps:$4 sm:$0xff]   ;;  %v7021_v50 = vld [vmem:[#allocation5 + $0x6c0] ss:$16 sps:$4 sm:$0xff]  }
 0x121   :  { %1898 = vmatpush1.bf16.msra.mxu0 %v6935_v51  ;;  %2102 = vmatpush1.bf16.msra.mxu1 %v6938_v52  ;;  %v7024_v51 = vld [vmem:[#allocation5 + $0x6c8] ss:$16 sps:$4 sm:$0xff]   ;;  %v7029_v52 = vld [vmem:[#allocation5 + $0x6e4] ss:$16 sps:$4 sm:$0xff]  }
 0x122   :  { %1899 = vmatprep.subr.bf16.mxu0 %v6943_v53  ;;  %2103 = vmatprep.subr.bf16.mxu1 %v6946_v54  ;;  %v7032_v53 = vld [vmem:[#allocation5 + $0x6ec] ss:$16 sps:$4 sm:$0xff]   ;;  %v7027_v54 = vld [vmem:[#allocation5 + $0x6e0] ss:$16 sps:$4 sm:$0xff]  }
 0x125   :  { %1900 = vmatpush1.bf16.msra.mxu0 %v6941_v55  ;;  %2104 = vmatpush1.bf16.msra.mxu1 %v6944_v56  ;;  %v7030_v55 = vld [vmem:[#allocation5 + $0x6e8] ss:$16 sps:$4 sm:$0xff]   ;;  %v7035_v56 = vld [vmem:[#allocation5 + $0x704] ss:$16 sps:$4 sm:$0xff]  }
 0x126   :  { %1901 = vmatprep.subr.bf16.mxu0 %v6949_v57  ;;  %2105 = vmatprep.subr.bf16.mxu1 %v6952_v58  ;;  %v7038_v57 = vld [vmem:[#allocation5 + $0x70c] ss:$16 sps:$4 sm:$0xff]   ;;  %v7033_v58 = vld [vmem:[#allocation5 + $0x700] ss:$16 sps:$4 sm:$0xff]  }
 0x129   :  { %1902 = vmatpush1.bf16.msra.mxu0 %v6947_v59  ;;  %2106 = vmatpush1.bf16.msra.mxu1 %v6950_v60  ;;  %v7036_v59 = vld [vmem:[#allocation5 + $0x708] ss:$16 sps:$4 sm:$0xff]   ;;  %v7041_v60 = vld [vmem:[#allocation5 + $0x724] ss:$16 sps:$4 sm:$0xff]  }
 0x12a   :  { %1903 = vmatprep.subr.bf16.mxu0 %v6955_v61  ;;  %2107 = vmatprep.subr.bf16.mxu1 %v6958_v62  ;;  %v7044_v61 = vld [vmem:[#allocation5 + $0x72c] ss:$16 sps:$4 sm:$0xff]   ;;  %v7039_v62 = vld [vmem:[#allocation5 + $0x720] ss:$16 sps:$4 sm:$0xff]  }
 0x12d   :  { %1904 = vmatpush1.bf16.msra.mxu0 %v6953_v63  ;;  %2108 = vmatpush1.bf16.msra.mxu1 %v6956_v0  ;;  %v7042_v63 = vld [vmem:[#allocation5 + $0x728] ss:$16 sps:$4 sm:$0xff]   ;;  %v7047_v0 = vld [vmem:[#allocation5 + $0x744] ss:$16 sps:$4 sm:$0xff]  }
 0x12e   :  { %1905 = vmatprep.subr.bf16.mxu0 %v6961_v1  ;;  %2109 = vmatprep.subr.bf16.mxu1 %v6964_v2  ;;  %v7050_v1 = vld [vmem:[#allocation5 + $0x74c] ss:$16 sps:$4 sm:$0xff]   ;;  %v7045_v2 = vld [vmem:[#allocation5 + $0x740] ss:$16 sps:$4 sm:$0xff]  }
 0x131   :  { %1906 = vmatpush1.bf16.msra.mxu0 %v6959_v3  ;;  %2110 = vmatpush1.bf16.msra.mxu1 %v6962_v4  ;;  %v7048_v3 = vld [vmem:[#allocation5 + $0x748] ss:$16 sps:$4 sm:$0xff]   ;;  %v7053_v4 = vld [vmem:[#allocation5 + $0x764] ss:$16 sps:$4 sm:$0xff]  }
 0x132   :  { %1907 = vmatprep.subr.bf16.mxu0 %v6967_v5  ;;  %2111 = vmatprep.subr.bf16.mxu1 %v6970_v6  ;;  %v7056_v5 = vld [vmem:[#allocation5 + $0x76c] ss:$16 sps:$4 sm:$0xff]   ;;  %v7051_v6 = vld [vmem:[#allocation5 + $0x760] ss:$16 sps:$4 sm:$0xff]  }
 0x135   :  { %1908 = vmatpush1.bf16.msra.mxu0 %v6965_v7  ;;  %2112 = vmatpush1.bf16.msra.mxu1 %v6968_v8  ;;  %v7054_v7 = vld [vmem:[#allocation5 + $0x768] ss:$16 sps:$4 sm:$0xff]   ;;  %v7059_v8 = vld [vmem:[#allocation5 + $0x784] ss:$16 sps:$4 sm:$0xff]  }
 0x136   :  { %1909 = vmatprep.subr.bf16.mxu0 %v6974_v9  ;;  %2113 = vmatprep.subr.bf16.mxu1 %v6977_v10  ;;  %v7062_v9 = vld [vmem:[#allocation5 + $0x78c] ss:$16 sps:$4 sm:$0xff]   ;;  %v7057_v10 = vld [vmem:[#allocation5 + $0x780] ss:$16 sps:$4 sm:$0xff]  }
 0x139   :  { %1910 = vmatpush1.bf16.msra.mxu0 %v6972_v11  ;;  %2114 = vmatpush1.bf16.msra.mxu1 %v6975_v12  ;;  %v7060_v11 = vld [vmem:[#allocation5 + $0x788] ss:$16 sps:$4 sm:$0xff]   ;;  %v7065_v12 = vld [vmem:[#allocation5 + $0x7a4] ss:$16 sps:$4 sm:$0xff]  }
 0x13a   :  { %1911 = vmatprep.subr.bf16.mxu0 %v6981_v13  ;;  %2115 = vmatprep.subr.bf16.mxu1 %v6984_v14  ;;  %v7068_v13 = vld [vmem:[#allocation5 + $0x7ac] ss:$16 sps:$4 sm:$0xff]   ;;  %v7063_v14 = vld [vmem:[#allocation5 + $0x7a0] ss:$16 sps:$4 sm:$0xff]  }
 0x13d   :  { %1912 = vmatpush1.bf16.msra.mxu0 %v6979_v15  ;;  %2116 = vmatpush1.bf16.msra.mxu1 %v6982_v16  ;;  %v7066_v15 = vld [vmem:[#allocation5 + $0x7a8] ss:$16 sps:$4 sm:$0xff]   ;;  %v7073_v16 = vld [vmem:[#allocation5 + $0x7c4] ss:$16 sps:$4 sm:$0xff]  }
 0x13e   :  { %1932 = vmatprep.subr.bf16.mxu0 %v6987_v17  ;;  %2136 = vmatprep.subr.bf16.mxu1 %v6990_v18  ;;  %v7076_v17 = vld [vmem:[#allocation5 + $0x7cc] ss:$16 sps:$4 sm:$0xff]   ;;  %v7071_v18 = vld [vmem:[#allocation5 + $0x7c0] ss:$16 sps:$4 sm:$0xff]  }
 0x140   :  { %1914 = vmatmul.mubr.bf16.vlgmr.msra.gmra.mrb[0].mxu0 %v5778_v19  ;;  %2118 = vmatmul.mubr.bf16.vlgmr.msra.gmra.mrb[0].mxu1 %v5778_v19  ;;  %v7074_v19 = vld [vmem:[#allocation5 + $0x7c8] ss:$16 sps:$4 sm:$0xff]  }
 0x141   :  { %1933 = vmatpush1.bf16.msra.mxu0 %v6985_v20  ;;  %2137 = vmatpush1.bf16.msra.mxu1 %v6988_v22  ;;  %v7079_v20 = vld [vmem:[#allocation5 + $0x7e4] ss:$16 sps:$4 sm:$0xff]   ;;  %v7077_v22 = vld [vmem:[#allocation5 + $0x7e0] ss:$16 sps:$4 sm:$0xff]  }
 0x142   :  { %1934 = vmatprep.subr.bf16.mxu0 %v6993_v23  ;;  %2138 = vmatprep.subr.bf16.mxu1 %v6996_v24  ;;  %v7080_v23 = vld [vmem:[#allocation5 + $0x7e8] ss:$16 sps:$4 sm:$0xff]  }
 0x143   :  { %1923 = vmatprep.mubr.bf16.mxu0 %v5787_v29  ;;  %2127 = vmatprep.mubr.bf16.mxu1 %v5787_v29  ;;  %v152_v24 = vld [vmem:[#allocation2 + $0x58] sm:$0xff] }
 0x144   :  { %v5789_v29 = vcombine.high %v152_v24, %v152_v24 }
 0x145   :  { %1935 = vmatpush1.bf16.msra.mxu0 %v6991_v25  ;;  %2139 = vmatpush1.bf16.msra.mxu1 %v6994_v28  ;;  %v7087_v25 = vld [vmem:[#allocation7 + $0x4] ss:$8 sps:$4 sm:$0xff]   ;;  %v5780_v28 = vcombine.low %v7808_v26, %v7810_v27  ;;  %v7094_v26 = vld [vmem:[#allocation7 + $0x30] ss:$8 sps:$4 sm:$0xff]  }
 0x146   :  { %1936 = vmatprep.subr.bf16.mxu0 %v6999_v30  ;;  %2140 = vmatprep.subr.bf16.mxu1 %v7002_v31  ;;  %v7085_v30 = vld [vmem:[#allocation7] ss:$8 sps:$4 sm:$0xff]   ;;  %v7090_v31 = vld [vmem:[#allocation7 + $0x14] ss:$8 sps:$4 sm:$0xff]   ;;  %v7099_v27 = vld [vmem:[#allocation7 + $0x44] ss:$8 sps:$4 sm:$0xff]  }
 0x148   :  { %1924 = vmatmul.mubr.bf16.gmra.mrb[4].mxu0 %v5786_v36  ;;  %2128 = vmatmul.mubr.bf16.gmra.mrb[4].mxu1 %v5786_v36  ;;  %v7096_v36 = vld [vmem:[#allocation7 + $0x34] ss:$8 sps:$4 sm:$0xff]  }
 0x149   :  { %1937 = vmatpush1.bf16.msra.mxu0 %v6997_v32  ;;  %2141 = vmatpush1.bf16.msra.mxu1 %v7000_v33  ;;  %v7088_v32 = vld [vmem:[#allocation7 + $0x10] ss:$8 sps:$4 sm:$0xff]   ;;  %v7093_v33 = vld [vmem:[#allocation7 + $0x24] ss:$8 sps:$4 sm:$0xff]  }
 0x14a   :  { %1938 = vmatprep.subr.bf16.mxu0 %v7005_v34  ;;  %2142 = vmatprep.subr.bf16.mxu1 %v7008_v35  ;;  %v5788_v34 = vcombine.low %v152_v24, %v152_v24  ;;  %v7091_v35 = vld [vmem:[#allocation7 + $0x20] ss:$8 sps:$4 sm:$0xff]  }
 0x14b   :  { %1964 = vmatprep.mubr.bf16.mxu0 %v5781_v39  ;;  %2168 = vmatprep.mubr.bf16.mxu1 %v5781_v39  ;;  %v7100_v39 = vld [vmem:[#allocation7 + $0x50] ss:$8 sps:$4 sm:$0xff]  }
 0x14d   :  { %1939 = vmatpush1.bf16.msra.mxu0 %v7003_v37  ;;  %2143 = vmatpush1.bf16.msra.mxu1 %v7006_v38  ;;  %v7097_v37 = vld [vmem:[#allocation7 + $0x40] ss:$8 sps:$4 sm:$0xff]   ;;  %v7102_v38 = vld [vmem:[#allocation7 + $0x54] ss:$8 sps:$4 sm:$0xff]  }
 0x14e   :  { %1940 = vmatprep.subr.bf16.mxu0 %v7011_v40  ;;  %2144 = vmatprep.subr.bf16.mxu1 %v7014_v41  ;;  %v7105_v40 = vld [vmem:[#allocation7 + $0x64] ss:$8 sps:$4 sm:$0xff]   ;;  %v7103_v41 = vld [vmem:[#allocation7 + $0x60] ss:$8 sps:$4 sm:$0xff]  }
 0x151   :  { %1941 = vmatpush1.bf16.msra.mxu0 %v7009_v42  ;;  %2145 = vmatpush1.bf16.msra.mxu1 %v7012_v43  ;;  %v7108_v42 = vld [vmem:[#allocation7 + $0x74] ss:$8 sps:$4 sm:$0xff]   ;;  %v7106_v43 = vld [vmem:[#allocation7 + $0x70] ss:$8 sps:$4 sm:$0xff]  }
 0x152   :  { %1942 = vmatprep.subr.bf16.mxu0 %v7017_v44  ;;  %2146 = vmatprep.subr.bf16.mxu1 %v7020_v45  ;;  %v7111_v44 = vld [vmem:[#allocation7 + $0x84] ss:$8 sps:$4 sm:$0xff]   ;;  %v7109_v45 = vld [vmem:[#allocation7 + $0x80] ss:$8 sps:$4 sm:$0xff]  }
 0x155   :  { %1943 = vmatpush1.bf16.msra.mxu0 %v7015_v46  ;;  %2147 = vmatpush1.bf16.msra.mxu1 %v7018_v47  ;;  %v7114_v46 = vld [vmem:[#allocation7 + $0x94] ss:$8 sps:$4 sm:$0xff]   ;;  %v7112_v47 = vld [vmem:[#allocation7 + $0x90] ss:$8 sps:$4 sm:$0xff]  }
 0x156   :  { %1944 = vmatprep.subr.bf16.mxu0 %v7023_v48  ;;  %2148 = vmatprep.subr.bf16.mxu1 %v7026_v49  ;;  %v7117_v48 = vld [vmem:[#allocation7 + $0xa4] ss:$8 sps:$4 sm:$0xff]   ;;  %v7115_v49 = vld [vmem:[#allocation7 + $0xa0] ss:$8 sps:$4 sm:$0xff]  }
 0x159   :  { %1945 = vmatpush1.bf16.msra.mxu0 %v7021_v50  ;;  %2149 = vmatpush1.bf16.msra.mxu1 %v7024_v51  ;;  %v7120_v50 = vld [vmem:[#allocation7 + $0xb4] ss:$8 sps:$4 sm:$0xff]   ;;  %v7118_v51 = vld [vmem:[#allocation7 + $0xb0] ss:$8 sps:$4 sm:$0xff]  }
 0x15a   :  { %1946 = vmatprep.subr.bf16.mxu0 %v7029_v52  ;;  %2150 = vmatprep.subr.bf16.mxu1 %v7032_v53  ;;  %v7123_v52 = vld [vmem:[#allocation7 + $0xc4] ss:$8 sps:$4 sm:$0xff]   ;;  %v7121_v53 = vld [vmem:[#allocation7 + $0xc0] ss:$8 sps:$4 sm:$0xff]  }
 0x15d   :  { %1947 = vmatpush1.bf16.msra.mxu0 %v7027_v54  ;;  %2151 = vmatpush1.bf16.msra.mxu1 %v7030_v55  ;;  %v7126_v54 = vld [vmem:[#allocation7 + $0xd4] ss:$8 sps:$4 sm:$0xff]   ;;  %v7124_v55 = vld [vmem:[#allocation7 + $0xd0] ss:$8 sps:$4 sm:$0xff]  }
 0x15e   :  { %1948 = vmatprep.subr.bf16.mxu0 %v7035_v56  ;;  %2152 = vmatprep.subr.bf16.mxu1 %v7038_v57  ;;  %v7129_v56 = vld [vmem:[#allocation7 + $0xe4] ss:$8 sps:$4 sm:$0xff]   ;;  %v7127_v57 = vld [vmem:[#allocation7 + $0xe0] ss:$8 sps:$4 sm:$0xff]  }
 0x161   :  { %1949 = vmatpush1.bf16.msra.mxu0 %v7033_v58  ;;  %2153 = vmatpush1.bf16.msra.mxu1 %v7036_v59  ;;  %v7132_v58 = vld [vmem:[#allocation7 + $0xf4] ss:$8 sps:$4 sm:$0xff]   ;;  %v7130_v59 = vld [vmem:[#allocation7 + $0xf0] ss:$8 sps:$4 sm:$0xff]  }
 0x162   :  { %1950 = vmatprep.subr.bf16.mxu0 %v7041_v60  ;;  %2154 = vmatprep.subr.bf16.mxu1 %v7044_v61  ;;  %v7135_v60 = vld [vmem:[#allocation7 + $0x104] ss:$8 sps:$4 sm:$0xff]  }
 0x163   :  { %v7181_v61 = vld [vmem:[#allocation8 + $0x40] sm:$0xff]  }
 0x165   :  { %1951 = vmatpush1.bf16.msra.mxu0 %v7039_v62  ;;  %2155 = vmatpush1.bf16.msra.mxu1 %v7042_v63  ;;  %v7182_v62 = vld [vmem:[#allocation8] sm:$0xff]   ;;  %v7183_v63 = vld [vmem:[#allocation8 + $0x48] sm:$0xff]  }
 0x166   :  { %1952 = vmatprep.subr.bf16.mxu0 %v7047_v0  ;;  %2156 = vmatprep.subr.bf16.mxu1 %v7050_v1  ;;  %v7184_v0 = vld [vmem:[#allocation8 + $0x8] sm:$0xff]   ;;  %v7185_v1 = vld [vmem:[#allocation8 + $0x50] sm:$0xff]  }
 0x169   :  { %1953 = vmatpush1.bf16.msra.mxu0 %v7045_v2  ;;  %2157 = vmatpush1.bf16.msra.mxu1 %v7048_v3  ;;  %v7186_v2 = vld [vmem:[#allocation8 + $0x10] sm:$0xff]   ;;  %v7187_v3 = vld [vmem:[#allocation8 + $0x58] sm:$0xff]  }
 0x16a   :  { %1954 = vmatprep.subr.bf16.mxu0 %v7053_v4  ;;  %2158 = vmatprep.subr.bf16.mxu1 %v7056_v5  ;;  %v7188_v4 = vld [vmem:[#allocation8 + $0x18] sm:$0xff]   ;;  %v7189_v5 = vld [vmem:[#allocation8 + $0x60] sm:$0xff]  }
 0x16d   :  { %1955 = vmatpush1.bf16.msra.mxu0 %v7051_v6  ;;  %2159 = vmatpush1.bf16.msra.mxu1 %v7054_v7  ;;  %v7190_v6 = vld [vmem:[#allocation8 + $0x20] sm:$0xff]   ;;  %v7191_v7 = vld [vmem:[#allocation8 + $0x68] sm:$0xff]  }
 0x16e   :  { %1956 = vmatprep.subr.bf16.mxu0 %v7059_v8  ;;  %2160 = vmatprep.subr.bf16.mxu1 %v7062_v9  ;;  %v411_v8 = vlaneseq }
 0x170   :  { %v7816_v9 = vshrl.u32 %v411_v8, 7  ;;  %v7153_v8 = vld [vmem:[#allocation7 + $0x164] ss:$8 sps:$4 sm:$0xff]  }
 0x171   :  { %1957 = vmatpush1.bf16.msra.mxu0 %v7057_v10  ;;  %2161 = vmatpush1.bf16.msra.mxu1 %v7060_v11 }
 0x172   :  { %1958 = vmatprep.subr.bf16.mxu0 %v7065_v12  ;;  %2162 = vmatprep.subr.bf16.mxu1 %v7068_v13  ;;  %v7819_v10 = vsub.s32 0, %v7816_v9  ;;  %v7822_v11 = vsub.s32 2, %v7816_v9  ;;  %v409_v12 = vld [vmem:[%s8118_s2] sm:$0xf]  ;;  %v7828_v13 = vsub.s32 1, %v7816_v9 }
 0x175   :  { %1959 = vmatpush1.bf16.msra.mxu0 %v7063_v14  ;;  %2163 = vmatpush1.bf16.msra.mxu1 %v7066_v15  ;;  %v7831_v14 = vsub.s32 3, %v7816_v9  ;;  %v414_v15 = vrot.slane %v409_v12, %v7819_v10 }
 0x176   :  { %1960 = vmatprep.subr.bf16.mxu0 %v7073_v16  ;;  %2164 = vmatprep.subr.bf16.mxu1 %v7076_v17  ;;  %v7835_v16 = vrot.slane %v409_v12, %v7822_v11  ;;  %v418_v17 = vrot.slane %v409_v12, %v7828_v13 }
 0x179   :  { %1961 = vmatpush1.bf16.msra.mxu0 %v7071_v18  ;;  %2165 = vmatpush1.bf16.msra.mxu1 %v7074_v19  ;;  %v7839_v18 = vrot.slane %v409_v12, %v7831_v14  ;;  %v7151_v12 = vld [vmem:[#allocation7 + $0x160] ss:$8 sps:$4 sm:$0xff]  }
 0x17a   :  { %1962 = vmatprep.subr.bf16.mxu0 %v7079_v20  ;;  %2166 = vmatprep.subr.bf16.mxu1 %v7082_v21 }
 0x17d   :  { %1963 = vmatpush1.bf16.msra.mxu0 %v7077_v22  ;;  %2167 = vmatpush1.bf16.msra.mxu1 %v7080_v23 }
 0x17e   :  { %2603 = vmatprep.subr.bf16.mxu0 %v7087_v25  ;;  %6487 = vmatprep.subr.bf16.mxu1 %v7181_v61 }
 0x180   :  { %1965 = vmatmul.mubr.bf16.vlgmr.msra.gmra.mrb[0].mxu0 %v5780_v28  ;;  %2169 = vmatmul.mubr.bf16.vlgmr.msra.gmra.mrb[0].mxu1 %v5780_v28 }
 0x181   :  { %1974 = vmatprep.mubr.bf16.mxu0 %v5789_v29  ;;  %2178 = vmatprep.mubr.bf16.mxu1 %v5789_v29 }
 0x182   :  { %2604 = vmatpush1.bf16.msra.mxu0 %v7085_v30  ;;  %6488 = vmatpush3.bf16.msra.mxu1 %v7182_v62  ;;  %v7141_v62 = vld [vmem:[#allocation7 + $0x124] ss:$8 sps:$4 sm:$0xff]  }
 0x183   :  { %2605 = vmatprep.subr.bf16.mxu0 %v7090_v31  ;;  %6489 = vmatprep.subr.bf16.mxu1 %v7183_v63 }
 0x186   :  { %2606 = vmatpush1.bf16.msra.mxu0 %v7088_v32  ;;  %6490 = vmatpush3.bf16.msra.mxu1 %v7184_v0  ;;  %v7139_v0 = vld [vmem:[#allocation7 + $0x120] ss:$8 sps:$4 sm:$0xff]  }
 0x187   :  { %2607 = vmatprep.subr.bf16.mxu0 %v7093_v33  ;;  %6491 = vmatprep.subr.bf16.mxu1 %v7185_v1 }
 0x188   :  { %1975 = vmatmul.mubr.bf16.gmra.mrb[4].mxu0 %v5788_v34  ;;  %2179 = vmatmul.mubr.bf16.gmra.mrb[4].mxu1 %v5788_v34 }
 0x18a   :  { %2608 = vmatpush1.bf16.msra.mxu0 %v7091_v35  ;;  %6492 = vmatpush3.bf16.msra.mxu1 %v7186_v2  ;;  %v7144_v2 = vld [vmem:[#allocation7 + $0x134] ss:$8 sps:$4 sm:$0xff]  }
 0x18b   :  { %2609 = vmatprep.subr.bf16.mxu0 %v7096_v36  ;;  %6493 = vmatprep.subr.bf16.mxu1 %v7187_v3  ;;  %v7142_v3 = vld [vmem:[#allocation7 + $0x130] ss:$8 sps:$4 sm:$0xff]  }
 0x18e   :  { %2610 = vmatpush1.bf16.msra.mxu0 %v7094_v26  ;;  %6494 = vmatpush3.bf16.msra.mxu1 %v7188_v4  ;;  %v7147_v4 = vld [vmem:[#allocation7 + $0x144] ss:$8 sps:$4 sm:$0xff]  }
 0x18f   :  { %2611 = vmatprep.subr.bf16.mxu0 %v7099_v27  ;;  %6495 = vmatprep.subr.bf16.mxu1 %v7189_v5  ;;  %v7145_v5 = vld [vmem:[#allocation7 + $0x140] ss:$8 sps:$4 sm:$0xff]  }
 0x192   :  { %2612 = vmatpush1.bf16.msra.mxu0 %v7097_v37  ;;  %6496 = vmatpush3.bf16.msra.mxu1 %v7190_v6  ;;  %v7150_v6 = vld [vmem:[#allocation7 + $0x154] ss:$8 sps:$4 sm:$0xff]  }
 0x193   :  { %2613 = vmatprep.subr.bf16.mxu0 %v7102_v38  ;;  %6497 = vmatprep.subr.bf16.mxu1 %v7191_v7  ;;  %v7148_v7 = vld [vmem:[#allocation7 + $0x150] ss:$8 sps:$4 sm:$0xff]  }
 0x196   :  { %2614 = vmatpush1.bf16.msra.mxu0 %v7100_v39 }
 0x197   :  { %2615 = vmatprep.subr.bf16.mxu0 %v7105_v40 }
 0x19a   :  { %2616 = vmatpush1.bf16.msra.mxu0 %v7103_v41 }
 0x19b   :  { %2617 = vmatprep.subr.bf16.mxu0 %v7108_v42 }
 0x19e   :  { %2618 = vmatpush1.bf16.msra.mxu0 %v7106_v43 }
 0x19f   :  { %2619 = vmatprep.subr.bf16.mxu0 %v7111_v44 }
 0x1a2   :  { %2620 = vmatpush1.bf16.msra.mxu0 %v7109_v45 }
 0x1a3   :  { %2621 = vmatprep.subr.bf16.mxu0 %v7114_v46 }
 0x1a6   :  { %2622 = vmatpush1.bf16.msra.mxu0 %v7112_v47 }
 0x1a7   :  { %2623 = vmatprep.subr.bf16.mxu0 %v7117_v48 }
 0x1aa   :  { %2624 = vmatpush1.bf16.msra.mxu0 %v7115_v49  ;;  %v7133_v49 = vld [vmem:[#allocation7 + $0x100] ss:$8 sps:$4 sm:$0xff]  }
 0x1ab   :  { %2625 = vmatprep.subr.bf16.mxu0 %v7120_v50 }
 0x1ae   :  { %2626 = vmatpush1.bf16.msra.mxu0 %v7118_v51 }
 0x1af   :  { %2627 = vmatprep.subr.bf16.mxu0 %v7123_v52 }
 0x1b2   :  { %2628 = vmatpush1.bf16.msra.mxu0 %v7121_v53  ;;  %v7138_v53 = vld [vmem:[#allocation7 + $0x114] ss:$8 sps:$4 sm:$0xff]  }
 0x1b3   :  { %2629 = vmatprep.subr.bf16.mxu0 %v7126_v54 }
 0x1b6   :  { %2630 = vmatpush1.bf16.msra.mxu0 %v7124_v55 }
 0x1b7   :  { %2631 = vmatprep.subr.bf16.mxu0 %v7129_v56 }
 0x1ba   :  { %2632 = vmatpush1.bf16.msra.mxu0 %v7127_v57 }
 0x1bb   :  { %2633 = vmatprep.subr.bf16.mxu0 %v7132_v58 }
 0x1be   :  { %2634 = vmatpush1.bf16.msra.mxu0 %v7130_v59 }
 0x1bf   :  { %2654 = vmatprep.subr.bf16.mxu0 %v7135_v60  ;;  %v7136_v60 = vld [vmem:[#allocation7 + $0x110] ss:$8 sps:$4 sm:$0xff]  }
 0x253   :  { %v1966_v19 = vpop.f32.mrb[0].mxu0  ;;  %v2170_v20 = vpop.f32.mrb[0].mxu1 }
 0x254   :  { %v6547_v21 = vadd.f32 %v1966_v19, %v414_v15  ;;  %v6553_v22 = vadd.f32 %v2170_v20, %v7835_v16  ;;  %v1968_v23 = vpop.f32.mrb[1].mxu0  ;;  %v2172_v24 = vpop.f32.mrb[1].mxu1  ;;  %v7159_v19 = vld [vmem:[#allocation7 + $0x184] ss:$8 sps:$4 sm:$0xff]   ;;  %v7157_v20 = vld [vmem:[#allocation7 + $0x180] ss:$8 sps:$4 sm:$0xff]  }
 0x255   :  { %v6548_v25 = vadd.f32 %v1968_v23, %v418_v17  ;;  %v6554_v28 = vadd.f32 %v2172_v24, %v7839_v18  ;;  %v1970_v29 = vpop.f32.mrb[2].mxu0  ;;  %v2174_v30 = vpop.f32.mrb[2].mxu1  ;;  %v7165_v23 = vld [vmem:[#allocation7 + $0x1a4] ss:$8 sps:$4 sm:$0xff]   ;;  %v7163_v24 = vld [vmem:[#allocation7 + $0x1a0] ss:$8 sps:$4 sm:$0xff]  }
 0x256   :  { %v6549_v31 = vadd.f32 %v1970_v29, %v414_v15  ;;  %v6555_v32 = vadd.f32 %v2174_v30, %v7835_v16  ;;  %v1972_v33 = vpop.f32.mrb[3].mxu0  ;;  %v2176_v34 = vpop.f32.mrb[3].mxu1  ;;  %v2187_v26 = vmax.f32 %v6547_v21, 0.0  ;;  %v2189_v27 = vmax.f32 %v6553_v22, 0.0  ;;  %v7162_v21 = vld [vmem:[#allocation7 + $0x194] ss:$8 sps:$4 sm:$0xff]  }
 0x257   :  { %v6550_v35 = vadd.f32 %v1972_v33, %v418_v17  ;;  %v6556_v36 = vadd.f32 %v2176_v34, %v7839_v18  ;;  %v2188_v39 = vmax.f32 %v6548_v25, 0.0  ;;  %v2190_v40 = vmax.f32 %v6554_v28, 0.0  ;;  %v7160_v22 = vld [vmem:[#allocation7 + $0x190] ss:$8 sps:$4 sm:$0xff]   ;;  %v7168_v25 = vld [vmem:[#allocation7 + $0x1b4] ss:$8 sps:$4 sm:$0xff]  }
 0x258   :  { %v2191_v37 = vmax.f32 %v6549_v31, 0.0  ;;  %v2193_v38 = vmax.f32 %v6555_v32, 0.0  ;;  %v7166_v28 = vld [vmem:[#allocation7 + $0x1b0] ss:$8 sps:$4 sm:$0xff]   ;;  %v7171_v29 = vld [vmem:[#allocation7 + $0x1c4] ss:$8 sps:$4 sm:$0xff]  }
 0x259   :  { %v2192_v41 = vmax.f32 %v6550_v35, 0.0  ;;  %v2194_v42 = vmax.f32 %v6556_v36, 0.0  ;;  %v7169_v30 = vld [vmem:[#allocation7 + $0x1c0] ss:$8 sps:$4 sm:$0xff]   ;;  %v7174_v31 = vld [vmem:[#allocation7 + $0x1d4] ss:$8 sps:$4 sm:$0xff]  }
 0x25a   :  { %v2199_v43 = vpack.c.bf16 %v2191_v37, %v2187_v26  ;;  %v7845_v44 = vpack.c.bf16 %v2193_v38, %v2189_v27  ;;  %v7172_v32 = vld [vmem:[#allocation7 + $0x1d0] ss:$8 sps:$4 sm:$0xff]   ;;  %v7177_v33 = vld [vmem:[#allocation7 + $0x1e4] ss:$8 sps:$4 sm:$0xff]   ;;  %v7175_v34 = vld [vmem:[#allocation7 + $0x1e0] ss:$8 sps:$4 sm:$0xff]  }
 0x25b   :  { %v2200_v45 = vpack.c.bf16 %v2192_v41, %v2188_v39  ;;  %v2202_v46 = vpack.c.bf16 %v2194_v42, %v2190_v40  ;;  %v1976_v47 = vpop.f32.mrb[4].mxu0  ;;  %v7847_v48 = vpop.f32.mrb[4].mxu1  ;;  %v7180_v35 = vld [vmem:[#allocation7 + $0x1f4] ss:$8 sps:$4 sm:$0xff]   ;;  %v7178_v26 = vld [vmem:[#allocation7 + $0x1f0] ss:$8 sps:$4 sm:$0xff]  }
 0x25c   :  { %v6551_v50 = vadd.f32 %v1976_v47, %v414_v15  ;;  %v1978_v51 = vpop.f32.mrb[5].mxu0  ;;  %v7849_v52 = vpop.f32.mrb[5].mxu1  ;;  %v7156_v15 = vld [vmem:[#allocation7 + $0x174] ss:$8 sps:$4 sm:$0xff]   ;;  %v6557_v37 = vadd.f32 %v7847_v48, %v7835_v16  ;;  %v7192_v41 = vld [vmem:[#allocation8 + $0x28] sm:$0xff]  }
 0x25d   :  { %v6552_v54 = vadd.f32 %v1978_v51, %v418_v17  ;;  %v1980_v55 = vpop.f32.mrb[6].mxu0  ;;  %v2184_v56 = vpop.f32.mrb[6].mxu1  ;;  %2635 = vmatprep.mubr.bf16.mxu0 %v2200_v45  ;;  %v7154_v17 = vld [vmem:[#allocation7 + $0x170] ss:$8 sps:$4 sm:$0xff]   ;;  %v6558_v36 = vadd.f32 %v7849_v52, %v7839_v18  ;;  %6498 = vmatpush3.bf16.msra.mxu1 %v7192_v41  ;;  %v2271_v16 = vld [vmem:[%s8120_s4] sm:$0x3] }
 0x25e   :  { %v1981_v57 = vpop.f32.mrb[7].mxu0  ;;  %v2185_v58 = vpop.f32.mrb[7].mxu1  ;;  %2636 = vmatmul.mubr.bf16.vlgmr.msra.gmra.mrb[8].mxu0 %v2199_v43  ;;  %v2195_v61 = vmax.f32 %v6551_v50, 0.0  ;;  %v2197_v39 = vmax.f32 %v6557_v37, 0.0  ;;  %v7193_v42 = vld [vmem:[#allocation8 + $0x70] sm:$0xff]   ;;  %v7195_v18 = vld [vmem:[#allocation8 + $0x78] sm:$0xff]   ;;  %v2280_v47 = vrot.slane %v2271_v16, %v7828_v13 }
 0x25f   :  { %v2196_v59 = vmax.f32 %v6552_v54, 0.0  ;;  %2655 = vmatpush1.bf16.msra.mxu0 %v7133_v49  ;;  %v2198_v27 = vmax.f32 %v6558_v36, 0.0  ;;  %v7194_v43 = vld [vmem:[#allocation8 + $0x30] sm:$0xff]   ;;  %6499 = vmatprep.subr.bf16.mxu1 %v7193_v42  ;;  %v7196_v45 = vld [vmem:[#allocation8 + $0x38] sm:$0xff]  }
 0x260   :  { %2656 = vmatprep.subr.bf16.mxu0 %v7138_v53  ;;  %v2203_v1 = vpack.c.bf16 %v2195_v61, %v2195_v61  ;;  %v2205_v40 = vpack.c.bf16 %v2197_v39, %v2197_v39  ;;  %v7232_v36 = vld [vmem:[#allocation11 + $0x2c] ss:$16 sps:$4 sm:$0xff]   ;;  %v7236_v37 = vld [vmem:[#allocation11 + $0x48] ss:$16 sps:$4 sm:$0xff]  }
 0x261   :  { %v2204_v63 = vpack.c.bf16 %v2196_v59, %v2196_v59  ;;  %v2206_v38 = vpack.c.bf16 %v2198_v27, %v2198_v27  ;;  %6500 = vmatpush3.bf16.msra.mxu1 %v7194_v43  ;;  %v7238_v27 = vld [vmem:[#allocation11 + $0x4c] ss:$16 sps:$4 sm:$0xff]   ;;  %v7242_v39 = vld [vmem:[#allocation11 + $0x68] ss:$16 sps:$4 sm:$0xff]  }
 0x262   :  { %6501 = vmatprep.subr.bf16.mxu1 %v7195_v18  ;;  %v7248_v41 = vld [vmem:[#allocation11 + $0x88] ss:$16 sps:$4 sm:$0xff]   ;;  %v7256_v42 = vld [vmem:[#allocation11 + $0xac] ss:$16 sps:$4 sm:$0xff]  }
 0x263   :  { %2657 = vmatpush1.bf16.msra.mxu0 %v7136_v60  ;;  %2645 = vmatprep.mubr.bf16.mxu0 %v2204_v63  ;;  %v7197_v63 = vld [vmem:[#allocation10] ss:$8 sps:$4 sm:$0xff]   ;;  %v7262_v18 = vld [vmem:[#allocation11 + $0xcc] ss:$16 sps:$4 sm:$0xff]  }
 0x264   :  { %2658 = vmatprep.subr.bf16.mxu0 %v7141_v62  ;;  %v7254_v43 = vld [vmem:[#allocation11 + $0xa8] ss:$16 sps:$4 sm:$0xff]  }
 0x265   :  { %6502 = vmatpush3.bf16.msra.mxu1 %v7196_v45  ;;  %v7260_v45 = vld [vmem:[#allocation11 + $0xc8] ss:$16 sps:$4 sm:$0xff]  }
 0x266   :  { %2646 = vmatmul.mubr.bf16.gmra.mrb[12].mxu0 %v2203_v1 }
 0x267   :  { %2659 = vmatpush1.bf16.msra.mxu0 %v7139_v0  ;;  %2686 = vmatprep.mubr.bf16.mxu0 %v2202_v46  ;;  %v7199_v46 = vld [vmem:[#allocation10 + $0x4] ss:$8 sps:$4 sm:$0xff]  }
 0x268   :  { %2660 = vmatprep.subr.bf16.mxu0 %v7144_v2  ;;  %3011 = vmatprep.subr.bf16.mxu1 %v7199_v46  ;;  %v7202_v2 = vld [vmem:[#allocation10 + $0x14] ss:$8 sps:$4 sm:$0xff]  }
 0x269   :  { %v7268_v46 = vld [vmem:[#allocation11 + $0xec] ss:$16 sps:$4 sm:$0xff]  }
 0x26b   :  { %2661 = vmatpush1.bf16.msra.mxu0 %v7142_v3 }
 0x26c   :  { %2662 = vmatprep.subr.bf16.mxu0 %v7147_v4 }
 0x26f   :  { %2663 = vmatpush1.bf16.msra.mxu0 %v7145_v5 }
 0x270   :  { %2664 = vmatprep.subr.bf16.mxu0 %v7150_v6 }
 0x273   :  { %2665 = vmatpush1.bf16.msra.mxu0 %v7148_v7  ;;  %v7200_v7 = vld [vmem:[#allocation10 + $0x10] ss:$8 sps:$4 sm:$0xff]  }
 0x274   :  { %2666 = vmatprep.subr.bf16.mxu0 %v7153_v8 }
 0x277   :  { %2667 = vmatpush1.bf16.msra.mxu0 %v7151_v12  ;;  %v7205_v12 = vld [vmem:[#allocation10 + $0x24] ss:$8 sps:$4 sm:$0xff]  }
 0x278   :  { %2668 = vmatprep.subr.bf16.mxu0 %v7156_v15 }
 0x27b   :  { %2669 = vmatpush1.bf16.msra.mxu0 %v7154_v17  ;;  %v7203_v17 = vld [vmem:[#allocation10 + $0x20] ss:$8 sps:$4 sm:$0xff]  }
 0x27c   :  { %2670 = vmatprep.subr.bf16.mxu0 %v7159_v19 }
 0x27f   :  { %2671 = vmatpush1.bf16.msra.mxu0 %v7157_v20  ;;  %v7208_v20 = vld [vmem:[#allocation10 + $0x34] ss:$8 sps:$4 sm:$0xff]  }
 0x280   :  { %2672 = vmatprep.subr.bf16.mxu0 %v7162_v21  ;;  %v7206_v21 = vld [vmem:[#allocation10 + $0x30] ss:$8 sps:$4 sm:$0xff]  }
 0x283   :  { %2673 = vmatpush1.bf16.msra.mxu0 %v7160_v22  ;;  %v7211_v22 = vld [vmem:[#allocation10 + $0x44] ss:$8 sps:$4 sm:$0xff]  }
 0x284   :  { %2674 = vmatprep.subr.bf16.mxu0 %v7165_v23  ;;  %v7209_v23 = vld [vmem:[#allocation10 + $0x40] ss:$8 sps:$4 sm:$0xff]  }
 0x287   :  { %2675 = vmatpush1.bf16.msra.mxu0 %v7163_v24  ;;  %v7214_v24 = vld [vmem:[#allocation10 + $0x54] ss:$8 sps:$4 sm:$0xff]  }
 0x288   :  { %2676 = vmatprep.subr.bf16.mxu0 %v7168_v25  ;;  %v7212_v25 = vld [vmem:[#allocation10 + $0x50] ss:$8 sps:$4 sm:$0xff]  }
 0x28b   :  { %2677 = vmatpush1.bf16.msra.mxu0 %v7166_v28  ;;  %v7217_v28 = vld [vmem:[#allocation10 + $0x64] ss:$8 sps:$4 sm:$0xff]  }
 0x28c   :  { %2678 = vmatprep.subr.bf16.mxu0 %v7171_v29  ;;  %v7215_v29 = vld [vmem:[#allocation10 + $0x60] ss:$8 sps:$4 sm:$0xff]  }
 0x28f   :  { %2679 = vmatpush1.bf16.msra.mxu0 %v7169_v30  ;;  %v7220_v30 = vld [vmem:[#allocation10 + $0x74] ss:$8 sps:$4 sm:$0xff]  }
 0x290   :  { %2680 = vmatprep.subr.bf16.mxu0 %v7174_v31  ;;  %v7218_v31 = vld [vmem:[#allocation10 + $0x70] ss:$8 sps:$4 sm:$0xff]  }
 0x293   :  { %2681 = vmatpush1.bf16.msra.mxu0 %v7172_v32  ;;  %v7614_v32 = vmov 0  }
 0x294   :  { %2682 = vmatprep.subr.bf16.mxu0 %v7177_v33  ;;  %v7223_v33 = vld [vmem:[#allocation11 + $0x4] ss:$16 sps:$4 sm:$0xff]  }
 0x297   :  { %2683 = vmatpush1.bf16.msra.mxu0 %v7175_v34  ;;  %v7224_v34 = vld [vmem:[#allocation11 + $0x8] ss:$16 sps:$4 sm:$0xff]  }
 0x298   :  { %2684 = vmatprep.subr.bf16.mxu0 %v7180_v35  ;;  %v7226_v35 = vld [vmem:[#allocation11 + $0xc] ss:$16 sps:$4 sm:$0xff]  }
 0x29b   :  { %2685 = vmatpush1.bf16.msra.mxu0 %v7178_v26  ;;  %v7230_v26 = vld [vmem:[#allocation11 + $0x28] ss:$16 sps:$4 sm:$0xff]  }
 0x29c   :  { %3529 = vmatprep.subr.bf16.mxu0 %v7226_v35  ;;  %v7257_v35 = vld [vmem:[#allocation11 + $0xc0] ss:$16 sps:$4 sm:$0xff]  }
 0x29e   :  { %2687 = vmatmul.mubr.bf16.vlgmr.msra.gmra.mrb[8].mxu0 %v7845_v44  ;;  %v2276_v44 = vrot.slane %v2271_v16, %v7819_v10  ;;  %v7266_v16 = vld [vmem:[#allocation11 + $0xe8] ss:$16 sps:$4 sm:$0xff]  }
 0x29f   :  { %2696 = vmatprep.mubr.bf16.mxu0 %v2206_v38  ;;  %3530 = vmatpush1.bf16.msra.mxu0 %v7224_v34  ;;  %v7244_v38 = vld [vmem:[#allocation11 + $0x6c] ss:$16 sps:$4 sm:$0xff]   ;;  %v7259_v34 = vld [vmem:[#allocation11 + $0xc4] ss:$16 sps:$4 sm:$0xff]  }
 0x2a0   :  { %3531 = vmatprep.subr.bf16.mxu0 %v7232_v36  ;;  %v7265_v36 = vld [vmem:[#allocation11 + $0xe4] ss:$16 sps:$4 sm:$0xff]  }
 0x2a3   :  { %3532 = vmatpush1.bf16.msra.mxu0 %v7230_v26  ;;  %v7263_v26 = vld [vmem:[#allocation11 + $0xe0] ss:$16 sps:$4 sm:$0xff]  }
 0x2a4   :  { %3533 = vmatprep.subr.bf16.mxu0 %v7238_v27  ;;  %v7271_v27 = vld [vmem:[#allocation11 + $0x104] ss:$16 sps:$4 sm:$0xff]  }
 0x2a6   :  { %2697 = vmatmul.mubr.bf16.gmra.mrb[12].mxu0 %v2205_v40  ;;  %v7250_v40 = vld [vmem:[#allocation11 + $0x8c] ss:$16 sps:$4 sm:$0xff]  }
 0x2a7   :  { %3534 = vmatpush1.bf16.msra.mxu0 %v7236_v37  ;;  %v7269_v37 = vld [vmem:[#allocation11 + $0x100] ss:$16 sps:$4 sm:$0xff]  }
 0x2a8   :  { %3535 = vmatprep.subr.bf16.mxu0 %v7244_v38  ;;  %v7277_v38 = vld [vmem:[#allocation11 + $0x124] ss:$16 sps:$4 sm:$0xff]  }
 0x2ab   :  { %3536 = vmatpush1.bf16.msra.mxu0 %v7242_v39  ;;  %v7275_v39 = vld [vmem:[#allocation11 + $0x120] ss:$16 sps:$4 sm:$0xff]  }
 0x2ac   :  { %3537 = vmatprep.subr.bf16.mxu0 %v7250_v40  ;;  %v7283_v40 = vld [vmem:[#allocation11 + $0x144] ss:$16 sps:$4 sm:$0xff]  }
 0x2af   :  { %3538 = vmatpush1.bf16.msra.mxu0 %v7248_v41  ;;  %v7281_v41 = vld [vmem:[#allocation11 + $0x140] ss:$16 sps:$4 sm:$0xff]  }
 0x2b0   :  { %3539 = vmatprep.subr.bf16.mxu0 %v7256_v42  ;;  %v7289_v42 = vld [vmem:[#allocation11 + $0x164] ss:$16 sps:$4 sm:$0xff]  }
 0x2b3   :  { %3540 = vmatpush1.bf16.msra.mxu0 %v7254_v43  ;;  %v7287_v43 = vld [vmem:[#allocation11 + $0x160] ss:$16 sps:$4 sm:$0xff]  }
 0x2b4   :  { %3541 = vmatprep.subr.bf16.mxu0 %v7262_v18  ;;  %v7295_v18 = vld [vmem:[#allocation11 + $0x184] ss:$16 sps:$4 sm:$0xff]  }
 0x2b7   :  { %3542 = vmatpush1.bf16.msra.mxu0 %v7260_v45  ;;  %v7293_v45 = vld [vmem:[#allocation11 + $0x180] ss:$16 sps:$4 sm:$0xff]  }
 0x2b8   :  { %3543 = vmatprep.subr.bf16.mxu0 %v7268_v46  ;;  %v7301_v46 = vld [vmem:[#allocation11 + $0x1a4] ss:$16 sps:$4 sm:$0xff]  }
 0x2bb   :  { %3544 = vmatpush1.bf16.msra.mxu0 %v7266_v16  ;;  %v7299_v16 = vld [vmem:[#allocation11 + $0x1a0] ss:$16 sps:$4 sm:$0xff]  }
 0x371   :  { %v2688_v48 = vpop.f32.mrb[8].mxu0 }
 0x372   :  { %v6559_v49 = vadd.f32 %v2688_v48, %v2276_v44  ;;  %v2690_v50 = vpop.f32.mrb[9].mxu0  ;;  %v7280_v48 = vld [vmem:[#allocation11 + $0x12c] ss:$16 sps:$4 sm:$0xff]  }
 0x373   :  { %v6560_v51 = vadd.f32 %v2690_v50, %v2280_v47  ;;  %v2692_v52 = vpop.f32.mrb[10].mxu0  ;;  %v7286_v50 = vld [vmem:[#allocation11 + $0x14c] ss:$16 sps:$4 sm:$0xff]  }
 0x374   :  { %v6561_v53 = vadd.f32 %v2692_v52, %v2276_v44  ;;  %v2694_v54 = vpop.f32.mrb[11].mxu0  ;;  %v2705_v56 = vmax.f32 %v6559_v49, 0.0  ;;  %v7278_v49 = vld [vmem:[#allocation11 + $0x128] ss:$16 sps:$4 sm:$0xff]   ;;  %v7292_v52 = vld [vmem:[#allocation11 + $0x16c] ss:$16 sps:$4 sm:$0xff]  }
 0x375   :  { %v6562_v55 = vadd.f32 %v2694_v54, %v2280_v47  ;;  %v2706_v58 = vmax.f32 %v6560_v51, 0.0  ;;  %v7284_v51 = vld [vmem:[#allocation11 + $0x148] ss:$16 sps:$4 sm:$0xff]   ;;  %v7298_v54 = vld [vmem:[#allocation11 + $0x18c] ss:$16 sps:$4 sm:$0xff]  }
 0x376   :  { %v2707_v57 = vmax.f32 %v6561_v53, 0.0  ;;  %v7290_v53 = vld [vmem:[#allocation11 + $0x168] ss:$16 sps:$4 sm:$0xff]  }
 0x377   :  { %v2708_v59 = vmax.f32 %v6562_v55, 0.0  ;;  %v7296_v55 = vld [vmem:[#allocation11 + $0x188] ss:$16 sps:$4 sm:$0xff]  }
 0x378   :  { %v2711_v60 = vpack.c.bf16 %v2707_v57, %v2705_v56  ;;  %v7304_v56 = vld [vmem:[#allocation11 + $0x1ac] ss:$16 sps:$4 sm:$0xff]   ;;  %v7302_v57 = vld [vmem:[#allocation11 + $0x1a8] ss:$16 sps:$4 sm:$0xff]  }
 0x379   :  { %v2712_v61 = vpack.c.bf16 %v2708_v59, %v2706_v58  ;;  %v2698_v62 = vpop.f32.mrb[12].mxu0  ;;  %v6110_v59 = vld [vmem:[%s8122_s6] ss:$0 sm:$0xff] }
 0x37a   :  { %v6563_v0 = vadd.f32 %v2698_v62, %v2276_v44  ;;  %v2700_v1 = vpop.f32.mrb[13].mxu0  ;;  %v7274_v44 = vld [vmem:[#allocation11 + $0x10c] ss:$16 sps:$4 sm:$0xff]  }
 0x37b   :  { %v6564_v3 = vadd.f32 %v2700_v1, %v2280_v47  ;;  %v2702_v4 = vpop.f32.mrb[14].mxu0  ;;  %2882 = vmatprep.mubr.bf16.mxu1 %v2712_v61  ;;  %v7272_v47 = vld [vmem:[#allocation11 + $0x108] ss:$16 sps:$4 sm:$0xff]   ;;  %3545 = vmatprep.subr.bf16.mxu0 %v7274_v44  ;;  %v7307_v44 = vld [vmem:[#allocation11 + $0x1c4] ss:$16 sps:$4 sm:$0xff]  }
 0x37c   :  { %v2703_v5 = vpop.f32.mrb[15].mxu0  ;;  %2883 = vmatmul.mubr.bf16.vlgmr.msra.gmra.mrb[8].mxu1 %v2711_v60  ;;  %v2709_v8 = vmax.f32 %v6563_v0, 0.0  ;;  %3546 = vmatpush1.bf16.msra.mxu0 %v7272_v47  ;;  %v7310_v47 = vld [vmem:[#allocation11 + $0x1cc] ss:$16 sps:$4 sm:$0xff]  }
 0x37d   :  { %v2710_v6 = vmax.f32 %v6564_v3, 0.0  ;;  %3012 = vmatpush1.bf16.msra.mxu1 %v7197_v63  ;;  %3547 = vmatprep.subr.bf16.mxu0 %v7280_v48  ;;  %v7305_v48 = vld [vmem:[#allocation11 + $0x1c0] ss:$16 sps:$4 sm:$0xff]  }
 0x37e   :  { %3013 = vmatprep.subr.bf16.mxu1 %v7202_v2  ;;  %v2713_v19 = vpack.c.bf16 %v2709_v8, %v2709_v8 }
 0x37f   :  { %v2714_v15 = vpack.c.bf16 %v2710_v6, %v2710_v6 }
 0x380   :  { %3548 = vmatpush1.bf16.msra.mxu0 %v7278_v49  ;;  %v7308_v49 = vld [vmem:[#allocation11 + $0x1c8] ss:$16 sps:$4 sm:$0xff]  }
 0x381   :  { %2890 = vmatprep.mubr.bf16.mxu1 %v2714_v15  ;;  %3014 = vmatpush1.bf16.msra.mxu1 %v7200_v7  ;;  %v7221_v7 = vld [vmem:[#allocation11] ss:$16 sps:$4 sm:$0xff]  }
 0x382   :  { %3015 = vmatprep.subr.bf16.mxu1 %v7205_v12  ;;  %3549 = vmatprep.subr.bf16.mxu0 %v7286_v50  ;;  %v7313_v50 = vld [vmem:[#allocation11 + $0x1e4] ss:$16 sps:$4 sm:$0xff]  }
 0x384   :  { %2891 = vmatmul.mubr.bf16.gmra.mrb[12].mxu1 %v2713_v19  ;;  %3550 = vmatpush1.bf16.msra.mxu0 %v7284_v51  ;;  %v7316_v51 = vld [vmem:[#allocation11 + $0x1ec] ss:$16 sps:$4 sm:$0xff]  }
 0x385   :  { %3016 = vmatpush1.bf16.msra.mxu1 %v7203_v17  ;;  %3043 = vmatprep.mubr.bf16.mxu1 %v7614_v32  ;;  %v7229_v17 = vld [vmem:[#allocation11 + $0x24] ss:$16 sps:$4 sm:$0xff]  }
 0x386   :  { %3017 = vmatprep.subr.bf16.mxu1 %v7208_v20  ;;  %3551 = vmatprep.subr.bf16.mxu0 %v7292_v52  ;;  %v7311_v52 = vld [vmem:[#allocation11 + $0x1e0] ss:$16 sps:$4 sm:$0xff]  }
 0x388   :  { %3552 = vmatpush1.bf16.msra.mxu0 %v7290_v53  ;;  %v7314_v53 = vld [vmem:[#allocation11 + $0x1e8] ss:$16 sps:$4 sm:$0xff]  }
 0x389   :  { %3018 = vmatpush1.bf16.msra.mxu1 %v7206_v21  ;;  %3553 = vmatprep.subr.bf16.mxu0 %v7298_v54  ;;  %v7227_v21 = vld [vmem:[#allocation11 + $0x20] ss:$16 sps:$4 sm:$0xff]  }
 0x38a   :  { %3019 = vmatprep.subr.bf16.mxu1 %v7211_v22  ;;  %v3600_v54 = vld [vmem:[#allocation13] sm:$0xff] }
 0x38c   :  { %3554 = vmatpush1.bf16.msra.mxu0 %v7296_v55  ;;  %v3604_v55 = vld [vmem:[#allocation13 + $0x20] sm:$0xff] }
 0x38d   :  { %3020 = vmatpush1.bf16.msra.mxu1 %v7209_v23  ;;  %3555 = vmatprep.subr.bf16.mxu0 %v7304_v56  ;;  %v7235_v23 = vld [vmem:[#allocation11 + $0x44] ss:$16 sps:$4 sm:$0xff]   ;;  %v3601_v56 = vld [vmem:[#allocation13 + $0x8] sm:$0xff] }
 0x38e   :  { %3021 = vmatprep.subr.bf16.mxu1 %v7214_v24  ;;  %v7233_v24 = vld [vmem:[#allocation11 + $0x40] ss:$16 sps:$4 sm:$0xff]  }
 0x390   :  { %3556 = vmatpush1.bf16.msra.mxu0 %v7302_v57  ;;  %v6207_v57 = vcombine.low %v3600_v54, %v3604_v55 }
 0x391   :  { %3022 = vmatpush1.bf16.msra.mxu1 %v7212_v25  ;;  %3557 = vmatprep.subr.bf16.mxu0 %v7310_v47 }
 0x392   :  { %3023 = vmatprep.subr.bf16.mxu1 %v7217_v28  ;;  %v7241_v28 = vld [vmem:[#allocation11 + $0x64] ss:$16 sps:$4 sm:$0xff]  }
 0x394   :  { %3558 = vmatpush1.bf16.msra.mxu0 %v7308_v49 }
 0x395   :  { %3024 = vmatpush1.bf16.msra.mxu1 %v7215_v29  ;;  %v7239_v29 = vld [vmem:[#allocation11 + $0x60] ss:$16 sps:$4 sm:$0xff]   ;;  %3559 = vmatprep.subr.bf16.mxu0 %v7316_v51 }
 0x396   :  { %3025 = vmatprep.subr.bf16.mxu1 %v7220_v30  ;;  %v7247_v30 = vld [vmem:[#allocation11 + $0x84] ss:$16 sps:$4 sm:$0xff]  }
 0x398   :  { %3560 = vmatpush1.bf16.msra.mxu0 %v7314_v53  ;;  %v3636_v53 = vld [vmem:[#allocation13 + $0x120] sm:$0xff] }
 0x399   :  { %3026 = vmatpush1.bf16.msra.mxu1 %v7218_v31  ;;  %v7245_v31 = vld [vmem:[#allocation11 + $0x80] ss:$16 sps:$4 sm:$0xff]  }
 0x39a   :  { %3478 = vmatprep.subr.bf16.mxu1 %v7223_v33  ;;  %v7253_v33 = vld [vmem:[#allocation11 + $0xa4] ss:$16 sps:$4 sm:$0xff]  }
 0x44f   :  { %v6503_v58 = vpop.f32.mrb[8].mxu1 }
 0x450   :  { %v6504_v60 = vpop.f32.mrb[9].mxu1 }
 0x451   :  { %v6505_v61 = vadd.f32 %v6504_v60, %v6503_v58  ;;  %v6506_v62 = vpop.f32.mrb[10].mxu1  ;;  %v6208_v58 = vcombine.high %v3600_v54, %v3604_v55  ;;  %v3633_v54 = vld [vmem:[#allocation13 + $0x108] sm:$0xff] }
 0x452   :  { %v6507_v63 = vpop.f32.mrb[11].mxu1  ;;  %v3637_v55 = vld [vmem:[#allocation13 + $0x128] sm:$0xff] }
 0x453   :  { %v2885_v0 = vadd.f32 %v6505_v61, %v6110_v59  ;;  %v6508_v1 = vadd.f32 %v6507_v63, %v6506_v62  ;;  %v2919_v62 = vld [vmem:[%s8124_s8] sm:$0x3] }
 0x454   :  { %v2924_v63 = vrot.slane %v2919_v62, %v7819_v10 }
 0x455   :  { %v2888_v2 = vadd.f32 %v6508_v1, %v6110_v59  ;;  %v2898_v3 = vmax.f32 %v2885_v0, 0.0  ;;  %v2928_v0 = vrot.slane %v2919_v62, %v7828_v13  ;;  %v3641_v62 = vld [vmem:[#allocation13 + $0x148] sm:$0xff] }
 0x457   :  { %v2899_v4 = vmax.f32 %v2888_v2, 0.0  ;;  %v6509_v5 = vpop.f32.mrb[12].mxu1 }
 0x458   :  { %v6510_v6 = vpop.f32.mrb[13].mxu1 }
 0x459   :  { %v2901_v8 = vpack.c.bf16 %v2899_v4, %v2898_v3  ;;  %v6511_v12 = vadd.f32 %v6510_v6, %v6509_v5  ;;  %v6512_v15 = vpop.f32.mrb[14].mxu1 }
 0x45a   :  { %v6513_v19 = vpop.f32.mrb[15].mxu1 }
 0x45b   :  { %v2893_v20 = vadd.f32 %v6511_v12, %v6110_v59  ;;  %3044 = vmatmul.mubr.bf16.vlgmr.msra.gmra.mrb[16].mxu1 %v2901_v8  ;;  %v3605_v59 = vld [vmem:[#allocation13 + $0x28] sm:$0xff] }
 0x45c   :  { %3053 = vmatprep.mubr.bf16.mxu1 %v7614_v32  ;;  %3479 = vmatpush1.bf16.msra.mxu1 %v7221_v7  ;;  %v7251_v32 = vld [vmem:[#allocation11 + $0xa0] ss:$16 sps:$4 sm:$0xff]   ;;  %v6209_v60 = vcombine.low %v3601_v56, %v3605_v59  ;;  %v6210_v61 = vcombine.high %v3601_v56, %v3605_v59  ;;  %v6242_v59 = vcombine.high %v3633_v54, %v3637_v55 }
 0x45d   :  { %v2900_v22 = vmax.f32 %v2893_v20, 0.0  ;;  %3480 = vmatprep.subr.bf16.mxu1 %v7229_v17  ;;  %v3608_v17 = vld [vmem:[#allocation13 + $0x40] sm:$0xff] }
 0x45e   :  { %5280 = vmatprep.subr.bf16.mxu0 %v6210_v61  ;;  %v3644_v61 = vld [vmem:[#allocation13 + $0x160] sm:$0xff] }
 0x45f   :  { %v2902_v25 = vpack.c.bf16 %v2900_v22, %v2900_v22  ;;  %v3609_v22 = vld [vmem:[#allocation13 + $0x48] sm:$0xff] }
 0x460   :  { %3481 = vmatpush1.bf16.msra.mxu1 %v7227_v21  ;;  %v3612_v21 = vld [vmem:[#allocation13 + $0x60] sm:$0xff] }
 0x461   :  { %3482 = vmatprep.subr.bf16.mxu1 %v7235_v23  ;;  %v3613_v23 = vld [vmem:[#allocation13 + $0x68] sm:$0xff] }
 0x463   :  { %3054 = vmatmul.mubr.bf16.gmra.mrb[20].mxu1 %v2902_v25 }
 0x464   :  { %3483 = vmatpush1.bf16.msra.mxu1 %v7233_v24 }
 0x465   :  { %3484 = vmatprep.subr.bf16.mxu1 %v7241_v28 }
 0x468   :  { %3485 = vmatpush1.bf16.msra.mxu1 %v7239_v29 }
 0x469   :  { %3486 = vmatprep.subr.bf16.mxu1 %v7247_v30 }
 0x46c   :  { %3487 = vmatpush1.bf16.msra.mxu1 %v7245_v31  ;;  %v6216_v31 = vcombine.high %v3608_v17, %v3612_v21 }
 0x46d   :  { %3488 = vmatprep.subr.bf16.mxu1 %v7253_v33  ;;  %v6218_v33 = vcombine.high %v3609_v22, %v3613_v23 }
 0x470   :  { %3489 = vmatpush1.bf16.msra.mxu1 %v7251_v32 }
 0x471   :  { %3490 = vmatprep.subr.bf16.mxu1 %v7259_v34 }
 0x474   :  { %3491 = vmatpush1.bf16.msra.mxu1 %v7257_v35  ;;  %v3616_v35 = vld [vmem:[#allocation13 + $0x80] sm:$0xff] }
 0x475   :  { %3492 = vmatprep.subr.bf16.mxu1 %v7265_v36 }
 0x478   :  { %3493 = vmatpush1.bf16.msra.mxu1 %v7263_v26  ;;  %v3620_v26 = vld [vmem:[#allocation13 + $0xa0] sm:$0xff] }
 0x479   :  { %3494 = vmatprep.subr.bf16.mxu1 %v7271_v27  ;;  %v3617_v27 = vld [vmem:[#allocation13 + $0x88] sm:$0xff] }
 0x47c   :  { %3495 = vmatpush1.bf16.msra.mxu1 %v7269_v37  ;;  %v3621_v37 = vld [vmem:[#allocation13 + $0xa8] sm:$0xff] }
 0x47d   :  { %3496 = vmatprep.subr.bf16.mxu1 %v7277_v38  ;;  %v6225_v49 = vcombine.low %v3617_v27, %v3621_v37 }
 0x480   :  { %3497 = vmatpush1.bf16.msra.mxu1 %v7275_v39 }
 0x481   :  { %3498 = vmatprep.subr.bf16.mxu1 %v7283_v40  ;;  %v6215_v40 = vcombine.low %v3608_v17, %v3612_v21  ;;  %v3657_v21 = vld [vmem:[#allocation13 + $0x1c8] sm:$0xff] }
 0x484   :  { %3499 = vmatpush1.bf16.msra.mxu1 %v7281_v41  ;;  %v6217_v41 = vcombine.low %v3609_v22, %v3613_v23  ;;  %v3661_v22 = vld [vmem:[#allocation13 + $0x1e8] sm:$0xff] }
 0x485   :  { %3500 = vmatprep.subr.bf16.mxu1 %v7289_v42 }
 0x488   :  { %3501 = vmatpush1.bf16.msra.mxu1 %v7287_v43  ;;  %v6224_v43 = vcombine.high %v3616_v35, %v3620_v26 }
 0x489   :  { %3502 = vmatprep.subr.bf16.mxu1 %v7295_v18  ;;  %v6226_v18 = vcombine.high %v3617_v27, %v3621_v37  ;;  %v3676_v27 = vld [vmem:[#allocation13 + $0x260] sm:$0xff]  ;;  %v3673_v37 = vld [vmem:[#allocation13 + $0x248] sm:$0xff] }
 0x48c   :  { %3503 = vmatpush1.bf16.msra.mxu1 %v7293_v45  ;;  %v3624_v45 = vld [vmem:[#allocation13 + $0xc0] sm:$0xff] }
 0x48d   :  { %3504 = vmatprep.subr.bf16.mxu1 %v7301_v46  ;;  %v3628_v46 = vld [vmem:[#allocation13 + $0xe0] sm:$0xff] }
 0x48e   :  { %v6231_v56 = vcombine.low %v3624_v45, %v3628_v46 }
 0x490   :  { %3505 = vmatpush1.bf16.msra.mxu1 %v7299_v16  ;;  %v3625_v16 = vld [vmem:[#allocation13 + $0xc8] sm:$0xff] }
 0x491   :  { %3506 = vmatprep.subr.bf16.mxu1 %v7307_v44  ;;  %v3629_v44 = vld [vmem:[#allocation13 + $0xe8] sm:$0xff] }
 0x492   :  { %v6234_v51 = vcombine.high %v3625_v16, %v3629_v44 }
 0x494   :  { %3507 = vmatpush1.bf16.msra.mxu1 %v7305_v48  ;;  %v6223_v48 = vcombine.low %v3616_v35, %v3620_v26  ;;  %v3672_v26 = vld [vmem:[#allocation13 + $0x240] sm:$0xff] }
 0x495   :  { %3508 = vmatprep.subr.bf16.mxu1 %v7313_v50  ;;  %v6232_v50 = vcombine.high %v3624_v45, %v3628_v46  ;;  %v3681_v45 = vld [vmem:[#allocation13 + $0x288] sm:$0xff] }
 0x496   :  { %v3685_v46 = vld [vmem:[#allocation13 + $0x2a8] sm:$0xff] }
 0x498   :  { %3509 = vmatpush1.bf16.msra.mxu1 %v7311_v52  ;;  %v3632_v52 = vld [vmem:[#allocation13 + $0x100] sm:$0xff] }
 0x499   :  { %5178 = vmatprep.subr.bf16.mxu1 %v6208_v58  ;;  %v6240_v58 = vcombine.high %v3632_v52, %v3636_v53 }
 0x52e   :  { %v3045_v1 = vpop.f32.mrb[16].mxu1 }
 0x52f   :  { %v3046_v2 = vadd.f32 %v3045_v1, %v2924_v63  ;;  %v3047_v3 = vpop.f32.mrb[17].mxu1  ;;  %v6241_v1 = vcombine.low %v3633_v54, %v3637_v55  ;;  %v6289_v54 = vcombine.low %v3681_v45, %v3685_v46 }
 0x530   :  { %v3048_v4 = vadd.f32 %v3047_v3, %v2928_v0  ;;  %v3049_v5 = vpop.f32.mrb[18].mxu1 }
 0x531   :  { %v3050_v6 = vadd.f32 %v3049_v5, %v2924_v63  ;;  %v3051_v7 = vpop.f32.mrb[19].mxu1  ;;  %v3062_v12 = vmax.f32 %v3046_v2, 0.0  ;;  %v3652_v5 = vld [vmem:[#allocation13 + $0x1a0] sm:$0xff] }
 0x532   :  { %v3052_v8 = vadd.f32 %v3051_v7, %v2928_v0  ;;  %v3063_v19 = vmax.f32 %v3048_v4, 0.0  ;;  %v3648_v4 = vld [vmem:[#allocation13 + $0x180] sm:$0xff]  ;;  %v3653_v7 = vld [vmem:[#allocation13 + $0x1a8] sm:$0xff] }
 0x533   :  { %v3064_v15 = vmax.f32 %v3050_v6, 0.0  ;;  %v3649_v6 = vld [vmem:[#allocation13 + $0x188] sm:$0xff]  ;;  %v6255_v23 = vcombine.low %v3648_v4, %v3652_v5 }
 0x534   :  { %v3065_v20 = vmax.f32 %v3052_v8, 0.0  ;;  %v6258_v17 = vcombine.high %v3649_v6, %v3653_v7 }
 0x535   :  { %v3068_v24 = vpack.c.bf16 %v3064_v15, %v3062_v12  ;;  %v6256_v15 = vcombine.high %v3648_v4, %v3652_v5  ;;  %v3709_v4 = vld [vmem:[#allocation13 + $0x368] sm:$0xff] }
 0x536   :  { %v3069_v25 = vpack.c.bf16 %v3065_v20, %v3063_v19  ;;  %v3055_v28 = vpop.f32.mrb[20].mxu1  ;;  %v3656_v19 = vld [vmem:[#allocation13 + $0x1c0] sm:$0xff] }
 0x537   :  { %v3056_v29 = vadd.f32 %v3055_v28, %v2924_v63  ;;  %v3057_v30 = vpop.f32.mrb[21].mxu1  ;;  %v3645_v63 = vld [vmem:[#allocation13 + $0x168] sm:$0xff]  ;;  %v3660_v20 = vld [vmem:[#allocation13 + $0x1e0] sm:$0xff]  ;;  %v6266_v28 = vcombine.high %v3657_v21, %v3661_v22 }
 0x538   :  { %v3058_v32 = vadd.f32 %v3057_v30, %v2928_v0  ;;  %v3059_v34 = vpop.f32.mrb[22].mxu1  ;;  %3510 = vmatprep.mubr.bf16.mxu1 %v3069_v25  ;;  %3561 = vmatprep.mubr.bf16.mxu0 %v3069_v25  ;;  %v6239_v0 = vcombine.low %v3632_v52, %v3636_v53  ;;  %v6250_v3 = vcombine.high %v3641_v62, %v3645_v63  ;;  %v3668_v30 = vld [vmem:[#allocation13 + $0x220] sm:$0xff]  ;;  %v3693_v52 = vld [vmem:[#allocation13 + $0x2e8] sm:$0xff] }
 0x539   :  { %v3060_v36 = vpop.f32.mrb[23].mxu1  ;;  %3511 = vmatmul.mubr.bf16.vlgmr.msra.gmra.mrb[24].mxu1 %v3068_v24  ;;  %3562 = vmatmul.mubr.bf16.vlgmr.msra.gmra.mrb[16].mxu0 %v3068_v24  ;;  %v3066_v39 = vmax.f32 %v3056_v29, 0.0  ;;  %v6249_v12 = vcombine.low %v3641_v62, %v3645_v63  ;;  %v6257_v24 = vcombine.low %v3649_v6, %v3653_v7  ;;  %v6264_v25 = vcombine.high %v3656_v19, %v3660_v20  ;;  %v3664_v29 = vld [vmem:[#allocation13 + $0x200] sm:$0xff] }
 0x53a   :  { %v3067_v38 = vmax.f32 %v3058_v32, 0.0  ;;  %5179 = vmatpush1.bf16.msra.mxu1 %v6207_v57  ;;  %5281 = vmatpush1.bf16.msra.mxu0 %v6209_v60  ;;  %v6233_v57 = vcombine.low %v3625_v16, %v3629_v44  ;;  %v3640_v60 = vld [vmem:[#allocation13 + $0x140] sm:$0xff]  ;;  %v6263_v32 = vcombine.low %v3656_v19, %v3660_v20  ;;  %v6265_v34 = vcombine.low %v3657_v21, %v3661_v22  ;;  %v3713_v20 = vld [vmem:[#allocation13 + $0x388] sm:$0xff] }
 0x53b   :  { %5180 = vmatprep.subr.bf16.mxu1 %v6216_v31  ;;  %5282 = vmatprep.subr.bf16.mxu0 %v6218_v33  ;;  %v3070_v47 = vpack.c.bf16 %v3066_v39, %v3066_v39  ;;  %v6248_v2 = vcombine.high %v3640_v60, %v3644_v61  ;;  %v6247_v8 = vcombine.low %v3640_v60, %v3644_v61  ;;  %v3665_v31 = vld [vmem:[#allocation13 + $0x208] sm:$0xff]  ;;  %v3716_v19 = vld [vmem:[#allocation13 + $0x3a0] sm:$0xff] }
 0x53c   :  { %v3071_v42 = vpack.c.bf16 %v3067_v38, %v3067_v38  ;;  %v3669_v33 = vld [vmem:[#allocation13 + $0x228] sm:$0xff]  ;;  %v6272_v35 = vcombine.high %v3664_v29, %v3668_v30  ;;  %v6271_v39 = vcombine.low %v3664_v29, %v3668_v30  ;;  %v6279_v16 = vcombine.low %v3672_v26, %v3676_v27  ;;  %v3724_v29 = vld [vmem:[#allocation13 + $0x3e0] sm:$0xff] }
 0x53d   :  { %v6274_v36 = vcombine.high %v3665_v31, %v3669_v33  ;;  %v3677_v38 = vld [vmem:[#allocation13 + $0x268] sm:$0xff] }
 0x53e   :  { %3520 = vmatprep.mubr.bf16.mxu1 %v3071_v42  ;;  %3571 = vmatprep.mubr.bf16.mxu0 %v3071_v42  ;;  %v6282_v42 = vcombine.high %v3673_v37, %v3677_v38  ;;  %v6281_v44 = vcombine.low %v3673_v37, %v3677_v38  ;;  %v3701_v60 = vld [vmem:[#allocation13 + $0x328] sm:$0xff] }
 0x53f   :  { %5181 = vmatpush1.bf16.msra.mxu1 %v6215_v40  ;;  %5283 = vmatpush1.bf16.msra.mxu0 %v6217_v41  ;;  %v6273_v40 = vcombine.low %v3665_v31, %v3669_v33  ;;  %v6280_v41 = vcombine.high %v3672_v26, %v3676_v27  ;;  %v3717_v22 = vld [vmem:[#allocation13 + $0x3a8] sm:$0xff]  ;;  %v7873_v26 = vld [vmem:[#allocation13 + $0x420] sm:$0xff] }
 0x540   :  { %5182 = vmatprep.subr.bf16.mxu1 %v6224_v43  ;;  %5284 = vmatprep.subr.bf16.mxu0 %v6226_v18  ;;  %v3680_v43 = vld [vmem:[#allocation13 + $0x280] sm:$0xff]  ;;  %v3721_v30 = vld [vmem:[#allocation13 + $0x3c8] sm:$0xff] }
 0x541   :  { %3521 = vmatmul.mubr.bf16.gmra.mrb[28].mxu1 %v3070_v47  ;;  %3572 = vmatmul.mubr.bf16.gmra.mrb[20].mxu0 %v3070_v47  ;;  %v3684_v18 = vld [vmem:[#allocation13 + $0x2a0] sm:$0xff]  ;;  %v3725_v33 = vld [vmem:[#allocation13 + $0x3e8] sm:$0xff] }
 0x542   :  { %v6288_v47 = vcombine.high %v3680_v43, %v3684_v18  ;;  %v6287_v53 = vcombine.low %v3680_v43, %v3684_v18  ;;  %v7875_v27 = vld [vmem:[#allocation13 + $0x408] sm:$0xff] }
 0x543   :  { %5183 = vmatpush1.bf16.msra.mxu1 %v6223_v48  ;;  %5285 = vmatpush1.bf16.msra.mxu0 %v6225_v49  ;;  %v6290_v48 = vcombine.high %v3681_v45, %v3685_v46  ;;  %v3688_v49 = vld [vmem:[#allocation13 + $0x2c0] sm:$0xff]  ;;  %v7879_v38 = vld [vmem:[#allocation13 + $0x428] sm:$0xff] }
 0x544   :  { %5184 = vmatprep.subr.bf16.mxu1 %v6232_v50  ;;  %5286 = vmatprep.subr.bf16.mxu0 %v6234_v51  ;;  %v3692_v50 = vld [vmem:[#allocation13 + $0x2e0] sm:$0xff]  ;;  %v3689_v51 = vld [vmem:[#allocation13 + $0x2c8] sm:$0xff] }
 0x545   :  { %v6296_v55 = vcombine.high %v3688_v49, %v3692_v50  ;;  %v6295_v61 = vcombine.low %v3688_v49, %v3692_v50  ;;  %v6297_v62 = vcombine.low %v3689_v51, %v3693_v52 }
 0x547   :  { %5185 = vmatpush1.bf16.msra.mxu1 %v6231_v56  ;;  %5287 = vmatpush1.bf16.msra.mxu0 %v6233_v57  ;;  %v6298_v56 = vcombine.high %v3689_v51, %v3693_v52  ;;  %v3696_v57 = vld [vmem:[#allocation13 + $0x300] sm:$0xff] }
 0x548   :  { %5186 = vmatprep.subr.bf16.mxu1 %v6240_v58  ;;  %5288 = vmatprep.subr.bf16.mxu0 %v6242_v59  ;;  %v3700_v58 = vld [vmem:[#allocation13 + $0x320] sm:$0xff]  ;;  %v3697_v59 = vld [vmem:[#allocation13 + $0x308] sm:$0xff] }
 0x549   :  { %v6304_v63 = vcombine.high %v3696_v57, %v3700_v58  ;;  %v6303_v5 = vcombine.low %v3696_v57, %v3700_v58  ;;  %v6305_v6 = vcombine.low %v3697_v59, %v3701_v60 }
 0x54b   :  { %5187 = vmatpush1.bf16.msra.mxu1 %v6239_v0  ;;  %5289 = vmatpush1.bf16.msra.mxu0 %v6241_v1  ;;  %v6306_v0 = vcombine.high %v3697_v59, %v3701_v60  ;;  %v3704_v1 = vld [vmem:[#allocation13 + $0x340] sm:$0xff] }
 0x54c   :  { %5188 = vmatprep.subr.bf16.mxu1 %v6248_v2  ;;  %5290 = vmatprep.subr.bf16.mxu0 %v6250_v3  ;;  %v3708_v2 = vld [vmem:[#allocation13 + $0x360] sm:$0xff]  ;;  %v3705_v3 = vld [vmem:[#allocation13 + $0x348] sm:$0xff] }
 0x54d   :  { %v6312_v7 = vcombine.high %v3704_v1, %v3708_v2 }
 0x54f   :  { %5189 = vmatpush1.bf16.msra.mxu1 %v6247_v8  ;;  %5291 = vmatpush1.bf16.msra.mxu0 %v6249_v12  ;;  %v6314_v8 = vcombine.high %v3705_v3, %v3709_v4  ;;  %v6311_v12 = vcombine.low %v3704_v1, %v3708_v2  ;;  %v3736_v1 = vld [vmem:[#allocation13 + $0x440] sm:$0xff] }
 0x550   :  { %5190 = vmatprep.subr.bf16.mxu1 %v6256_v15  ;;  %5292 = vmatprep.subr.bf16.mxu0 %v6258_v17  ;;  %v6313_v15 = vcombine.low %v3705_v3, %v3709_v4  ;;  %v3712_v17 = vld [vmem:[#allocation13 + $0x380] sm:$0xff] }
 0x551   :  { %v6320_v21 = vcombine.high %v3712_v17, %v3716_v19  ;;  %v3740_v2 = vld [vmem:[#allocation13 + $0x460] sm:$0xff] }
 0x553   :  { %5191 = vmatpush1.bf16.msra.mxu1 %v6255_v23  ;;  %5293 = vmatpush1.bf16.msra.mxu0 %v6257_v24  ;;  %v6319_v23 = vcombine.low %v3712_v17, %v3716_v19  ;;  %v6321_v24 = vcombine.low %v3713_v20, %v3717_v22 }
 0x554   :  { %5192 = vmatprep.subr.bf16.mxu1 %v6264_v25  ;;  %5294 = vmatprep.subr.bf16.mxu0 %v6266_v28  ;;  %v6322_v25 = vcombine.high %v3713_v20, %v3717_v22  ;;  %v3720_v28 = vld [vmem:[#allocation13 + $0x3c0] sm:$0xff] }
 0x555   :  { %v6328_v31 = vcombine.high %v3720_v28, %v3724_v29 }
 0x557   :  { %5193 = vmatpush1.bf16.msra.mxu1 %v6263_v32  ;;  %5295 = vmatpush1.bf16.msra.mxu0 %v6265_v34  ;;  %v6327_v32 = vcombine.low %v3720_v28, %v3724_v29  ;;  %v6329_v34 = vcombine.low %v3721_v30, %v3725_v33 }
 0x558   :  { %5194 = vmatprep.subr.bf16.mxu1 %v6272_v35  ;;  %5296 = vmatprep.subr.bf16.mxu0 %v6274_v36  ;;  %v6330_v35 = vcombine.high %v3721_v30, %v3725_v33  ;;  %v7871_v36 = vld [vmem:[#allocation13 + $0x400] sm:$0xff] }
 0x559   :  { %v6336_v37 = vcombine.high %v7871_v36, %v7873_v26  ;;  %v3744_v33 = vld [vmem:[#allocation13 + $0x480] sm:$0xff] }
 0x55b   :  { %5195 = vmatpush1.bf16.msra.mxu1 %v6271_v39  ;;  %5297 = vmatpush1.bf16.msra.mxu0 %v6273_v40  ;;  %v6335_v39 = vcombine.low %v7871_v36, %v7873_v26  ;;  %v6337_v40 = vcombine.low %v7875_v27, %v7879_v38  ;;  %v3745_v36 = vld [vmem:[#allocation13 + $0x488] sm:$0xff] }
 0x55c   :  { %5196 = vmatprep.subr.bf16.mxu1 %v6280_v41  ;;  %5298 = vmatprep.subr.bf16.mxu0 %v6282_v42  ;;  %v6338_v41 = vcombine.high %v7875_v27, %v7879_v38  ;;  %v3136_v42 = vld [vmem:[%s8126_s10] sm:$0xf]  ;;  %v3749_v26 = vld [vmem:[#allocation13 + $0x4a8] sm:$0xff] }
 0x55d   :  { %v3141_v43 = vrot.slane %v3136_v42, %v7819_v10  ;;  %v7892_v18 = vrot.slane %v3136_v42, %v7822_v11  ;;  %v3145_v45 = vrot.slane %v3136_v42, %v7828_v13  ;;  %v7896_v46 = vrot.slane %v3136_v42, %v7831_v14 }
 0x55f   :  { %5197 = vmatpush1.bf16.msra.mxu1 %v6279_v16  ;;  %5299 = vmatpush1.bf16.msra.mxu0 %v6281_v44 }
 0x560   :  { %5198 = vmatprep.subr.bf16.mxu1 %v6288_v47  ;;  %5300 = vmatprep.subr.bf16.mxu0 %v6290_v48 }
 0x563   :  { %5199 = vmatpush1.bf16.msra.mxu1 %v6287_v53  ;;  %5301 = vmatpush1.bf16.msra.mxu0 %v6289_v54 }
 0x564   :  { %5200 = vmatprep.subr.bf16.mxu1 %v6296_v55  ;;  %5302 = vmatprep.subr.bf16.mxu0 %v6298_v56 }
 0x567   :  { %5201 = vmatpush1.bf16.msra.mxu1 %v6295_v61  ;;  %5303 = vmatpush1.bf16.msra.mxu0 %v6297_v62 }
 0x568   :  { %5202 = vmatprep.subr.bf16.mxu1 %v6304_v63  ;;  %5304 = vmatprep.subr.bf16.mxu0 %v6306_v0 }
 0x56b   :  { %5203 = vmatpush1.bf16.msra.mxu1 %v6303_v5  ;;  %5305 = vmatpush1.bf16.msra.mxu0 %v6305_v6 }
 0x56c   :  { %5204 = vmatprep.subr.bf16.mxu1 %v6312_v7  ;;  %5306 = vmatprep.subr.bf16.mxu0 %v6314_v8  ;;  %v3737_v7 = vld [vmem:[#allocation13 + $0x448] sm:$0xff] }
 0x56d   :  { %v3741_v8 = vld [vmem:[#allocation13 + $0x468] sm:$0xff] }
 0x56e   :  { %v6346_v28 = vcombine.high %v3737_v7, %v3741_v8  ;;  %v6345_v38 = vcombine.low %v3737_v7, %v3741_v8  ;;  %v3781_v7 = vld [vmem:[#allocation13 + $0x5a8] sm:$0xff] }
 0x56f   :  { %5205 = vmatpush1.bf16.msra.mxu1 %v6311_v12  ;;  %5307 = vmatpush1.bf16.msra.mxu0 %v6313_v15 }
 0x570   :  { %5206 = vmatprep.subr.bf16.mxu1 %v6320_v21  ;;  %5308 = vmatprep.subr.bf16.mxu0 %v6322_v25  ;;  %v6344_v25 = vcombine.high %v3736_v1, %v3740_v2 }
 0x573   :  { %5207 = vmatpush1.bf16.msra.mxu1 %v6319_v23  ;;  %5309 = vmatpush1.bf16.msra.mxu0 %v6321_v24 }
 0x574   :  { %5208 = vmatprep.subr.bf16.mxu1 %v6328_v31  ;;  %5310 = vmatprep.subr.bf16.mxu0 %v6330_v35  ;;  %v3748_v35 = vld [vmem:[#allocation13 + $0x4a0] sm:$0xff] }
 0x577   :  { %5209 = vmatpush1.bf16.msra.mxu1 %v6327_v32  ;;  %5311 = vmatpush1.bf16.msra.mxu0 %v6329_v34 }
 0x578   :  { %5229 = vmatprep.subr.bf16.mxu1 %v6336_v37  ;;  %5331 = vmatprep.subr.bf16.mxu0 %v6338_v41  ;;  %v6343_v37 = vcombine.low %v3736_v1, %v3740_v2 }
 0x60c   :  { %v3512_v16 = vpop.f32.mrb[24].mxu1  ;;  %v3563_v44 = vpop.f32.mrb[16].mxu0 }
 0x60d   :  { %v3513_v47 = vadd.f32 %v3512_v16, %v3141_v43  ;;  %v3564_v48 = vadd.f32 %v3563_v44, %v7892_v18  ;;  %v3514_v49 = vpop.f32.mrb[25].mxu1  ;;  %v3565_v50 = vpop.f32.mrb[17].mxu0  ;;  %v3752_v16 = vld [vmem:[#allocation13 + $0x4c0] sm:$0xff] }
 0x60e   :  { %v3515_v51 = vadd.f32 %v3514_v49, %v3145_v45  ;;  %v3566_v52 = vadd.f32 %v3565_v50, %v7896_v46  ;;  %v3516_v53 = vpop.f32.mrb[26].mxu1  ;;  %v3567_v54 = vpop.f32.mrb[18].mxu0  ;;  %v3756_v44 = vld [vmem:[#allocation13 + $0x4e0] sm:$0xff]  ;;  %v6351_v49 = vcombine.low %v3744_v33, %v3748_v35  ;;  %v6353_v50 = vcombine.low %v3745_v36, %v3749_v26 }
 0x60f   :  { %v3517_v55 = vadd.f32 %v3516_v53, %v3141_v43  ;;  %v3568_v56 = vadd.f32 %v3567_v54, %v7892_v18  ;;  %v3518_v57 = vpop.f32.mrb[27].mxu1  ;;  %v3569_v58 = vpop.f32.mrb[19].mxu0  ;;  %v3580_v61 = vmax.f32 %v3513_v47, 0.0  ;;  %v3582_v62 = vmax.f32 %v3564_v48, 0.0  ;;  %v3753_v47 = vld [vmem:[#allocation13 + $0x4c8] sm:$0xff]  ;;  %v3764_v53 = vld [vmem:[#allocation13 + $0x520] sm:$0xff] }
 0x610   :  { %v3519_v59 = vadd.f32 %v3518_v57, %v3145_v45  ;;  %v3570_v60 = vadd.f32 %v3569_v58, %v7896_v46  ;;  %v3581_v3 = vmax.f32 %v3515_v51, 0.0  ;;  %v3583_v4 = vmax.f32 %v3566_v52, 0.0  ;;  %v3757_v48 = vld [vmem:[#allocation13 + $0x4e8] sm:$0xff] }
 0x611   :  { %v3584_v63 = vmax.f32 %v3517_v55, 0.0  ;;  %v3586_v0 = vmax.f32 %v3568_v56, 0.0  ;;  %v6362_v52 = vcombine.high %v3753_v47, %v3757_v48  ;;  %v3761_v54 = vld [vmem:[#allocation13 + $0x508] sm:$0xff]  ;;  %v6359_v56 = vcombine.low %v3752_v16, %v3756_v44 }
 0x612   :  { %v3585_v5 = vmax.f32 %v3519_v59, 0.0  ;;  %v3587_v6 = vmax.f32 %v3570_v60, 0.0  ;;  %v3765_v55 = vld [vmem:[#allocation13 + $0x528] sm:$0xff]  ;;  %v6361_v57 = vcombine.low %v3753_v47, %v3757_v48  ;;  %v3768_v60 = vld [vmem:[#allocation13 + $0x540] sm:$0xff] }
 0x613   :  { %v7902_v12 = vpack.c.bf16 %v3584_v63, %v3580_v61  ;;  %v7904_v15 = vpack.c.bf16 %v3586_v0, %v3582_v62  ;;  %v6370_v59 = vcombine.high %v3761_v54, %v3765_v55  ;;  %v3772_v61 = vld [vmem:[#allocation13 + $0x560] sm:$0xff]  ;;  %v3769_v62 = vld [vmem:[#allocation13 + $0x548] sm:$0xff]  ;;  %v6369_v1 = vcombine.low %v3761_v54, %v3765_v55 }
 0x614   :  { %v7906_v17 = vpack.c.bf16 %v3585_v5, %v3581_v3  ;;  %v7908_v19 = vpack.c.bf16 %v3587_v6, %v3583_v4  ;;  %v3522_v20 = vpop.f32.mrb[28].mxu1  ;;  %v7910_v21 = vpop.f32.mrb[20].mxu0  ;;  %v3773_v63 = vld [vmem:[#allocation13 + $0x568] sm:$0xff]  ;;  %v6376_v2 = vcombine.high %v3768_v60, %v3772_v61  ;;  %v3776_v4 = vld [vmem:[#allocation13 + $0x580] sm:$0xff]  ;;  %v6375_v8 = vcombine.low %v3768_v60, %v3772_v61 }
 0x615   :  { %v3523_v22 = vadd.f32 %v3522_v20, %v3141_v43  ;;  %v3524_v23 = vpop.f32.mrb[29].mxu1  ;;  %v7912_v24 = vpop.f32.mrb[21].mxu0  ;;  %v6352_v43 = vcombine.high %v3744_v33, %v3748_v35  ;;  %v6378_v3 = vcombine.high %v3769_v62, %v3773_v63  ;;  %v3780_v5 = vld [vmem:[#allocation13 + $0x5a0] sm:$0xff]  ;;  %v3777_v6 = vld [vmem:[#allocation13 + $0x588] sm:$0xff]  ;;  %v6377_v20 = vcombine.low %v3769_v62, %v3773_v63 }
 0x616   :  { %v3525_v29 = vadd.f32 %v3524_v23, %v3145_v45  ;;  %v3526_v30 = vpop.f32.mrb[30].mxu1  ;;  %v3577_v31 = vpop.f32.mrb[22].mxu0  ;;  %5210 = vmatprep.mubr.bf16.mxu1 %v7906_v17  ;;  %5312 = vmatprep.mubr.bf16.mxu0 %v7906_v17  ;;  %v6354_v45 = vcombine.high %v3745_v36, %v3749_v26  ;;  %v6386_v23 = vcombine.high %v3777_v6, %v3781_v7  ;;  %v3792_v35 = vld [vmem:[#allocation13 + $0x600] sm:$0xff]  ;;  %v3793_v26 = vld [vmem:[#allocation13 + $0x608] sm:$0xff] }
 0x617   :  { %v3527_v32 = vpop.f32.mrb[31].mxu1  ;;  %v3578_v34 = vpop.f32.mrb[23].mxu0  ;;  %5211 = vmatmul.mubr.bf16.vlgmr.msra.gmra.mrb[32].mxu1 %v7902_v12  ;;  %5313 = vmatmul.mubr.bf16.vlgmr.msra.gmra.mrb[24].mxu0 %v7902_v12  ;;  %v3588_v41 = vmax.f32 %v3523_v22, 0.0  ;;  %v6384_v22 = vcombine.high %v3776_v4, %v3780_v5  ;;  %v3789_v30 = vld [vmem:[#allocation13 + $0x5e8] sm:$0xff]  ;;  %v6383_v31 = vcombine.low %v3776_v4, %v3780_v5  ;;  %v6385_v33 = vcombine.low %v3777_v6, %v3781_v7  ;;  %v3796_v36 = vld [vmem:[#allocation13 + $0x620] sm:$0xff] }
 0x618   :  { %v3589_v27 = vmax.f32 %v3525_v29, 0.0  ;;  %5230 = vmatpush1.bf16.msra.mxu1 %v6335_v39  ;;  %5332 = vmatpush1.bf16.msra.mxu0 %v6337_v40  ;;  %v3760_v39 = vld [vmem:[#allocation13 + $0x500] sm:$0xff]  ;;  %v6360_v40 = vcombine.high %v3752_v16, %v3756_v44  ;;  %v3785_v29 = vld [vmem:[#allocation13 + $0x5c8] sm:$0xff]  ;;  %v6399_v48 = vcombine.low %v3792_v35, %v3796_v36 }
 0x619   :  { %5231 = vmatprep.subr.bf16.mxu1 %v6344_v25  ;;  %5333 = vmatprep.subr.bf16.mxu0 %v6346_v28  ;;  %v7920_v51 = vpack.c.bf16 %v3588_v41, %v3588_v41  ;;  %v6368_v58 = vcombine.high %v3760_v39, %v3764_v53  ;;  %v6367_v0 = vcombine.low %v3760_v39, %v3764_v53  ;;  %v3784_v25 = vld [vmem:[#allocation13 + $0x5c0] sm:$0xff]  ;;  %v3801_v44 = vld [vmem:[#allocation13 + $0x648] sm:$0xff] }
 0x61a   :  { %v7918_v42 = vpack.c.bf16 %v3589_v27, %v3589_v27  ;;  %v3788_v28 = vld [vmem:[#allocation13 + $0x5e0] sm:$0xff]  ;;  %v6394_v34 = vcombine.high %v3785_v29, %v3789_v30  ;;  %v3797_v27 = vld [vmem:[#allocation13 + $0x628] sm:$0xff]  ;;  %v6400_v41 = vcombine.high %v3792_v35, %v3796_v36 }
 0x61b   :  { %v6392_v32 = vcombine.high %v3784_v25, %v3788_v28  ;;  %v3804_v16 = vld [vmem:[#allocation13 + $0x660] sm:$0xff]  ;;  %v3805_v47 = vld [vmem:[#allocation13 + $0x668] sm:$0xff] }
 0x61c   :  { %5232 = vmatpush1.bf16.msra.mxu1 %v6343_v37  ;;  %5334 = vmatpush1.bf16.msra.mxu0 %v6345_v38  ;;  %v6391_v37 = vcombine.low %v3784_v25, %v3788_v28  ;;  %v6393_v38 = vcombine.low %v3785_v29, %v3789_v30  ;;  %v6410_v39 = vcombine.high %v3801_v44, %v3805_v47  ;;  %v3809_v53 = vld [vmem:[#allocation13 + $0x688] sm:$0xff]  ;;  %v3820_v60 = vld [vmem:[#allocation13 + $0x6e0] sm:$0xff] }
 0x61d   :  { %5220 = vmatprep.mubr.bf16.mxu1 %v7918_v42  ;;  %5322 = vmatprep.mubr.bf16.mxu0 %v7918_v42  ;;  %v3813_v54 = vld [vmem:[#allocation13 + $0x6a8] sm:$0xff]  ;;  %v3828_v4 = vld [vmem:[#allocation13 + $0x720] sm:$0xff] }
 0x61e   :  { %5233 = vmatprep.subr.bf16.mxu1 %v6352_v43  ;;  %5335 = vmatprep.subr.bf16.mxu0 %v6354_v45  ;;  %v6402_v43 = vcombine.high %v3793_v26, %v3797_v27  ;;  %v3800_v45 = vld [vmem:[#allocation13 + $0x640] sm:$0xff]  ;;  %v3817_v61 = vld [vmem:[#allocation13 + $0x6c8] sm:$0xff] }
 0x61f   :  { %5221 = vmatmul.mubr.bf16.gmra.mrb[36].mxu1 %v7920_v51  ;;  %5323 = vmatmul.mubr.bf16.gmra.mrb[28].mxu0 %v7920_v51  ;;  %v6407_v55 = vcombine.low %v3800_v45, %v3804_v16  ;;  %v3821_v62 = vld [vmem:[#allocation13 + $0x6e8] sm:$0xff]  ;;  %v3836_v25 = vld [vmem:[#allocation13 + $0x760] sm:$0xff] }
 0x620   :  { %5234 = vmatpush1.bf16.msra.mxu1 %v6351_v49  ;;  %5336 = vmatpush1.bf16.msra.mxu0 %v6353_v50  ;;  %v6401_v49 = vcombine.low %v3793_v26, %v3797_v27  ;;  %v6408_v50 = vcombine.high %v3800_v45, %v3804_v16  ;;  %v3825_v5 = vld [vmem:[#allocation13 + $0x708] sm:$0xff]  ;;  %v3844_v35 = vld [vmem:[#allocation13 + $0x7a0] sm:$0xff] }
 0x621   :  { %5261 = vmatprep.mubr.bf16.mxu1 %v7908_v19  ;;  %5363 = vmatprep.mubr.bf16.mxu0 %v7908_v19  ;;  %v3829_v6 = vld [vmem:[#allocation13 + $0x728] sm:$0xff]  ;;  %v3852_v45 = vld [vmem:[#allocation13 + $0x7e0] sm:$0xff] }
 0x622   :  { %5235 = vmatprep.subr.bf16.mxu1 %v6360_v40  ;;  %5337 = vmatprep.subr.bf16.mxu0 %v6362_v52  ;;  %v3808_v40 = vld [vmem:[#allocation13 + $0x680] sm:$0xff]  ;;  %v3833_v28 = vld [vmem:[#allocation13 + $0x748] sm:$0xff] }
 0x623   :  { %v3812_v52 = vld [vmem:[#allocation13 + $0x6a0] sm:$0xff]  ;;  %v3837_v29 = vld [vmem:[#allocation13 + $0x768] sm:$0xff] }
 0x624   :  { %5236 = vmatpush1.bf16.msra.mxu1 %v6359_v56  ;;  %5338 = vmatpush1.bf16.msra.mxu0 %v6361_v57  ;;  %v6409_v56 = vcombine.low %v3801_v44, %v3805_v47  ;;  %v6416_v57 = vcombine.high %v3808_v40, %v3812_v52  ;;  %v6415_v63 = vcombine.low %v3808_v40, %v3812_v52  ;;  %v3841_v36 = vld [vmem:[#allocation13 + $0x788] sm:$0xff]  ;;  %v3606_v52 = vld [vmem:[#allocation13 + $0x30] sm:$0xff] }
 0x625   :  { %5237 = vmatprep.subr.bf16.mxu1 %v6368_v58  ;;  %5339 = vmatprep.subr.bf16.mxu0 %v6370_v59  ;;  %v6418_v58 = vcombine.high %v3809_v53, %v3813_v54  ;;  %v3816_v59 = vld [vmem:[#allocation13 + $0x6c0] sm:$0xff]  ;;  %v3845_v26 = vld [vmem:[#allocation13 + $0x7a8] sm:$0xff]  ;;  %v3576_v40 = vadd.f32 %v7912_v24, %v7896_v46  ;;  %v3574_v46 = vadd.f32 %v7910_v21, %v7892_v18 }
 0x626   :  { %v6423_v7 = vcombine.low %v3816_v59, %v3820_v60  ;;  %v3849_v16 = vld [vmem:[#allocation13 + $0x7c8] sm:$0xff] }
 0x627   :  { %v3853_v44 = vld [vmem:[#allocation13 + $0x7e8] sm:$0xff]  ;;  %v3590_v18 = vmax.f32 %v3574_v46, 0.0 }
 0x628   :  { %5238 = vmatpush1.bf16.msra.mxu1 %v6367_v0  ;;  %5340 = vmatpush1.bf16.msra.mxu0 %v6369_v1  ;;  %v6417_v0 = vcombine.low %v3809_v53, %v3813_v54  ;;  %v6424_v1 = vcombine.high %v3816_v59, %v3820_v60  ;;  %v3603_v53 = vld [vmem:[#allocation13 + $0x18] sm:$0xff]  ;;  %v3591_v59 = vmax.f32 %v3576_v40, 0.0  ;;  %v3610_v60 = vld [vmem:[#allocation13 + $0x50] sm:$0xff] }
 0x629   :  { %5239 = vmatprep.subr.bf16.mxu1 %v6376_v2  ;;  %5341 = vmatprep.subr.bf16.mxu0 %v6378_v3  ;;  %v6426_v2 = vcombine.high %v3817_v61, %v3821_v62  ;;  %v3824_v3 = vld [vmem:[#allocation13 + $0x700] sm:$0xff]  ;;  %v3607_v54 = vld [vmem:[#allocation13 + $0x38] sm:$0xff]  ;;  %v3654_v40 = vld [vmem:[#allocation13 + $0x1b0] sm:$0xff] }
 0x62a   :  { %v6431_v30 = vcombine.low %v3824_v3, %v3828_v4 }
 0x62c   :  { %5240 = vmatpush1.bf16.msra.mxu1 %v6375_v8  ;;  %5342 = vmatpush1.bf16.msra.mxu0 %v6377_v20  ;;  %v6425_v8 = vcombine.low %v3817_v61, %v3821_v62  ;;  %v6432_v20 = vcombine.high %v3824_v3, %v3828_v4  ;;  %v3614_v61 = vld [vmem:[#allocation13 + $0x70] sm:$0xff]  ;;  %v3611_v62 = vld [vmem:[#allocation13 + $0x58] sm:$0xff] }
 0x62d   :  { %5241 = vmatprep.subr.bf16.mxu1 %v6384_v22  ;;  %5343 = vmatprep.subr.bf16.mxu0 %v6386_v23  ;;  %v6434_v22 = vcombine.high %v3825_v5, %v3829_v6  ;;  %v3832_v23 = vld [vmem:[#allocation13 + $0x740] sm:$0xff]  ;;  %v3618_v4 = vld [vmem:[#allocation13 + $0x90] sm:$0xff]  ;;  %v6219_v21 = vcombine.low %v3610_v60, %v3614_v61 }
 0x62e   :  { %v6439_v27 = vcombine.low %v3832_v23, %v3836_v25 }
 0x630   :  { %5242 = vmatpush1.bf16.msra.mxu1 %v6383_v31  ;;  %5344 = vmatpush1.bf16.msra.mxu0 %v6385_v33  ;;  %v6433_v31 = vcombine.low %v3825_v5, %v3829_v6  ;;  %v6440_v33 = vcombine.high %v3832_v23, %v3836_v25  ;;  %v3622_v5 = vld [vmem:[#allocation13 + $0xb0] sm:$0xff]  ;;  %v3619_v6 = vld [vmem:[#allocation13 + $0x98] sm:$0xff] }
 0x631   :  { %5243 = vmatprep.subr.bf16.mxu1 %v6392_v32  ;;  %5345 = vmatprep.subr.bf16.mxu0 %v6394_v34  ;;  %v6442_v32 = vcombine.high %v3833_v28, %v3837_v29  ;;  %v3840_v34 = vld [vmem:[#allocation13 + $0x780] sm:$0xff]  ;;  %v3626_v23 = vld [vmem:[#allocation13 + $0xd0] sm:$0xff] }
 0x632   :  { %v6447_v47 = vcombine.low %v3840_v34, %v3844_v35  ;;  %v3630_v25 = vld [vmem:[#allocation13 + $0xf0] sm:$0xff] }
 0x634   :  { %5244 = vmatpush1.bf16.msra.mxu1 %v6391_v37  ;;  %5346 = vmatpush1.bf16.msra.mxu0 %v6393_v38  ;;  %v6441_v37 = vcombine.low %v3833_v28, %v3837_v29  ;;  %v6448_v38 = vcombine.high %v3840_v34, %v3844_v35  ;;  %v3627_v28 = vld [vmem:[#allocation13 + $0xd8] sm:$0xff]  ;;  %v3634_v35 = vld [vmem:[#allocation13 + $0x110] sm:$0xff] }
 0x635   :  { %5245 = vmatprep.subr.bf16.mxu1 %v6400_v41  ;;  %5347 = vmatprep.subr.bf16.mxu0 %v6402_v43  ;;  %v6450_v41 = vcombine.high %v3841_v36, %v3845_v26  ;;  %v3848_v43 = vld [vmem:[#allocation13 + $0x7c0] sm:$0xff]  ;;  %v3631_v29 = vld [vmem:[#allocation13 + $0xf8] sm:$0xff] }
 0x636   :  { %v6238_v34 = vcombine.high %v3627_v28, %v3631_v29 }
 0x638   :  { %5246 = vmatpush1.bf16.msra.mxu1 %v6399_v48  ;;  %5348 = vmatpush1.bf16.msra.mxu0 %v6401_v49  ;;  %v6449_v48 = vcombine.low %v3841_v36, %v3845_v26  ;;  %v6456_v49 = vcombine.high %v3848_v43, %v3852_v45  ;;  %v3638_v36 = vld [vmem:[#allocation13 + $0x130] sm:$0xff]  ;;  %v3635_v26 = vld [vmem:[#allocation13 + $0x118] sm:$0xff] }
 0x639   :  { %5247 = vmatprep.subr.bf16.mxu1 %v6408_v50  ;;  %5349 = vmatprep.subr.bf16.mxu0 %v6410_v39  ;;  %v6458_v50 = vcombine.high %v3849_v16, %v3853_v44  ;;  %v3602_v39 = vld [vmem:[#allocation13 + $0x10] sm:$0xff] }
 0x63a   :  { %v6211_v24 = vcombine.low %v3602_v39, %v3606_v52 }
 0x63c   :  { %5248 = vmatpush1.bf16.msra.mxu1 %v6407_v55  ;;  %5350 = vmatpush1.bf16.msra.mxu0 %v6409_v56  ;;  %v6455_v55 = vcombine.low %v3848_v43, %v3852_v45  ;;  %v6457_v56 = vcombine.low %v3849_v16, %v3853_v44  ;;  %v3642_v45 = vld [vmem:[#allocation13 + $0x150] sm:$0xff]  ;;  %v3643_v44 = vld [vmem:[#allocation13 + $0x158] sm:$0xff] }
 0x63d   :  { %5249 = vmatprep.subr.bf16.mxu1 %v6416_v57  ;;  %5351 = vmatprep.subr.bf16.mxu0 %v6418_v58  ;;  %v6212_v57 = vcombine.high %v3602_v39, %v3606_v52  ;;  %v6214_v58 = vcombine.high %v3603_v53, %v3607_v54  ;;  %v3646_v16 = vld [vmem:[#allocation13 + $0x170] sm:$0xff]  ;;  %v3651_v52 = vld [vmem:[#allocation13 + $0x198] sm:$0xff] }
 0x63e   :  { %v3650_v39 = vld [vmem:[#allocation13 + $0x190] sm:$0xff] }
 0x640   :  { %5250 = vmatpush1.bf16.msra.mxu1 %v6415_v63  ;;  %5352 = vmatpush1.bf16.msra.mxu0 %v6417_v0  ;;  %v3615_v63 = vld [vmem:[#allocation13 + $0x78] sm:$0xff]  ;;  %v6213_v0 = vcombine.low %v3603_v53, %v3607_v54  ;;  %v6251_v54 = vcombine.low %v3642_v45, %v3646_v16 }
 0x641   :  { %5251 = vmatprep.subr.bf16.mxu1 %v6424_v1  ;;  %5353 = vmatprep.subr.bf16.mxu0 %v6426_v2  ;;  %v7932_v1 = vpack.c.bf16 %v3591_v59, %v3591_v59  ;;  %v6220_v2 = vcombine.high %v3610_v60, %v3614_v61  ;;  %v6222_v3 = vcombine.high %v3611_v62, %v3615_v63  ;;  %v3655_v53 = vld [vmem:[#allocation13 + $0x1b8] sm:$0xff]  ;;  %v3662_v59 = vld [vmem:[#allocation13 + $0x1f0] sm:$0xff] }
 0x642   :  { %v3659_v60 = vld [vmem:[#allocation13 + $0x1d8] sm:$0xff] }
 0x643   :  { %v3663_v61 = vld [vmem:[#allocation13 + $0x1f8] sm:$0xff] }
 0x644   :  { %5252 = vmatpush1.bf16.msra.mxu1 %v6423_v7  ;;  %5354 = vmatpush1.bf16.msra.mxu0 %v6425_v8  ;;  %v3623_v7 = vld [vmem:[#allocation13 + $0xb8] sm:$0xff]  ;;  %v6221_v8 = vcombine.low %v3611_v62, %v3615_v63  ;;  %v6259_v62 = vcombine.low %v3650_v39, %v3654_v40  ;;  %v6261_v63 = vcombine.low %v3651_v52, %v3655_v53 }
 0x645   :  { %5253 = vmatprep.subr.bf16.mxu1 %v6432_v20  ;;  %5355 = vmatprep.subr.bf16.mxu0 %v6434_v22  ;;  %v6228_v20 = vcombine.high %v3618_v4, %v3622_v5  ;;  %v6230_v22 = vcombine.high %v3619_v6, %v3623_v7 }
 0x648   :  { %5254 = vmatpush1.bf16.msra.mxu1 %v6431_v30  ;;  %5356 = vmatpush1.bf16.msra.mxu0 %v6433_v31  ;;  %v7938_v30 = vpack.c.bf16 %v3590_v18, %v3590_v18  ;;  %v6227_v31 = vcombine.low %v3618_v4, %v3622_v5  ;;  %v3671_v4 = vld [vmem:[#allocation13 + $0x238] sm:$0xff] }
 0x649   :  { %5255 = vmatprep.subr.bf16.mxu1 %v6440_v33  ;;  %5357 = vmatprep.subr.bf16.mxu0 %v6442_v32  ;;  %v6229_v33 = vcombine.low %v3619_v6, %v3623_v7  ;;  %v6236_v32 = vcombine.high %v3626_v23, %v3630_v25  ;;  %v6269_v6 = vcombine.low %v3659_v60, %v3663_v61 }
 0x64c   :  { %5256 = vmatpush1.bf16.msra.mxu1 %v6439_v27  ;;  %5358 = vmatpush1.bf16.msra.mxu0 %v6441_v37  ;;  %v3639_v27 = vld [vmem:[#allocation13 + $0x138] sm:$0xff]  ;;  %v6235_v37 = vcombine.low %v3626_v23, %v3630_v25 }
 0x64d   :  { %5257 = vmatprep.subr.bf16.mxu1 %v6448_v38  ;;  %5359 = vmatprep.subr.bf16.mxu0 %v6450_v41  ;;  %v6237_v38 = vcombine.low %v3627_v28, %v3631_v29  ;;  %v6244_v41 = vcombine.high %v3634_v35, %v3638_v36  ;;  %v6246_v43 = vcombine.high %v3635_v26, %v3639_v27 }
 0x650   :  { %5258 = vmatpush1.bf16.msra.mxu1 %v6447_v47  ;;  %5360 = vmatpush1.bf16.msra.mxu0 %v6449_v48  ;;  %v3647_v47 = vld [vmem:[#allocation13 + $0x178] sm:$0xff]  ;;  %v6243_v48 = vcombine.low %v3634_v35, %v3638_v36 }
 0x651   :  { %5259 = vmatprep.subr.bf16.mxu1 %v6456_v49  ;;  %5361 = vmatprep.subr.bf16.mxu0 %v6458_v50  ;;  %v6245_v49 = vcombine.low %v3635_v26, %v3639_v27  ;;  %v6252_v50 = vcombine.high %v3642_v45, %v3646_v16 }
 0x654   :  { %5260 = vmatpush1.bf16.msra.mxu1 %v6455_v55  ;;  %5362 = vmatpush1.bf16.msra.mxu0 %v6457_v56  ;;  %v6253_v55 = vcombine.low %v3643_v44, %v3647_v47  ;;  %v6260_v56 = vcombine.high %v3650_v39, %v3654_v40 }
 0x655   :  { %5382 = vmatprep.subr.bf16.mxu1 %v6212_v57  ;;  %5484 = vmatprep.subr.bf16.mxu0 %v6214_v58  ;;  %v6262_v57 = vcombine.high %v3651_v52, %v3655_v53  ;;  %v3658_v58 = vld [vmem:[#allocation13 + $0x1d0] sm:$0xff] }
 0x656   :  { %v6268_v46 = vcombine.high %v3658_v58, %v3662_v59  ;;  %v6267_v5 = vcombine.low %v3658_v58, %v3662_v59 }
 0x657   :  { %5262 = vmatmul.mubr.bf16.vlgmr.msra.gmra.mrb[32].mxu1 %v7904_v15  ;;  %5364 = vmatmul.mubr.bf16.vlgmr.msra.gmra.mrb[24].mxu0 %v7904_v15 }
 0x658   :  { %5271 = vmatprep.mubr.bf16.mxu1 %v7932_v1  ;;  %5373 = vmatprep.mubr.bf16.mxu0 %v7932_v1 }
 0x659   :  { %5383 = vmatpush1.bf16.msra.mxu1 %v6211_v24  ;;  %5485 = vmatpush1.bf16.msra.mxu0 %v6213_v0  ;;  %v6270_v24 = vcombine.high %v3659_v60, %v3663_v61  ;;  %v3666_v0 = vld [vmem:[#allocation13 + $0x210] sm:$0xff] }
 0x65a   :  { %5384 = vmatprep.subr.bf16.mxu1 %v6220_v2  ;;  %5486 = vmatprep.subr.bf16.mxu0 %v6222_v3  ;;  %v3670_v2 = vld [vmem:[#allocation13 + $0x230] sm:$0xff]  ;;  %v3667_v3 = vld [vmem:[#allocation13 + $0x218] sm:$0xff] }
 0x65b   :  { %v6276_v7 = vcombine.high %v3666_v0, %v3670_v2  ;;  %v6278_v18 = vcombine.high %v3667_v3, %v3671_v4  ;;  %v6275_v23 = vcombine.low %v3666_v0, %v3670_v2  ;;  %v6277_v25 = vcombine.low %v3667_v3, %v3671_v4 }
 0x65d   :  { %5385 = vmatpush1.bf16.msra.mxu1 %v6219_v21  ;;  %5487 = vmatpush1.bf16.msra.mxu0 %v6221_v8  ;;  %v3674_v21 = vld [vmem:[#allocation13 + $0x250] sm:$0xff] }
 0x65e   :  { %5386 = vmatprep.subr.bf16.mxu1 %v6228_v20  ;;  %5488 = vmatprep.subr.bf16.mxu0 %v6230_v22  ;;  %v3678_v8 = vld [vmem:[#allocation13 + $0x270] sm:$0xff]  ;;  %v3675_v20 = vld [vmem:[#allocation13 + $0x258] sm:$0xff] }
 0x65f   :  { %5272 = vmatmul.mubr.bf16.gmra.mrb[36].mxu1 %v7938_v30  ;;  %5374 = vmatmul.mubr.bf16.gmra.mrb[28].mxu0 %v7938_v30  ;;  %v3679_v22 = vld [vmem:[#allocation13 + $0x278] sm:$0xff]  ;;  %v6284_v28 = vcombine.high %v3674_v21, %v3678_v8  ;;  %v6283_v35 = vcombine.low %v3674_v21, %v3678_v8 }
 0x660   :  { %5414 = vmatprep.mubr.bf16.mxu1 %v7906_v17  ;;  %5516 = vmatprep.mubr.bf16.mxu0 %v7906_v17  ;;  %v6254_v17 = vcombine.high %v3643_v44, %v3647_v47  ;;  %v6286_v29 = vcombine.high %v3675_v20, %v3679_v22  ;;  %v6285_v36 = vcombine.low %v3675_v20, %v3679_v22 }
 0x661   :  { %5387 = vmatpush1.bf16.msra.mxu1 %v6227_v31  ;;  %5489 = vmatpush1.bf16.msra.mxu0 %v6229_v33  ;;  %v3682_v31 = vld [vmem:[#allocation13 + $0x290] sm:$0xff] }
 0x662   :  { %5388 = vmatprep.subr.bf16.mxu1 %v6236_v32  ;;  %5490 = vmatprep.subr.bf16.mxu0 %v6238_v34  ;;  %v3686_v33 = vld [vmem:[#allocation13 + $0x2b0] sm:$0xff]  ;;  %v3683_v32 = vld [vmem:[#allocation13 + $0x298] sm:$0xff] }
 0x663   :  { %v3687_v34 = vld [vmem:[#allocation13 + $0x2b8] sm:$0xff]  ;;  %v6292_v26 = vcombine.high %v3682_v31, %v3686_v33  ;;  %v6291_v45 = vcombine.low %v3682_v31, %v3686_v33 }
 0x664   :  { %v6294_v27 = vcombine.high %v3683_v32, %v3687_v34  ;;  %v6293_v16 = vcombine.low %v3683_v32, %v3687_v34 }
 0x665   :  { %5389 = vmatpush1.bf16.msra.mxu1 %v6235_v37  ;;  %5491 = vmatpush1.bf16.msra.mxu0 %v6237_v38  ;;  %v3690_v37 = vld [vmem:[#allocation13 + $0x2d0] sm:$0xff] }
 0x666   :  { %5390 = vmatprep.subr.bf16.mxu1 %v6244_v41  ;;  %5492 = vmatprep.subr.bf16.mxu0 %v6246_v43  ;;  %v3694_v38 = vld [vmem:[#allocation13 + $0x2f0] sm:$0xff]  ;;  %v3691_v41 = vld [vmem:[#allocation13 + $0x2d8] sm:$0xff] }
 0x667   :  { %v3695_v43 = vld [vmem:[#allocation13 + $0x2f8] sm:$0xff]  ;;  %v6300_v44 = vcombine.high %v3690_v37, %v3694_v38  ;;  %v6299_v39 = vcombine.low %v3690_v37, %v3694_v38 }
 0x668   :  { %v6302_v47 = vcombine.high %v3691_v41, %v3695_v43  ;;  %v6301_v40 = vcombine.low %v3691_v41, %v3695_v43 }
 0x669   :  { %5391 = vmatpush1.bf16.msra.mxu1 %v6243_v48  ;;  %5493 = vmatpush1.bf16.msra.mxu0 %v6245_v49  ;;  %v3698_v48 = vld [vmem:[#allocation13 + $0x310] sm:$0xff] }
 0x66a   :  { %5392 = vmatprep.subr.bf16.mxu1 %v6252_v50  ;;  %5494 = vmatprep.subr.bf16.mxu0 %v6254_v17  ;;  %v3702_v49 = vld [vmem:[#allocation13 + $0x330] sm:$0xff]  ;;  %v3699_v50 = vld [vmem:[#allocation13 + $0x318] sm:$0xff] }
 0x66b   :  { %v3703_v17 = vld [vmem:[#allocation13 + $0x338] sm:$0xff]  ;;  %v6308_v52 = vcombine.high %v3698_v48, %v3702_v49  ;;  %v6307_v58 = vcombine.low %v3698_v48, %v3702_v49 }
 0x66c   :  { %v6310_v53 = vcombine.high %v3699_v50, %v3703_v17  ;;  %v6309_v59 = vcombine.low %v3699_v50, %v3703_v17 }
 0x66d   :  { %5393 = vmatpush1.bf16.msra.mxu1 %v6251_v54  ;;  %5495 = vmatpush1.bf16.msra.mxu0 %v6253_v55  ;;  %v3706_v54 = vld [vmem:[#allocation13 + $0x350] sm:$0xff] }
 0x66e   :  { %5394 = vmatprep.subr.bf16.mxu1 %v6260_v56  ;;  %5496 = vmatprep.subr.bf16.mxu0 %v6262_v57  ;;  %v3710_v55 = vld [vmem:[#allocation13 + $0x370] sm:$0xff]  ;;  %v3707_v56 = vld [vmem:[#allocation13 + $0x358] sm:$0xff] }
 0x66f   :  { %v3711_v57 = vld [vmem:[#allocation13 + $0x378] sm:$0xff]  ;;  %v6316_v60 = vcombine.high %v3706_v54, %v3710_v55  ;;  %v6315_v0 = vcombine.low %v3706_v54, %v3710_v55 }
 0x670   :  { %v6318_v61 = vcombine.high %v3707_v56, %v3711_v57  ;;  %v6317_v2 = vcombine.low %v3707_v56, %v3711_v57  ;;  %v3762_v56 = vld [vmem:[#allocation13 + $0x510] sm:$0xff] }
 0x671   :  { %5395 = vmatpush1.bf16.msra.mxu1 %v6259_v62  ;;  %5497 = vmatpush1.bf16.msra.mxu0 %v6261_v63  ;;  %v3714_v62 = vld [vmem:[#allocation13 + $0x390] sm:$0xff] }
 0x672   :  { %5396 = vmatprep.subr.bf16.mxu1 %v6268_v46  ;;  %5498 = vmatprep.subr.bf16.mxu0 %v6270_v24  ;;  %v3718_v63 = vld [vmem:[#allocation13 + $0x3b0] sm:$0xff]  ;;  %v3715_v46 = vld [vmem:[#allocation13 + $0x398] sm:$0xff] }
 0x673   :  { %v3719_v24 = vld [vmem:[#allocation13 + $0x3b8] sm:$0xff]  ;;  %v6324_v3 = vcombine.high %v3714_v62, %v3718_v63  ;;  %v6323_v21 = vcombine.low %v3714_v62, %v3718_v63  ;;  %v3766_v57 = vld [vmem:[#allocation13 + $0x530] sm:$0xff] }
 0x674   :  { %v6326_v4 = vcombine.high %v3715_v46, %v3719_v24  ;;  %v6325_v8 = vcombine.low %v3715_v46, %v3719_v24  ;;  %v6372_v62 = vcombine.high %v3762_v56, %v3766_v57  ;;  %v3770_v46 = vld [vmem:[#allocation13 + $0x550] sm:$0xff]  ;;  %v3771_v24 = vld [vmem:[#allocation13 + $0x558] sm:$0xff] }
 0x675   :  { %5397 = vmatpush1.bf16.msra.mxu1 %v6267_v5  ;;  %5499 = vmatpush1.bf16.msra.mxu0 %v6269_v6  ;;  %v3722_v5 = vld [vmem:[#allocation13 + $0x3d0] sm:$0xff] }
 0x676   :  { %5398 = vmatprep.subr.bf16.mxu1 %v6276_v7  ;;  %5500 = vmatprep.subr.bf16.mxu0 %v6278_v18  ;;  %v3726_v6 = vld [vmem:[#allocation13 + $0x3f0] sm:$0xff]  ;;  %v3723_v7 = vld [vmem:[#allocation13 + $0x3d8] sm:$0xff] }
 0x677   :  { %v3727_v18 = vld [vmem:[#allocation13 + $0x3f8] sm:$0xff]  ;;  %v6332_v20 = vcombine.high %v3722_v5, %v3726_v6  ;;  %v6331_v31 = vcombine.low %v3722_v5, %v3726_v6  ;;  %v3778_v5 = vld [vmem:[#allocation13 + $0x590] sm:$0xff] }
 0x678   :  { %v6334_v22 = vcombine.high %v3723_v7, %v3727_v18  ;;  %v6333_v33 = vcombine.low %v3723_v7, %v3727_v18  ;;  %v3782_v6 = vld [vmem:[#allocation13 + $0x5b0] sm:$0xff]  ;;  %v3779_v7 = vld [vmem:[#allocation13 + $0x598] sm:$0xff] }
 0x679   :  { %5399 = vmatpush1.bf16.msra.mxu1 %v6275_v23  ;;  %5501 = vmatpush1.bf16.msra.mxu0 %v6277_v25  ;;  %v3730_v23 = vld [vmem:[#allocation13 + $0x410] sm:$0xff]  ;;  %v3783_v18 = vld [vmem:[#allocation13 + $0x5b8] sm:$0xff] }
 0x67a   :  { %5400 = vmatprep.subr.bf16.mxu1 %v6284_v28  ;;  %5502 = vmatprep.subr.bf16.mxu0 %v6286_v29  ;;  %v3734_v25 = vld [vmem:[#allocation13 + $0x430] sm:$0xff]  ;;  %v3731_v28 = vld [vmem:[#allocation13 + $0x418] sm:$0xff] }
 0x67b   :  { %v3735_v29 = vld [vmem:[#allocation13 + $0x438] sm:$0xff]  ;;  %v6340_v32 = vcombine.high %v3730_v23, %v3734_v25  ;;  %v6339_v37 = vcombine.low %v3730_v23, %v3734_v25  ;;  %v3786_v23 = vld [vmem:[#allocation13 + $0x5d0] sm:$0xff] }
 0x67c   :  { %v7944_v34 = vcombine.high %v3731_v28, %v3735_v29  ;;  %v7946_v38 = vcombine.low %v3731_v28, %v3735_v29  ;;  %v3790_v25 = vld [vmem:[#allocation13 + $0x5f0] sm:$0xff]  ;;  %v3787_v28 = vld [vmem:[#allocation13 + $0x5d8] sm:$0xff] }
 0x67d   :  { %5401 = vmatpush1.bf16.msra.mxu1 %v6283_v35  ;;  %5503 = vmatpush1.bf16.msra.mxu0 %v6285_v36  ;;  %v3738_v35 = vld [vmem:[#allocation13 + $0x450] sm:$0xff]  ;;  %v3791_v29 = vld [vmem:[#allocation13 + $0x5f8] sm:$0xff] }
 0x67e   :  { %5402 = vmatprep.subr.bf16.mxu1 %v6292_v26  ;;  %5504 = vmatprep.subr.bf16.mxu0 %v6294_v27  ;;  %v3742_v36 = vld [vmem:[#allocation13 + $0x470] sm:$0xff]  ;;  %v3739_v26 = vld [vmem:[#allocation13 + $0x458] sm:$0xff] }
 0x67f   :  { %v3743_v27 = vld [vmem:[#allocation13 + $0x478] sm:$0xff]  ;;  %v6348_v41 = vcombine.high %v3738_v35, %v3742_v36  ;;  %v6347_v48 = vcombine.low %v3738_v35, %v3742_v36  ;;  %v7993_v35 = vcombine.high %v3787_v28, %v3791_v29  ;;  %v3794_v36 = vld [vmem:[#allocation13 + $0x610] sm:$0xff] }
 0x680   :  { %v7949_v43 = vcombine.high %v3739_v26, %v3743_v27  ;;  %v7956_v49 = vcombine.low %v3739_v26, %v3743_v27  ;;  %v3798_v26 = vld [vmem:[#allocation13 + $0x630] sm:$0xff]  ;;  %v3795_v27 = vld [vmem:[#allocation13 + $0x618] sm:$0xff] }
 0x681   :  { %5403 = vmatpush1.bf16.msra.mxu1 %v6291_v45  ;;  %5505 = vmatpush1.bf16.msra.mxu0 %v6293_v16  ;;  %v3746_v45 = vld [vmem:[#allocation13 + $0x490] sm:$0xff] }
 0x682   :  { %5404 = vmatprep.subr.bf16.mxu1 %v6300_v44  ;;  %5506 = vmatprep.subr.bf16.mxu0 %v6302_v47  ;;  %v3750_v16 = vld [vmem:[#allocation13 + $0x4b0] sm:$0xff]  ;;  %v3747_v44 = vld [vmem:[#allocation13 + $0x498] sm:$0xff] }
 0x683   :  { %v3751_v47 = vld [vmem:[#allocation13 + $0x4b8] sm:$0xff]  ;;  %v6356_v50 = vcombine.high %v3746_v45, %v3750_v16 }
 0x684   :  { %v7959_v17 = vcombine.high %v3747_v44, %v3751_v47 }
 0x685   :  { %5405 = vmatpush1.bf16.msra.mxu1 %v6299_v39  ;;  %5507 = vmatpush1.bf16.msra.mxu0 %v6301_v40  ;;  %v3754_v39 = vld [vmem:[#allocation13 + $0x4d0] sm:$0xff]  ;;  %v3755_v40 = vld [vmem:[#allocation13 + $0x4d8] sm:$0xff] }
 0x686   :  { %5406 = vmatprep.subr.bf16.mxu1 %v6308_v52  ;;  %5508 = vmatprep.subr.bf16.mxu0 %v6310_v53  ;;  %v3759_v52 = vld [vmem:[#allocation13 + $0x4f8] sm:$0xff]  ;;  %v6355_v53 = vcombine.low %v3746_v45, %v3750_v16  ;;  %v7996_v45 = vcombine.low %v3787_v28, %v3791_v29  ;;  %v6404_v16 = vcombine.high %v3794_v36, %v3798_v26 }
 0x687   :  { %v7965_v55 = vcombine.high %v3755_v40, %v3759_v52 }
 0x689   :  { %5407 = vmatpush1.bf16.msra.mxu1 %v6307_v58  ;;  %5509 = vmatpush1.bf16.msra.mxu0 %v6309_v59  ;;  %v3763_v58 = vld [vmem:[#allocation13 + $0x518] sm:$0xff] }
 0x68a   :  { %5408 = vmatprep.subr.bf16.mxu1 %v6316_v60  ;;  %5510 = vmatprep.subr.bf16.mxu0 %v6318_v61  ;;  %v3767_v59 = vld [vmem:[#allocation13 + $0x538] sm:$0xff]  ;;  %v7972_v61 = vcombine.low %v3755_v40, %v3759_v52 }
 0x68b   :  { %v7975_v63 = vcombine.high %v3763_v58, %v3767_v59 }
 0x68d   :  { %5409 = vmatpush1.bf16.msra.mxu1 %v6315_v0  ;;  %5511 = vmatpush1.bf16.msra.mxu0 %v6317_v2  ;;  %v3775_v0 = vld [vmem:[#allocation13 + $0x578] sm:$0xff]  ;;  %v6371_v2 = vcombine.low %v3762_v56, %v3766_v57  ;;  %v3814_v56 = vld [vmem:[#allocation13 + $0x6b0] sm:$0xff] }
 0x68e   :  { %5410 = vmatprep.subr.bf16.mxu1 %v6324_v3  ;;  %5512 = vmatprep.subr.bf16.mxu0 %v6326_v4  ;;  %v7978_v3 = vcombine.low %v3763_v58, %v3767_v59  ;;  %v7981_v4 = vcombine.high %v3771_v24, %v3775_v0  ;;  %v3811_v57 = vld [vmem:[#allocation13 + $0x698] sm:$0xff] }
 0x68f   :  { %v3815_v58 = vld [vmem:[#allocation13 + $0x6b8] sm:$0xff] }
 0x691   :  { %5411 = vmatpush1.bf16.msra.mxu1 %v6323_v21  ;;  %5513 = vmatpush1.bf16.msra.mxu0 %v6325_v8  ;;  %v7984_v8 = vcombine.low %v3771_v24, %v3775_v0  ;;  %v3822_v24 = vld [vmem:[#allocation13 + $0x6f0] sm:$0xff]  ;;  %v3819_v0 = vld [vmem:[#allocation13 + $0x6d8] sm:$0xff] }
 0x692   :  { %5412 = vmatprep.subr.bf16.mxu1 %v6332_v20  ;;  %5514 = vmatprep.subr.bf16.mxu0 %v6334_v22  ;;  %v6388_v20 = vcombine.high %v3778_v5, %v3782_v6  ;;  %v7987_v22 = vcombine.high %v3779_v7, %v3783_v18 }
 0x695   :  { %5413 = vmatpush1.bf16.msra.mxu1 %v6331_v31  ;;  %5515 = vmatpush1.bf16.msra.mxu0 %v6333_v33  ;;  %v6387_v31 = vcombine.low %v3778_v5, %v3782_v6  ;;  %v7990_v33 = vcombine.low %v3779_v7, %v3783_v18  ;;  %v8014_v5 = vcombine.low %v3811_v57, %v3815_v58  ;;  %v3826_v18 = vld [vmem:[#allocation13 + $0x710] sm:$0xff] }
 0x696   :  { %5433 = vmatprep.subr.bf16.mxu1 %v6340_v32  ;;  %5535 = vmatprep.subr.bf16.mxu0 %v7944_v34  ;;  %v6396_v32 = vcombine.high %v3786_v23, %v3790_v25 }
 0x698   :  { %5415 = vmatmul.mubr.bf16.vlgmr.msra.gmra.mrb[40].mxu1 %v7902_v12  ;;  %5517 = vmatmul.mubr.bf16.vlgmr.msra.gmra.mrb[32].mxu0 %v7902_v12  ;;  %v3758_v12 = vld [vmem:[#allocation13 + $0x4f0] sm:$0xff] }
 0x699   :  { %5424 = vmatprep.mubr.bf16.mxu1 %v7918_v42  ;;  %5434 = vmatpush1.bf16.msra.mxu1 %v6339_v37  ;;  %v6364_v54 = vcombine.high %v3754_v39, %v3758_v12  ;;  %v6363_v60 = vcombine.low %v3754_v39, %v3758_v12  ;;  %v3799_v37 = vld [vmem:[#allocation13 + $0x638] sm:$0xff]  ;;  %v6403_v12 = vcombine.low %v3794_v36, %v3798_v26  ;;  %v3838_v36 = vld [vmem:[#allocation13 + $0x770] sm:$0xff] }
 0x69a   :  { %5526 = vmatprep.mubr.bf16.mxu0 %v7918_v42  ;;  %5536 = vmatpush1.bf16.msra.mxu0 %v7946_v38  ;;  %v7962_v42 = vcombine.low %v3747_v44, %v3751_v47  ;;  %v7999_v44 = vcombine.high %v3795_v27, %v3799_v37  ;;  %v3802_v47 = vld [vmem:[#allocation13 + $0x650] sm:$0xff]  ;;  %v3807_v39 = vld [vmem:[#allocation13 + $0x678] sm:$0xff]  ;;  %v8002_v40 = vcombine.low %v3795_v27, %v3799_v37 }
 0x69b   :  { %5435 = vmatprep.subr.bf16.mxu1 %v6348_v41  ;;  %5537 = vmatprep.subr.bf16.mxu0 %v7949_v43  ;;  %v6395_v41 = vcombine.low %v3786_v23, %v3790_v25  ;;  %v3831_v23 = vld [vmem:[#allocation13 + $0x738] sm:$0xff] }
 0x69c   :  { %v3835_v26 = vld [vmem:[#allocation13 + $0x758] sm:$0xff] }
 0x69d   :  { %5436 = vmatpush1.bf16.msra.mxu1 %v6347_v48  ;;  %v3806_v48 = vld [vmem:[#allocation13 + $0x670] sm:$0xff]  ;;  %v3839_v27 = vld [vmem:[#allocation13 + $0x778] sm:$0xff] }
 0x69e   :  { %5538 = vmatpush1.bf16.msra.mxu0 %v7956_v49  ;;  %5437 = vmatprep.subr.bf16.mxu1 %v6356_v50  ;;  %v3803_v50 = vld [vmem:[#allocation13 + $0x658] sm:$0xff]  ;;  %v6412_v52 = vcombine.high %v3802_v47, %v3806_v48  ;;  %v6411_v59 = vcombine.low %v3802_v47, %v3806_v48  ;;  %v8029_v47 = vcombine.high %v3835_v26, %v3839_v27  ;;  %v3842_v48 = vld [vmem:[#allocation13 + $0x790] sm:$0xff] }
 0x69f   :  { %5539 = vmatprep.subr.bf16.mxu0 %v7959_v17 }
 0x6a0   :  { %5425 = vmatmul.mubr.bf16.gmra.mrb[44].mxu1 %v7920_v51  ;;  %5527 = vmatmul.mubr.bf16.gmra.mrb[36].mxu0 %v7920_v51  ;;  %v3774_v51 = vld [vmem:[#allocation13 + $0x570] sm:$0xff] }
 0x6a1   :  { %5438 = vmatpush1.bf16.msra.mxu1 %v6355_v53  ;;  %5465 = vmatprep.mubr.bf16.mxu1 %v7908_v19  ;;  %v6379_v21 = vcombine.low %v3770_v46, %v3774_v51  ;;  %v8005_v53 = vcombine.high %v3803_v50, %v3807_v39 }
 0x6a2   :  { %5540 = vmatpush1.bf16.msra.mxu0 %v7962_v42  ;;  %5567 = vmatprep.mubr.bf16.mxu0 %v7908_v19  ;;  %v6380_v19 = vcombine.high %v3770_v46, %v3774_v51  ;;  %v8011_v46 = vcombine.high %v3811_v57, %v3815_v58  ;;  %v3818_v51 = vld [vmem:[#allocation13 + $0x6d0] sm:$0xff] }
 0x6a3   :  { %5439 = vmatprep.subr.bf16.mxu1 %v6364_v54  ;;  %5541 = vmatprep.subr.bf16.mxu0 %v7965_v55  ;;  %v3810_v54 = vld [vmem:[#allocation13 + $0x690] sm:$0xff]  ;;  %v6428_v6 = vcombine.high %v3818_v51, %v3822_v24  ;;  %v6427_v25 = vcombine.low %v3818_v51, %v3822_v24  ;;  %v3855_v51 = vld [vmem:[#allocation13 + $0x7f8] sm:$0xff] }
 0x6a4   :  { %v3850_v58 = vld [vmem:[#allocation13 + $0x7d0] sm:$0xff] }
 0x6a5   :  { %5440 = vmatpush1.bf16.msra.mxu1 %v6363_v60  ;;  %v8008_v60 = vcombine.low %v3803_v50, %v3807_v39  ;;  %v3846_v50 = vld [vmem:[#allocation13 + $0x7b0] sm:$0xff]  ;;  %v3843_v39 = vld [vmem:[#allocation13 + $0x798] sm:$0xff] }
 0x6a6   :  { %5542 = vmatpush1.bf16.msra.mxu0 %v7972_v61  ;;  %5441 = vmatprep.subr.bf16.mxu1 %v6372_v62  ;;  %v6420_v62 = vcombine.high %v3810_v54, %v3814_v56  ;;  %v6451_v24 = vcombine.low %v3842_v48, %v3846_v50 }
 0x6a7   :  { %5543 = vmatprep.subr.bf16.mxu0 %v7975_v63 }
 0x6a9   :  { %5442 = vmatpush1.bf16.msra.mxu1 %v6371_v2  ;;  %v3823_v2 = vld [vmem:[#allocation13 + $0x6f8] sm:$0xff] }
 0x6aa   :  { %5544 = vmatpush1.bf16.msra.mxu0 %v7978_v3  ;;  %5443 = vmatprep.subr.bf16.mxu1 %v6380_v19  ;;  %v6419_v19 = vcombine.low %v3810_v54, %v3814_v56  ;;  %v8017_v7 = vcombine.high %v3819_v0, %v3823_v2  ;;  %v8020_v28 = vcombine.low %v3819_v0, %v3823_v2 }
 0x6ab   :  { %5545 = vmatprep.subr.bf16.mxu0 %v7981_v4  ;;  %v6445_v54 = vcombine.low %v3835_v26, %v3839_v27  ;;  %v6452_v56 = vcombine.high %v3842_v48, %v3846_v50 }
 0x6ad   :  { %5444 = vmatpush1.bf16.msra.mxu1 %v6379_v21  ;;  %v3830_v21 = vld [vmem:[#allocation13 + $0x730] sm:$0xff] }
 0x6ae   :  { %5546 = vmatpush1.bf16.msra.mxu0 %v7984_v8  ;;  %5445 = vmatprep.subr.bf16.mxu1 %v6388_v20  ;;  %v3827_v20 = vld [vmem:[#allocation13 + $0x718] sm:$0xff]  ;;  %v6436_v29 = vcombine.high %v3826_v18, %v3830_v21  ;;  %v6435_v37 = vcombine.low %v3826_v18, %v3830_v21 }
 0x6af   :  { %5547 = vmatprep.subr.bf16.mxu0 %v7987_v22 }
 0x6b1   :  { %5446 = vmatpush1.bf16.msra.mxu1 %v6387_v31  ;;  %v8023_v31 = vcombine.high %v3827_v20, %v3831_v23 }
 0x6b2   :  { %5548 = vmatpush1.bf16.msra.mxu0 %v7990_v33  ;;  %5447 = vmatprep.subr.bf16.mxu1 %v6396_v32  ;;  %v3834_v32 = vld [vmem:[#allocation13 + $0x750] sm:$0xff] }
 0x6b3   :  { %5549 = vmatprep.subr.bf16.mxu0 %v7993_v35 }
 0x6b5   :  { %5448 = vmatpush1.bf16.msra.mxu1 %v6395_v41  ;;  %v8026_v41 = vcombine.low %v3827_v20, %v3831_v23 }
 0x6b6   :  { %5550 = vmatpush1.bf16.msra.mxu0 %v7996_v45  ;;  %5449 = vmatprep.subr.bf16.mxu1 %v6404_v16  ;;  %v6444_v16 = vcombine.high %v3834_v32, %v3838_v36 }
 0x6b7   :  { %5551 = vmatprep.subr.bf16.mxu0 %v7999_v44 }
 0x6b9   :  { %5450 = vmatpush1.bf16.msra.mxu1 %v6403_v12  ;;  %v3847_v12 = vld [vmem:[#allocation13 + $0x7b8] sm:$0xff] }
 0x6ba   :  { %5552 = vmatpush1.bf16.msra.mxu0 %v8002_v40  ;;  %5451 = vmatprep.subr.bf16.mxu1 %v6412_v52  ;;  %v6443_v52 = vcombine.low %v3834_v32, %v3838_v36  ;;  %v6454_v57 = vcombine.high %v3843_v39, %v3847_v12  ;;  %v6453_v0 = vcombine.low %v3843_v39, %v3847_v12 }
 0x6bb   :  { %5553 = vmatprep.subr.bf16.mxu0 %v8005_v53 }
 0x6bd   :  { %5452 = vmatpush1.bf16.msra.mxu1 %v6411_v59  ;;  %v3854_v59 = vld [vmem:[#allocation13 + $0x7f0] sm:$0xff] }
 0x6be   :  { %5554 = vmatpush1.bf16.msra.mxu0 %v8008_v60  ;;  %5453 = vmatprep.subr.bf16.mxu1 %v6420_v62  ;;  %v3851_v62 = vld [vmem:[#allocation13 + $0x7d8] sm:$0xff]  ;;  %v6460_v2 = vcombine.high %v3850_v58, %v3854_v59 }
 0x6bf   :  { %5555 = vmatprep.subr.bf16.mxu0 %v8011_v46  ;;  %v6461_v18 = vcombine.low %v3851_v62, %v3855_v51 }
 0x6c1   :  { %5454 = vmatpush1.bf16.msra.mxu1 %v6419_v19  ;;  %v6462_v19 = vcombine.high %v3851_v62, %v3855_v51 }
 0x6c2   :  { %5556 = vmatpush1.bf16.msra.mxu0 %v8014_v5  ;;  %5455 = vmatprep.subr.bf16.mxu1 %v6428_v6  ;;  %v6459_v6 = vcombine.low %v3850_v58, %v3854_v59 }
 0x6c3   :  { %5557 = vmatprep.subr.bf16.mxu0 %v8017_v7 }
 0x6c5   :  { %5456 = vmatpush1.bf16.msra.mxu1 %v6427_v25 }
 0x6c6   :  { %5558 = vmatpush1.bf16.msra.mxu0 %v8020_v28  ;;  %5457 = vmatprep.subr.bf16.mxu1 %v6436_v29 }
 0x6c7   :  { %5559 = vmatprep.subr.bf16.mxu0 %v8023_v31 }
 0x6c9   :  { %5458 = vmatpush1.bf16.msra.mxu1 %v6435_v37 }
 0x6ca   :  { %5560 = vmatpush1.bf16.msra.mxu0 %v8026_v41  ;;  %5459 = vmatprep.subr.bf16.mxu1 %v6444_v16 }
 0x6cb   :  { %5561 = vmatprep.subr.bf16.mxu0 %v8029_v47 }
 0x6cd   :  { %5460 = vmatpush1.bf16.msra.mxu1 %v6443_v52 }
 0x6ce   :  { %5562 = vmatpush1.bf16.msra.mxu0 %v6445_v54  ;;  %5461 = vmatprep.subr.bf16.mxu1 %v6452_v56 }
 0x6cf   :  { %5563 = vmatprep.subr.bf16.mxu0 %v6454_v57 }
 0x6d1   :  { %5462 = vmatpush1.bf16.msra.mxu1 %v6451_v24 }
 0x6d2   :  { %5564 = vmatpush1.bf16.msra.mxu0 %v6453_v0  ;;  %5463 = vmatprep.subr.bf16.mxu1 %v6460_v2 }
 0x6d3   :  { %5565 = vmatprep.subr.bf16.mxu0 %v6462_v19 }
 0x6d5   :  { %5464 = vmatpush1.bf16.msra.mxu1 %v6459_v6 }
 0x6d6   :  { %5566 = vmatpush1.bf16.msra.mxu0 %v6461_v18  ;;  %6515 = vmatprep.subr.bf16.mxu1 %v7944_v34 }
 0x6d8   :  { %5466 = vmatmul.mubr.bf16.vlgmr.msra.gmra.mrb[40].mxu1 %v7904_v15 }
 0x6d9   :  { %5568 = vmatmul.mubr.bf16.vlgmr.msra.gmra.mrb[32].mxu0 %v7904_v15  ;;  %5475 = vmatprep.mubr.bf16.mxu1 %v7932_v1  ;;  %v8069_v15 = vld [vmem:[%s8128_s12] sm:$0xff]  ;;  %s7615_s12 = smov [#allocation14]  }
 0x6da   :  { %6531 = vmatpush1.bf16.msra.mxu1 %v7946_v38  ;;  %v3869_v34 = vrot.slane %v8069_v15, %v7822_v11  ;;  %v3865_v38 = vrot.slane %v8069_v15, %v7828_v13  ;;  %s5759_s26 = sshll.u32 %s7615_s12, 4  ;;  %s5760_s26 = int_to_ptr.vmem [resolvable:$true] %s5759_s26 }
 0x6db   :  { %6516 = vmatprep.subr.bf16.mxu1 %v7949_v43  ;;  %v3873_v43 = vrot.slane %v8069_v15, %v7831_v14  ;;  %s7567_s16 = scalar_lea.vmem %s5760_s26, 3072  ;;  %p7572_p1 = scmp.lt.s32.totalorder %s5760_s26, %s5760_s26 }
 0x6dc   :  { %p7568_p0 = scmp.ne.s32.totalorder %s5760_s26, %s7567_s16  ;;  %p7573_p2 = scmp.lt.s32.totalorder %s7567_s16, %s7567_s16 }
 0x6de   :  { %6532 = vmatpush1.bf16.msra.mxu1 %v7956_v49  ;;  %p7574_p3 = por %p7573_p2, %p7572_p1 }
 0x6df   :  { %6517 = vmatprep.subr.bf16.mxu1 %v7959_v17 }
 0x6e0   :  { %5476 = vmatmul.mubr.bf16.gmra.mrb[44].mxu1 %v7938_v30  ;;  %p7575_p4 = pnand %p7574_p3, %p7568_p0 }
 0x6e1   :  { %5577 = vmatprep.mubr.bf16.mxu1 %v7932_v1  ;;  %v3861_v1 = vrot.slane %v8069_v15, %v7819_v10 }
 0x6e2   :  { %6533 = vmatpush1.bf16.msra.mxu1 %v7962_v42 }
 0x6e3   :  { %6518 = vmatprep.subr.bf16.mxu1 %v7965_v55 }
 0x6e6   :  { %6534 = vmatpush1.bf16.msra.mxu1 %v7972_v61 }
 0x6e7   :  { %6519 = vmatprep.subr.bf16.mxu1 %v7975_v63 }
 0x6ea   :  { %6535 = vmatpush1.bf16.msra.mxu1 %v7978_v3 }
 0x6eb   :  { %6520 = vmatprep.subr.bf16.mxu1 %v7981_v4 }
 0x6ee   :  { %6536 = vmatpush1.bf16.msra.mxu1 %v7984_v8 }
 0x6ef   :  { %6521 = vmatprep.subr.bf16.mxu1 %v7987_v22 }
 0x6f2   :  { %6537 = vmatpush1.bf16.msra.mxu1 %v7990_v33 }
 0x6f3   :  { %6522 = vmatprep.subr.bf16.mxu1 %v7993_v35 }
 0x6f6   :  { %6538 = vmatpush1.bf16.msra.mxu1 %v7996_v45 }
 0x6f7   :  { %6523 = vmatprep.subr.bf16.mxu1 %v7999_v44 }
 0x6fa   :  { %6539 = vmatpush1.bf16.msra.mxu1 %v8002_v40 }
 0x6fb   :  { %6524 = vmatprep.subr.bf16.mxu1 %v8005_v53 }
 0x6fe   :  { %6540 = vmatpush1.bf16.msra.mxu1 %v8008_v60 }
 0x6ff   :  { %6525 = vmatprep.subr.bf16.mxu1 %v8011_v46 }
 0x702   :  { %6541 = vmatpush1.bf16.msra.mxu1 %v8014_v5 }
 0x703   :  { %6526 = vmatprep.subr.bf16.mxu1 %v8017_v7 }
 0x706   :  { %6542 = vmatpush1.bf16.msra.mxu1 %v8020_v28 }
 0x707   :  { %6527 = vmatprep.subr.bf16.mxu1 %v8023_v31 }
 0x70a   :  { %6543 = vmatpush1.bf16.msra.mxu1 %v8026_v41 }
 0x70b   :  { %6528 = vmatprep.subr.bf16.mxu1 %v8029_v47 }
 0x70e   :  { %6544 = vmatpush1.bf16.msra.mxu1 %v6445_v54 }
 0x70f   :  { %6529 = vmatprep.subr.bf16.mxu1 %v6454_v57 }
 0x712   :  { %6545 = vmatpush1.bf16.msra.mxu1 %v6453_v0 }
 0x713   :  { %6530 = vmatprep.subr.bf16.mxu1 %v6462_v19 }
 0x716   :  { %6546 = vmatpush1.bf16.msra.mxu1 %v6461_v18 }
 0x719   :  { %5578 = vmatmul.mubr.bf16.vlgmr.msra.gmra.mrb[48].mxu1 %v7938_v30 }
 0x72a   :  { %v5263_v49 = vpop.f32.mrb[32].mxu1  ;;  %v5365_v17 = vpop.f32.mrb[24].mxu0 }
 0x72b   :  { %v6565_v30 = vadd.f32 %v5263_v49, %v3861_v1  ;;  %v6571_v42 = vadd.f32 %v5365_v17, %v3869_v34  ;;  %v5265_v55 = vpop.f32.mrb[33].mxu1  ;;  %v5367_v61 = vpop.f32.mrb[25].mxu0 }
 0x72c   :  { %v6566_v63 = vadd.f32 %v5265_v55, %v3865_v38  ;;  %v6572_v3 = vadd.f32 %v5367_v61, %v3873_v43  ;;  %v5267_v4 = vpop.f32.mrb[34].mxu1  ;;  %v5369_v8 = vpop.f32.mrb[26].mxu0 }
 0x72d   :  { %v6463_v10 = vmul.f32 -1.442695, %v6565_v30  ;;  %v6465_v22 = vmul.f32 -1.442695, %v6571_v42  ;;  %v6567_v33 = vadd.f32 %v5267_v4, %v3861_v1  ;;  %v6573_v11 = vadd.f32 %v5369_v8, %v3869_v34  ;;  %v5269_v35 = vpop.f32.mrb[35].mxu1  ;;  %v5371_v45 = vpop.f32.mrb[27].mxu0 }
 0x72e   :  { %v6464_v13 = vmul.f32 -1.442695, %v6566_v63  ;;  %v6466_v44 = vmul.f32 -1.442695, %v6572_v3  ;;  %v6568_v40 = vadd.f32 %v5269_v35, %v3865_v38  ;;  %v6574_v14 = vadd.f32 %v5371_v45, %v3873_v43 }
 0x72f   :  { %7317 = vpow2.f32 %v6463_v10  ;;  %v6471_v53 = vmul.f32 -1.442695, %v6567_v33  ;;  %v6473_v60 = vmul.f32 -1.442695, %v6573_v11 }
 0x730   :  { %7319 = vpow2.f32 %v6465_v22  ;;  %v6472_v46 = vmul.f32 -1.442695, %v6568_v40  ;;  %v6474_v5 = vmul.f32 -1.442695, %v6574_v14  ;;  %v3876_v40 = vsub.s32 4, %v7816_v9 }
 0x731   :  { %7321 = vpow2.f32 %v6464_v13  ;;  %v3880_v14 = vsub.s32 5, %v7816_v9 }
 0x732   :  { %7323 = vpow2.f32 %v6466_v44  ;;  %v5273_v7 = vpop.f32.mrb[36].mxu1  ;;  %v5375_v21 = vpop.f32.mrb[28].mxu0 }
 0x733   :  { %7325 = vpow2.f32 %v6471_v53  ;;  %v6569_v20 = vadd.f32 %v5273_v7, %v3861_v1  ;;  %v6575_v23 = vadd.f32 %v5375_v21, %v3869_v34  ;;  %v5275_v25 = vpop.f32.mrb[37].mxu1  ;;  %v5377_v28 = vpop.f32.mrb[29].mxu0  ;;  %v3884_v53 = vsub.s32 6, %v7816_v9 }
 0x734   :  { %7327 = vpow2.f32 %v6473_v60  ;;  %v6570_v29 = vadd.f32 %v5275_v25, %v3865_v38  ;;  %v6576_v31 = vadd.f32 %v5377_v28, %v3873_v43  ;;  %v5277_v32 = vpop.f32.mrb[38].mxu1  ;;  %v5379_v36 = vpop.f32.mrb[30].mxu0  ;;  %v3888_v60 = vsub.s32 7, %v7816_v9 }
 0x735   :  { %7329 = vpow2.f32 %v6472_v46  ;;  %v6479_v26 = vmul.f32 -1.442695, %v6569_v20  ;;  %v6481_v27 = vmul.f32 -1.442695, %v6575_v23  ;;  %v5278_v37 = vpop.f32.mrb[39].mxu1  ;;  %v5380_v41 = vpop.f32.mrb[31].mxu0  ;;  %v3877_v46 = vrot.slane %v8069_v15, %v3876_v40 }
 0x736   :  { %7331 = vpow2.f32 %v6474_v5  ;;  %v6480_v16 = vmul.f32 -1.442695, %v6570_v29  ;;  %v6482_v47 = vmul.f32 -1.442695, %v6576_v31  ;;  %v3881_v5 = vrot.slane %v8069_v15, %v3880_v14 }
 0x737   :  { %7333 = vpow2.f32 %v6479_v26  ;;  %v8090_v7 = vrot.slane %v8069_v15, %v3884_v53  ;;  %v8093_v20 = vrot.slane %v8069_v15, %v3888_v60 }
 0x738   :  { %7335 = vpow2.f32 %v6481_v27 }
 0x739   :  { %v7318_v48 = vpop.eup %7317  ;;  %7337 = vpow2.f32 %v6480_v16 }
 0x73a   :  { %v7320_v50 = vpop.eup %7319  ;;  %v5658_v39 = vadd.f32 1.0, %v7318_v48  ;;  %7339 = vpow2.f32 %v6482_v47 }
 0x73b   :  { %v7322_v12 = vpop.eup %7321  ;;  %v5660_v52 = vadd.f32 1.0, %v7320_v50 }
 0x73c   :  { %v7324_v54 = vpop.eup %7323  ;;  %7341 = vrcp.f32 %v5658_v39  ;;  %v5659_v56 = vadd.f32 1.0, %v7322_v12 }
 0x73d   :  { %v7326_v57 = vpop.eup %7325  ;;  %7343 = vrcp.f32 %v5660_v52  ;;  %v5661_v58 = vadd.f32 1.0, %v7324_v54 }
 0x73e   :  { %v7328_v59 = vpop.eup %7327  ;;  %7345 = vrcp.f32 %v5659_v56  ;;  %v5666_v62 = vadd.f32 1.0, %v7326_v57 }
 0x73f   :  { %v7330_v51 = vpop.eup %7329  ;;  %7347 = vrcp.f32 %v5661_v58  ;;  %v5668_v24 = vadd.f32 1.0, %v7328_v59 }
 0x740   :  { %v7332_v0 = vpop.eup %7331  ;;  %7349 = vrcp.f32 %v5666_v62  ;;  %v5667_v2 = vadd.f32 1.0, %v7330_v51 }
 0x741   :  { %v7334_v19 = vpop.eup %7333  ;;  %7351 = vrcp.f32 %v5668_v24  ;;  %v5669_v6 = vadd.f32 1.0, %v7332_v0 }
 0x742   :  { %v7336_v18 = vpop.eup %7335  ;;  %7353 = vrcp.f32 %v5667_v2  ;;  %v5674_v1 = vadd.f32 1.0, %v7334_v19 }
 0x743   :  { %v7338_v34 = vpop.eup %7337  ;;  %7355 = vrcp.f32 %v5669_v6  ;;  %v5676_v38 = vadd.f32 1.0, %v7336_v18 }
 0x744   :  { %v7340_v43 = vpop.eup %7339  ;;  %7357 = vrcp.f32 %v5674_v1  ;;  %v5675_v49 = vadd.f32 1.0, %v7338_v34 }
 0x745   :  { %7359 = vrcp.f32 %v5676_v38  ;;  %v5677_v17 = vadd.f32 1.0, %v7340_v43 }
 0x746   :  { %v7342_v30 = vpop.eup %7341  ;;  %7361 = vrcp.f32 %v5675_v49 }
 0x747   :  { %v7344_v42 = vpop.eup %7343  ;;  %5730 = vst [vmem:[#allocation14] sm:$0xff] %v7342_v30  ;;  %7363 = vrcp.f32 %v5677_v17 }
 0x748   :  { %v7346_v55 = vpop.eup %7345  ;;  %5732 = vst [vmem:[#allocation14 + $0x10] sm:$0xff] %v7344_v42 }
 0x749   :  { %v7348_v61 = vpop.eup %7347  ;;  %5731 = vst [vmem:[#allocation14 + $0x8] sm:$0xff] %v7346_v55 }
 0x74a   :  { %v7350_v63 = vpop.eup %7349  ;;  %5733 = vst [vmem:[#allocation14 + $0x18] sm:$0xff] %v7348_v61 }
 0x74b   :  { %v7352_v3 = vpop.eup %7351  ;;  %5738 = vst [vmem:[#allocation14 + $0x40] sm:$0xff] %v7350_v63 }
 0x74c   :  { %v7354_v4 = vpop.eup %7353  ;;  %5740 = vst [vmem:[#allocation14 + $0x50] sm:$0xff] %v7352_v3 }
 0x74d   :  { %v7356_v8 = vpop.eup %7355  ;;  %5739 = vst [vmem:[#allocation14 + $0x48] sm:$0xff] %v7354_v4 }
 0x74e   :  { %v7358_v10 = vpop.eup %7357  ;;  %5741 = vst [vmem:[#allocation14 + $0x58] sm:$0xff] %v7356_v8 }
 0x74f   :  { %v7360_v22 = vpop.eup %7359  ;;  %5746 = vst [vmem:[#allocation14 + $0x80] sm:$0xff] %v7358_v10 }
 0x750   :  { %v7362_v33 = vpop.eup %7361  ;;  %5748 = vst [vmem:[#allocation14 + $0x90] sm:$0xff] %v7360_v22 }
 0x751   :  { %v7364_v11 = vpop.eup %7363  ;;  %5747 = vst [vmem:[#allocation14 + $0x88] sm:$0xff] %v7362_v33 }
 0x752   :  { %5749 = vst [vmem:[#allocation14 + $0x98] sm:$0xff] %v7364_v11 }
 0x773   :  { %v8079_v35 = vpop.f32.mrb[36].mxu0 }
 0x774   :  { %v8081_v45 = vpop.f32.mrb[37].mxu0 }
 0x775   :  { %v5532_v13 = vpop.f32.mrb[38].mxu0 }
 0x776   :  { %v5533_v44 = vpop.f32.mrb[39].mxu0 }
 0x7ab   :  { %v5467_v21 = vpop.f32.mrb[40].mxu1 }
 0x7ac   :  { %v6577_v23 = vadd.f32 %v5467_v21, %v3877_v46  ;;  %v5569_v25 = vpop.f32.mrb[32].mxu0  ;;  %v5469_v28 = vpop.f32.mrb[41].mxu1 }
 0x7ad   :  { %v6583_v29 = vadd.f32 %v5569_v25, %v8090_v7  ;;  %v6578_v31 = vadd.f32 %v5469_v28, %v3881_v5  ;;  %v5571_v32 = vpop.f32.mrb[33].mxu0  ;;  %v5471_v36 = vpop.f32.mrb[42].mxu1  ;;  %v5529_v25 = vadd.f32 %v8079_v35, %v8090_v7  ;;  %v5531_v28 = vadd.f32 %v8081_v45, %v8093_v20 }
 0x7ae   :  { %v6467_v9 = vmul.f32 -1.442695, %v6577_v23  ;;  %v6584_v26 = vadd.f32 %v5571_v32, %v8093_v20  ;;  %v6579_v27 = vadd.f32 %v5471_v36, %v3877_v46  ;;  %v5573_v37 = vpop.f32.mrb[34].mxu0  ;;  %v5473_v41 = vpop.f32.mrb[43].mxu1 }
 0x7af   :  { %v6469_v16 = vmul.f32 -1.442695, %v6583_v29  ;;  %v6468_v47 = vmul.f32 -1.442695, %v6578_v31  ;;  %v6585_v48 = vadd.f32 %v5573_v37, %v8090_v7  ;;  %v6580_v15 = vadd.f32 %v5473_v41, %v3881_v5  ;;  %v5575_v50 = vpop.f32.mrb[35].mxu0 }
 0x7b0   :  { %7365 = vpow2.f32 %v6467_v9  ;;  %v6470_v39 = vmul.f32 -1.442695, %v6584_v26  ;;  %v6475_v12 = vmul.f32 -1.442695, %v6579_v27  ;;  %v6586_v52 = vadd.f32 %v5575_v50, %v8093_v20 }
 0x7b1   :  { %7367 = vpow2.f32 %v6469_v16  ;;  %v6477_v54 = vmul.f32 -1.442695, %v6585_v48  ;;  %v6476_v56 = vmul.f32 -1.442695, %v6580_v15 }
 0x7b2   :  { %7369 = vpow2.f32 %v6468_v47  ;;  %v6478_v57 = vmul.f32 -1.442695, %v6586_v52 }
 0x7b3   :  { %7371 = vpow2.f32 %v6470_v39  ;;  %v5477_v58 = vpop.f32.mrb[44].mxu1 }
 0x7b4   :  { %7373 = vpow2.f32 %v6475_v12  ;;  %v6581_v59 = vadd.f32 %v5477_v58, %v3877_v46  ;;  %v5479_v62 = vpop.f32.mrb[45].mxu1 }
 0x7b5   :  { %7375 = vpow2.f32 %v6477_v54  ;;  %v6582_v51 = vadd.f32 %v5479_v62, %v3881_v5  ;;  %v5481_v24 = vpop.f32.mrb[46].mxu1 }
 0x7b6   :  { %7377 = vpow2.f32 %v6476_v56  ;;  %v6483_v0 = vmul.f32 -1.442695, %v6581_v59  ;;  %v5482_v2 = vpop.f32.mrb[47].mxu1 }
 0x7b7   :  { %7379 = vpow2.f32 %v6478_v57  ;;  %v6484_v19 = vmul.f32 -1.442695, %v6582_v51 }
 0x7b8   :  { %7381 = vpow2.f32 %v6483_v0 }
 0x7b9   :  { %7383 = vpow2.f32 %v6484_v19 }
 0x7ba   :  { %v7366_v6 = vpop.eup %7365 }
 0x7bb   :  { %v7368_v18 = vpop.eup %7367  ;;  %v5662_v1 = vadd.f32 1.0, %v7366_v6 }
 0x7bc   :  { %v7370_v34 = vpop.eup %7369  ;;  %v5664_v38 = vadd.f32 1.0, %v7368_v18 }
 0x7bd   :  { %v7372_v43 = vpop.eup %7371  ;;  %7385 = vrcp.f32 %v5662_v1  ;;  %v5663_v49 = vadd.f32 1.0, %v7370_v34 }
 0x7be   :  { %v7374_v17 = vpop.eup %7373  ;;  %7387 = vrcp.f32 %v5664_v38  ;;  %v5665_v30 = vadd.f32 1.0, %v7372_v43 }
 0x7bf   :  { %v7376_v42 = vpop.eup %7375  ;;  %7389 = vrcp.f32 %v5663_v49  ;;  %v5670_v55 = vadd.f32 1.0, %v7374_v17 }
 0x7c0   :  { %v7378_v61 = vpop.eup %7377  ;;  %7391 = vrcp.f32 %v5665_v30  ;;  %v5672_v63 = vadd.f32 1.0, %v7376_v42 }
 0x7c1   :  { %v7380_v3 = vpop.eup %7379  ;;  %7393 = vrcp.f32 %v5670_v55  ;;  %v5671_v4 = vadd.f32 1.0, %v7378_v61 }
 0x7c2   :  { %v7382_v8 = vpop.eup %7381  ;;  %7395 = vrcp.f32 %v5672_v63  ;;  %v5673_v10 = vadd.f32 1.0, %v7380_v3 }
 0x7c3   :  { %v7384_v22 = vpop.eup %7383  ;;  %7397 = vrcp.f32 %v5671_v4  ;;  %v5678_v33 = vadd.f32 1.0, %v7382_v8 }
 0x7c4   :  { %7399 = vrcp.f32 %v5673_v10  ;;  %v5679_v11 = vadd.f32 1.0, %v7384_v22 }
 0x7c5   :  { %7401 = vrcp.f32 %v5678_v33 }
 0x7c6   :  { %7403 = vrcp.f32 %v5679_v11 }
 0x7c7   :  { %v7386_v13 = vpop.eup %7385 }
 0x7c8   :  { %v7388_v44 = vpop.eup %7387  ;;  %5734 = vst [vmem:[#allocation14 + $0x20] sm:$0xff] %v7386_v13 }
 0x7c9   :  { %v7390_v40 = vpop.eup %7389  ;;  %5736 = vst [vmem:[#allocation14 + $0x30] sm:$0xff] %v7388_v44 }
 0x7ca   :  { %v7392_v14 = vpop.eup %7391  ;;  %5735 = vst [vmem:[#allocation14 + $0x28] sm:$0xff] %v7390_v40 }
 0x7cb   :  { %v7394_v53 = vpop.eup %7393  ;;  %5737 = vst [vmem:[#allocation14 + $0x38] sm:$0xff] %v7392_v14 }
 0x7cc   :  { %v7396_v60 = vpop.eup %7395  ;;  %5742 = vst [vmem:[#allocation14 + $0x60] sm:$0xff] %v7394_v53 }
 0x7cd   :  { %v7398_v46 = vpop.eup %7397  ;;  %5744 = vst [vmem:[#allocation14 + $0x70] sm:$0xff] %v7396_v60 }
 0x7ce   :  { %v7400_v5 = vpop.eup %7399  ;;  %5743 = vst [vmem:[#allocation14 + $0x68] sm:$0xff] %v7398_v46 }
 0x7cf   :  { %v7402_v21 = vpop.eup %7401  ;;  %5745 = vst [vmem:[#allocation14 + $0x78] sm:$0xff] %v7400_v5 }
 0x7d0   :  { %v7404_v23 = vpop.eup %7403  ;;  %5750 = vst [vmem:[#allocation14 + $0xa0] sm:$0xff] %v7402_v21 }
 0x7d1   :  { %5751 = vst [vmem:[#allocation14 + $0xa8] sm:$0xff] %v7404_v23 }
 0x7ec   :  { %v5579_v29 = vpop.f32.mrb[48].mxu1 }
 0x7ed   :  { %v5580_v31 = vadd.f32 %v5579_v29, %v5529_v25  ;;  %v5581_v32 = vpop.f32.mrb[49].mxu1 }
 0x7ee   :  { %v5582_v36 = vadd.f32 %v5581_v32, %v5531_v28  ;;  %v5583_v9 = vpop.f32.mrb[50].mxu1 }
 0x7ef   :  { %v6485_v26 = vmul.f32 -1.442695, %v5580_v31  ;;  %v5584_v27 = vpop.f32.mrb[51].mxu1 }
 0x7f0   :  { %v6486_v37 = vmul.f32 -1.442695, %v5582_v36 }
 0x7f1   :  { %7405 = vpow2.f32 %v6485_v26 }
 0x7f2   :  { %7407 = vpow2.f32 %v6486_v37 }
 0x7fb   :  { %v7406_v41 = vpop.eup %7405 }
 0x7fc   :  { %v7408_v16 = vpop.eup %7407  ;;  %v5680_v47 = vadd.f32 1.0, %v7406_v41 }
 0x7fd   :  { %v5681_v48 = vadd.f32 1.0, %v7408_v16 }
 0x7fe   :  { %7409 = vrcp.f32 %v5680_v47 }
 0x7ff   :  { %7411 = vrcp.f32 %v5681_v48 }
 0x808   :  { %v7410_v35 = vpop.eup %7409 }
 0x809   :  { %v7412_v45 = vpop.eup %7411  ;;  %5752 = vst [vmem:[#allocation14 + $0xb0] sm:$0xff] %v7410_v35 }
 0x80a   :  { %5753 = vst [vmem:[#allocation14 + $0xb8] sm:$0xff] %v7412_v45 }
 0x80b   :  { %7578 = shalt.err (!%p7575_p4)
}
 0x80c   :  { %s7579_s14 = scalar_lea.hbm %s8129_s13, 3072 }
 0x80d   :  { %p7580_p5 = scmp.ne.s32.totalorder %s8129_s13, %s7579_s14  ;;  %p7583_p6 = scmp.lt.u32.totalorder %s7579_s14, %s8129_s13 }
 0x80f   :  { %p7585_p7 = pnand %p7583_p6, %p7580_p5 }
 0x811   :  { %7588 = shalt.err (!%p7585_p7)
}
 0x812   :  { %s7616_s28 = smov 1024  }
 0x813   :  { %5765 = dma.vmem_to_hbm [thread:$0]  %s5760_s26, 3072, %s8129_s13, [#allocation4], %s7616_s28, %s7616_s28, %s7603_s1  }
 0x814   :  { %7597 = dma.done.wait [#allocation4], 3072  }
 0x815   :  { %7598 = vsyncadd [#allocation4], 4294964224 }
 0x816   :  { %5769 = vsyncpa [#allocation3], 1 }
 0x817   :  { %5770 = vsyncpa [#allocation6], 1 }
 0x818   :  { %5771 = vsyncpa [#allocation9], 1 }
 0x819   :  { %5772 = vsyncpa [#allocation12], 1 }
 0x81a   :  { %5773 = vsyncpa [#allocation4], 1 }

</bundles_post_ra>
